<compile_context>
chip_gen: v6e
topology: v6e:2x2x1
jax: 0.10.0
libtpu: 0.0.40
codegen_flags: <defaults>
</compile_context>

<pallas_src>
import functools

import jax
import jax.numpy as jnp
from jax.experimental import pallas as pl
from jax.experimental.pallas import tpu as pltpu


def _pick_tile(n, cap, valid):
    """Largest divisor of n that is <= cap and satisfies valid(d); falls back to n."""
    best = None
    for d in range(1, n + 1):
        if n % d == 0 and d <= cap and valid(d):
            best = d
    return best if best is not None else n


# ----------------------------------------------------------------------------
# 3x3 "same" convolution (+ bias, optional fused ReLU)
# ----------------------------------------------------------------------------
def _conv3x3_kernel(x0_ref, x1_ref, x2_ref, w_ref, b_ref, o_ref, acc_ref, *,
                    W, TRW, TCout, apply_relu):
    f32 = jnp.float32
    # three dy-shifted (TRW, Cin) tiles: f[0]=x[r-1], f[1]=x[r], f[2]=x[r+1]
    f = (x0_ref[0], x1_ref[0], x2_ref[0])

    def taps(dx):
        s = jnp.dot(f[0], w_ref[0, dx], preferred_element_type=f32)
        s += jnp.dot(f[1], w_ref[1, dx], preferred_element_type=f32)
        s += jnp.dot(f[2], w_ref[2, dx], preferred_element_type=f32)
        return s

    # centre column of the 3x3 stencil (dx == 1): no spatial shift needed.
    acc_ref[...] = taps(1)

    col = jax.lax.broadcasted_iota(jnp.int32, (TRW, 1), 0) % W
    zrow = jnp.zeros((1, TCout), f32)

    # left column (dx == 0): product at flat position g contributes to output
    # g+1; mask col == W-1 so nothing leaks across image-row boundaries.
    s = jnp.where(col == W - 1, 0.0, taps(0))
    acc_ref[...] += jnp.concatenate([zrow, s[:-1, :]], axis=0)

    # right column (dx == 2): product at flat position g contributes to g-1.
    s = jnp.where(col == 0, 0.0, taps(2))
    acc_ref[...] += jnp.concatenate([s[1:, :], zrow], axis=0)

    # fused epilogue: bias (+ ReLU), cast, store.
    y = acc_ref[...] + b_ref[...].astype(f32)
    if apply_relu:
        y = jnp.maximum(y, 0.0)
    o_ref[0] = y.astype(o_ref.dtype)


def conv3x3_bias_act(x, w, b, *, apply_relu):
    """3x3 / stride-1 / pad-1 conv + bias (+ fused ReLU).

    x: (N, H, W, Cin) NHWC; w: (3, 3, Cin, Cout) HWIO; b: (Cout,).
    """
    N, H, W, Cin = x.shape
    Cout = w.shape[-1]
    TCout = Cout if Cout <= 256 else 256            # MXU-sized Cout tile
    # Row tile: biggest divisor of H whose per-buffer footprint stays ~2 MiB so
    # double-buffered tiles fit every generation's scoped-VMEM default.
    cap = max(1, (2 << 20) // (W * max(Cin, TCout) * 4))
    TR = _pick_tile(H, cap, lambda d: d == H or (d * W) % 8 == 0)
    TRW = TR * W

    # dy-shifted row views: x0[r]=x[r-1], x1[r]=x[r], x2[r]=x[r+1] (zero halo).
    # The H halo is resolved here so every kernel block is a plain aligned
    # tile; the flatten to (N, H*W, Cin) is a free row-major reshape.
    # TODO(synk): replace the two shifted views with in-kernel manual DMA of a
    # (TR+2)-row window (memory_space=pl.ANY) to drop the extra wrapper copies.
    xh = jnp.pad(x, ((0, 0), (1, 1), (0, 0), (0, 0)))
    x0 = xh[:, 0:H].reshape(N, H * W, Cin)
    x1 = x.reshape(N, H * W, Cin)
    x2 = xh[:, 2:H + 2].reshape(N, H * W, Cin)
    b2 = b.reshape(1, Cout)

    kern = functools.partial(_conv3x3_kernel, W=W, TRW=TRW, TCout=TCout,
                             apply_relu=apply_relu)
    in_spec_x = pl.BlockSpec((1, TRW, Cin), lambda n, j, i: (n, i, 0))
    out = pl.pallas_call(
        kern,
        out_shape=jax.ShapeDtypeStruct((N, H * W, Cout), x.dtype),
        # row tiles innermost: weight/bias block index depends only on j, so
        # those blocks are DMA'd once per (n, cout-tile) and stay resident.
        grid=(N, Cout // TCout, H // TR),
        in_specs=[
            in_spec_x, in_spec_x, in_spec_x,
            pl.BlockSpec((3, 3, Cin, TCout), lambda n, j, i: (0, 0, 0, j)),
            pl.BlockSpec((1, TCout), lambda n, j, i: (0, j)),
        ],
        out_specs=pl.BlockSpec((1, TRW, TCout), lambda n, j, i: (n, i, j)),
        scratch_shapes=[pltpu.VMEM((TRW, TCout), jnp.float32)],
        compiler_params=pltpu.CompilerParams(
            dimension_semantics=("parallel", "parallel", "parallel")),
    )(x0, x1, x2, w, b2)
    return out.reshape(N, H, W, Cout)


# ----------------------------------------------------------------------------
# Standalone ReLU (only used when a conv's pre-activation is listened to)
# ----------------------------------------------------------------------------
def _relu_kernel(x_ref, o_ref):
    o_ref[...] = jnp.maximum(x_ref[...], 0.0)


def relu_pallas(x):
    N, H, W, C = x.shape
    if C >= 128:
        M, K = N * H * W, C
    else:
        M, K = N * H, W * C            # lane-dense: K is a multiple of 128
    x2 = x.reshape(M, K)
    bm = _pick_tile(M, max(1, (4 << 20) // (K * 4)),
                    lambda d: d == M or d % 8 == 0)
    out = pl.pallas_call(
        _relu_kernel,
        out_shape=jax.ShapeDtypeStruct((M, K), x.dtype),
        grid=(M // bm,),
        in_specs=[pl.BlockSpec((bm, K), lambda i: (i, 0))],
        out_specs=pl.BlockSpec((bm, K), lambda i: (i, 0)),
        compiler_params=pltpu.CompilerParams(dimension_semantics=("parallel",)),
    )(x2)
    return out.reshape(N, H, W, C)


# ----------------------------------------------------------------------------
# 2x2 / stride-2 max pool (single-pass kernel)
# ----------------------------------------------------------------------------
def _maxpool_kernel(xe_ref, xo_ref, o_ref, *, C):
    a = xe_ref[...]      # (1, TRo*Wo, 2C): even image rows, W pairs in lanes
    b = xo_ref[...]      # (1, TRo*Wo, 2C): odd image rows
    o_ref[...] = jnp.maximum(jnp.maximum(a[..., :C], a[..., C:]),
                             jnp.maximum(b[..., :C], b[..., C:]))


def maxpool2x2(x):
    N, H, W, C = x.shape
    assert H % 2 == 0 and W % 2 == 0, "2x2/stride-2 pool needs even H, W"
    Ho, Wo = H // 2, W // 2
    # Even/odd row split is wrapper glue; the (free) reshape packs each output
    # pixel's two W-neighbours into adjacent lane groups, so the kernel is a
    # pure lane-sliced max that reads each input element exactly once.
    xe = x[:, 0::2].reshape(N, Ho * Wo, 2 * C)
    xo = x[:, 1::2].reshape(N, Ho * Wo, 2 * C)
    cap = max(1, (2 << 20) // (Wo * 2 * C * 4))
    TRo = _pick_tile(Ho, cap, lambda d: d == Ho or (d * Wo) % 8 == 0)
    in_spec = pl.BlockSpec((1, TRo * Wo, 2 * C), lambda n, i: (n, i, 0))
    out = pl.pallas_call(
        functools.partial(_maxpool_kernel, C=C),
        out_shape=jax.ShapeDtypeStruct((N, Ho * Wo, C), x.dtype),
        grid=(N, Ho // TRo),
        in_specs=[in_spec, in_spec],
        out_specs=pl.BlockSpec((1, TRo * Wo, C), lambda n, i: (n, i, 0)),
        compiler_params=pltpu.CompilerParams(
            dimension_semantics=("parallel", "parallel")),
    )(xe, xo)
    return out.reshape(N, Ho, Wo, C)


_PALLAS_OPS = dict(conv=conv3x3_bias_act, relu=relu_pallas, pool=maxpool2x2)


# ----------------------------------------------------------------------------
# VGG19 feature extractor
# ----------------------------------------------------------------------------
class VGG19FeaPallas:
    # channel config of the conv layers; 'M' = maxpool
    _cfg = [64, 64, 'M', 128, 128, 'M', 256, 256, 256, 256, 'M',
            512, 512, 512, 512, 'M', 512, 512, 512, 512]

    def __init__(self, key):
        self.layers = []          # ('conv', w, b) / ('relu',) / ('pool',)
        in_ch = 3
        n_convs = sum(1 for c in self._cfg if c != 'M')
        keys = jax.random.split(key, n_convs)
        ki = 0
        for idx, c in enumerate(self._cfg):
            if c == 'M':
                self.layers.append(('pool',))
            else:
                kw, kb = jax.random.split(keys[ki]); ki += 1
                scale = (2.0 / (9.0 * in_ch)) ** 0.5
                w = jax.random.normal(kw, (3, 3, in_ch, c), jnp.float32) * scale
                b = jax.random.normal(kb, (c,), jnp.float32) * 0.01
                self.layers.append(('conv', w, b))
                if idx != len(self._cfg) - 1:     # no ReLU after conv5_4
                    self.layers.append(('relu',))
                in_ch = c
        # replicated verbatim from the PyTorch module (including the duplicate
        # 'conv4_3' key which overwrites 23 with 32, dropping 'conv5_3').
        self.dict_layer2index = {'conv1_1': 0, 'conv1_2': 2, 'conv2_1': 5,
                                 'conv2_2': 7, 'conv3_1': 10, 'conv3_2': 12,
                                 'conv3_3': 14, 'conv3_4': 16, 'conv4_1': 19,
                                 'conv4_2': 21, 'conv4_3': 23, 'conv4_4': 25,
                                 'conv5_1': 28, 'conv5_2': 30, 'conv4_3': 32,
                                 'conv5_4': 34}
        self.dict_index2layer = dict(
            (v, k) for k, v in self.dict_layer2index.items())

    def forward(self, x_nchw, listen_list, ops=_PALLAS_OPS):
        assert len(listen_list) >= 1, 'listen_list must >= 1'
        listen_indexes = [self.dict_layer2index[name] for name in listen_list]
        max_index = max(listen_indexes)
        feas = {}
        fea = jnp.transpose(x_nchw, (0, 2, 3, 1))     # NCHW -> NHWC
        skip_relu = False
        for i in range(max_index + 1):
            layer = self.layers[i]
            kind = layer[0]
            if kind == 'conv':
                # Fuse the following ReLU into the conv unless this conv's
                # pre-activation output is listened to (PyTorch indexes the
                # conv layer itself, i.e. the pre-ReLU tensor).
                fuse = (i not in listen_indexes
                        and i + 1 <= max_index
                        and self.layers[i + 1][0] == 'relu')
                fea = ops['conv'](fea, layer[1], layer[2], apply_relu=fuse)
                skip_relu = fuse
            elif kind == 'relu':
                if skip_relu:
                    skip_relu = False     # already applied inside the conv
                else:
                    fea = ops['relu'](fea)
            else:
                fea = ops['pool'](fea)
            if i in listen_indexes:
                feas[self.dict_index2layer[i]] = jnp.transpose(fea, (0, 3, 1, 2))
        return feas


# ----------------------------------------------------------------------------
# pure-JAX reference (for correctness check)
# ----------------------------------------------------------------------------
def _ref_conv(x, w, b, *, apply_relu):
    y = jax.lax.conv_general_dilated(
        x, w, window_strides=(1, 1), padding=((1, 1), (1, 1)),
        dimension_numbers=('NHWC', 'HWIO', 'NHWC')) + b
    return jnp.maximum(y, 0.0) if apply_relu else y


def _ref_relu(x):
    return jnp.maximum(x, 0.0)


def _ref_pool(x):
    return jnp.maximum(
        jnp.maximum(x[:, 0::2, 0::2, :], x[:, 0::2, 1::2, :]),
        jnp.maximum(x[:, 1::2, 0::2, :], x[:, 1::2, 1::2, :]))


_REF_OPS = dict(conv=_ref_conv, relu=_ref_relu, pool=_ref_pool)


if __name__ == "__main__":
    key = jax.random.PRNGKey(0)
    k_params, k_x = jax.random.split(key)

    model = VGG19FeaPallas(k_params)
    x = jax.random.normal(k_x, (2, 3, 16, 16), jnp.float32)   # NCHW, like PyTorch

    listen_list = ['conv1_2', 'conv2_2', 'conv3_1']
    feas = model.forward(x, listen_list)
    for v in feas.values():
        jax.block_until_ready(v)

    assert feas['conv1_2'].shape == (2, 64, 16, 16)
    assert feas['conv2_2'].shape == (2, 128, 8, 8)
    assert feas['conv3_1'].shape == (2, 256, 4, 4)

    # verify against a pure-JAX reference of the same network
    ref_feas = model.forward(x, listen_list, ops=_REF_OPS)
    for name in listen_list:
        got = feas[name]
        ref = ref_feas[name]
        assert jnp.allclose(got, ref, atol=2e-2, rtol=2e-2), name

    print("KERNEL_OK")
</pallas_src>

<mosaic_0001>
module attributes {stable_mosaic.version = 11 : i64} {
  func.func @_conv3x3_kernel(%arg0: i32, %arg1: i32, %arg2: i32, %arg3: memref<1x256x3xf32, #tpu.memory_space<vmem>>, %arg4: memref<1x256x3xf32, #tpu.memory_space<vmem>>, %arg5: memref<1x256x3xf32, #tpu.memory_space<vmem>>, %arg6: memref<3x3x3x64xf32, #tpu.memory_space<vmem>>, %arg7: memref<1x64xf32, #tpu.memory_space<vmem>>, %arg8: memref<1x256x64xf32, #tpu.memory_space<vmem>>, %arg9: memref<256x64xf32, #tpu.memory_space<vmem>>) attributes {dimension_semantics = [#tpu.dimension_semantics<parallel>, #tpu.dimension_semantics<parallel>, #tpu.dimension_semantics<parallel>], iteration_bounds = array<i64: 2, 1, 1>, scalar_prefetch = 0 : i64, scratch_operands = 1 : i64, tpu.core_type = #tpu.core_type<tc>, window_params = [{transform_indices = @transform_0, window_bounds = array<i64: 1, 256, 3>}, {transform_indices = @transform_1, window_bounds = array<i64: 1, 256, 3>}, {transform_indices = @transform_2, window_bounds = array<i64: 1, 256, 3>}, {transform_indices = @transform_3, window_bounds = array<i64: 3, 3, 3, 64>}, {transform_indices = @transform_4, window_bounds = array<i64: 1, 64>}, {transform_indices = @transform_5, window_bounds = array<i64: 1, 256, 64>}]} {
    %c0 = arith.constant 0 : index
    %c0_0 = arith.constant 0 : index
    %c0_1 = arith.constant 0 : index
    %0 = vector.load %arg3[%c0, %c0_0, %c0_1] : memref<1x256x3xf32, #tpu.memory_space<vmem>>, vector<1x256x3xf32>
    %1 = vector.shape_cast %0 : vector<1x256x3xf32> to vector<256x3xf32>
    %c0_2 = arith.constant 0 : index
    %c0_3 = arith.constant 0 : index
    %c0_4 = arith.constant 0 : index
    %2 = vector.load %arg4[%c0_2, %c0_3, %c0_4] : memref<1x256x3xf32, #tpu.memory_space<vmem>>, vector<1x256x3xf32>
    %3 = vector.shape_cast %2 : vector<1x256x3xf32> to vector<256x3xf32>
    %c0_5 = arith.constant 0 : index
    %c0_6 = arith.constant 0 : index
    %c0_7 = arith.constant 0 : index
    %4 = vector.load %arg5[%c0_5, %c0_6, %c0_7] : memref<1x256x3xf32, #tpu.memory_space<vmem>>, vector<1x256x3xf32>
    %5 = vector.shape_cast %4 : vector<1x256x3xf32> to vector<256x3xf32>
    %c0_8 = arith.constant 0 : index
    %c1 = arith.constant 1 : index
    %c0_9 = arith.constant 0 : index
    %c0_10 = arith.constant 0 : index
    %6 = vector.load %arg6[%c0_8, %c1, %c0_9, %c0_10] : memref<3x3x3x64xf32, #tpu.memory_space<vmem>>, vector<1x1x3x64xf32>
    %7 = vector.shape_cast %6 : vector<1x1x3x64xf32> to vector<3x64xf32>
    %cst = arith.constant dense<0.000000e+00> : vector<256x64xf32>
    %8 = tpu.matmul %1, %7, %cst {dimension_numbers = #tpu.dot_dimension_numbers<[1], [0], [0], [1], [0, 0, 1, 1], [], []>} : vector<256x3xf32>, vector<3x64xf32>, vector<256x64xf32> -> vector<256x64xf32>
    %c1_11 = arith.constant 1 : index
    %c1_12 = arith.constant 1 : index
    %c0_13 = arith.constant 0 : index
    %c0_14 = arith.constant 0 : index
    %9 = vector.load %arg6[%c1_11, %c1_12, %c0_13, %c0_14] : memref<3x3x3x64xf32, #tpu.memory_space<vmem>>, vector<1x1x3x64xf32>
    %10 = vector.shape_cast %9 : vector<1x1x3x64xf32> to vector<3x64xf32>
    %cst_15 = arith.constant dense<0.000000e+00> : vector<256x64xf32>
    %11 = tpu.matmul %3, %10, %cst_15 {dimension_numbers = #tpu.dot_dimension_numbers<[1], [0], [0], [1], [0, 0, 1, 1], [], []>} : vector<256x3xf32>, vector<3x64xf32>, vector<256x64xf32> -> vector<256x64xf32>
    %12 = arith.addf %8, %11 : vector<256x64xf32>
    %c2 = arith.constant 2 : index
    %c1_16 = arith.constant 1 : index
    %c0_17 = arith.constant 0 : index
    %c0_18 = arith.constant 0 : index
    %13 = vector.load %arg6[%c2, %c1_16, %c0_17, %c0_18] : memref<3x3x3x64xf32, #tpu.memory_space<vmem>>, vector<1x1x3x64xf32>
    %14 = vector.shape_cast %13 : vector<1x1x3x64xf32> to vector<3x64xf32>
    %cst_19 = arith.constant dense<0.000000e+00> : vector<256x64xf32>
    %15 = tpu.matmul %5, %14, %cst_19 {dimension_numbers = #tpu.dot_dimension_numbers<[1], [0], [0], [1], [0, 0, 1, 1], [], []>} : vector<256x3xf32>, vector<3x64xf32>, vector<256x64xf32> -> vector<256x64xf32>
    %16 = arith.addf %12, %15 : vector<256x64xf32>
    %c0_20 = arith.constant 0 : index
    %c0_21 = arith.constant 0 : index
    %17 = vector.load %arg9[%c0_20, %c0_21] : memref<256x64xf32, #tpu.memory_space<vmem>>, vector<256x64xf32>
    tpu.vector_store %arg9[%c0_20, %c0_21], %16 {strides = array<i32>} : memref<256x64xf32, #tpu.memory_space<vmem>>, vector<256x64xf32>,
    %18 = tpu.iota {dimensions = array<i32: 0>} : vector<256x1xi32>
    %c16_i32 = arith.constant 16 : i32
    %c0_i32 = arith.constant 0 : i32
    %19 = arith.cmpi eq, %c16_i32, %c0_i32 : i32
    %c1_i32 = arith.constant 1 : i32
    %20 = arith.select %19, %c1_i32, %c16_i32 : i32
    %21 = vector.broadcast %20 : i32 to vector<256x1xi32>
    %22 = arith.remsi %18, %21 : vector<256x1xi32>
    %c0_i32_22 = arith.constant 0 : i32
    %23 = vector.broadcast %c0_i32_22 : i32 to vector<256x1xi32>
    %24 = arith.cmpi ne, %22, %23 : vector<256x1xi32>
    %c0_i32_23 = arith.constant 0 : i32
    %25 = vector.broadcast %c0_i32_23 : i32 to vector<256x1xi32>
    %26 = arith.cmpi slt, %22, %25 : vector<256x1xi32>
    %c0_i32_24 = arith.constant 0 : i32
    %27 = arith.cmpi slt, %20, %c0_i32_24 : i32
    %28 = vector.broadcast %27 : i1 to vector<256x1xi1>
    %29 = vector.broadcast %28 : vector<256x1xi1> to vector<256x1xi1>
    %30 = arith.xori %26, %29 : vector<256x1xi1>
    %31 = arith.andi %30, %24 : vector<256x1xi1>
    %32 = vector.broadcast %20 : i32 to vector<256x1xi32>
    %33 = arith.addi %22, %32 : vector<256x1xi32>
    %34 = arith.select %31, %33, %22 : vector<256x1xi1>, vector<256x1xi32>
    %cst_25 = arith.constant 0.000000e+00 : f32
    %35 = vector.broadcast %cst_25 : f32 to vector<1x64xf32>
    %c15_i32 = arith.constant 15 : i32
    %36 = vector.broadcast %c15_i32 : i32 to vector<256x1xi32>
    %37 = arith.cmpi eq, %34, %36 : vector<256x1xi32>
    %c0_26 = arith.constant 0 : index
    %c0_27 = arith.constant 0 : index
    %c0_28 = arith.constant 0 : index
    %c0_29 = arith.constant 0 : index
    %38 = vector.load %arg6[%c0_26, %c0_27, %c0_28, %c0_29] : memref<3x3x3x64xf32, #tpu.memory_space<vmem>>, vector<1x1x3x64xf32>
    %39 = vector.shape_cast %38 : vector<1x1x3x64xf32> to vector<3x64xf32>
    %cst_30 = arith.constant dense<0.000000e+00> : vector<256x64xf32>
    %40 = tpu.matmul %1, %39, %cst_30 {dimension_numbers = #tpu.dot_dimension_numbers<[1], [0], [0], [1], [0, 0, 1, 1], [], []>} : vector<256x3xf32>, vector<3x64xf32>, vector<256x64xf32> -> vector<256x64xf32>
    %c1_31 = arith.constant 1 : index
    %c0_32 = arith.constant 0 : index
    %c0_33 = arith.constant 0 : index
    %c0_34 = arith.constant 0 : index
    %41 = vector.load %arg6[%c1_31, %c0_32, %c0_33, %c0_34] : memref<3x3x3x64xf32, #tpu.memory_space<vmem>>, vector<1x1x3x64xf32>
    %42 = vector.shape_cast %41 : vector<1x1x3x64xf32> to vector<3x64xf32>
    %cst_35 = arith.constant dense<0.000000e+00> : vector<256x64xf32>
    %43 = tpu.matmul %3, %42, %cst_35 {dimension_numbers = #tpu.dot_dimension_numbers<[1], [0], [0], [1], [0, 0, 1, 1], [], []>} : vector<256x3xf32>, vector<3x64xf32>, vector<256x64xf32> -> vector<256x64xf32>
    %44 = arith.addf %40, %43 : vector<256x64xf32>
    %c2_36 = arith.constant 2 : index
    %c0_37 = arith.constant 0 : index
    %c0_38 = arith.constant 0 : index
    %c0_39 = arith.constant 0 : index
    %45 = vector.load %arg6[%c2_36, %c0_37, %c0_38, %c0_39] : memref<3x3x3x64xf32, #tpu.memory_space<vmem>>, vector<1x1x3x64xf32>
    %46 = vector.shape_cast %45 : vector<1x1x3x64xf32> to vector<3x64xf32>
    %cst_40 = arith.constant dense<0.000000e+00> : vector<256x64xf32>
    %47 = tpu.matmul %5, %46, %cst_40 {dimension_numbers = #tpu.dot_dimension_numbers<[1], [0], [0], [1], [0, 0, 1, 1], [], []>} : vector<256x3xf32>, vector<3x64xf32>, vector<256x64xf32> -> vector<256x64xf32>
    %48 = arith.addf %44, %47 : vector<256x64xf32>
    %cst_41 = arith.constant 0.000000e+00 : f32
    %49 = vector.shape_cast %37 : vector<256x1xi1> to vector<256x1xi1>
    %50 = vector.broadcast %49 : vector<256x1xi1> to vector<256x64xi1>
    %51 = vector.broadcast %cst_41 : f32 to vector<256x64xf32>
    %52 = arith.select %50, %51, %48 : vector<256x64xi1>, vector<256x64xf32>
    %c0_42 = arith.constant 0 : index
    %c0_43 = arith.constant 0 : index
    %53 = vector.load %arg9[%c0_42, %c0_43] : memref<256x64xf32, #tpu.memory_space<vmem>>, vector<256x64xf32>
    %54 = vector.extract_strided_slice %52 {offsets = [0, 0], sizes = [255, 64], strides = [1, 1]} : vector<256x64xf32> to vector<255x64xf32>
    %55 = tpu.concatenate %35, %54 in 0 : vector<1x64xf32>, vector<255x64xf32> -> vector<256x64xf32>
    %56 = arith.addf %53, %55 : vector<256x64xf32>
    %c0_44 = arith.constant 0 : index
    %c0_45 = arith.constant 0 : index
    %57 = vector.load %arg9[%c0_44, %c0_45] : memref<256x64xf32, #tpu.memory_space<vmem>>, vector<256x64xf32>
    tpu.vector_store %arg9[%c0_44, %c0_45], %56 {strides = array<i32>} : memref<256x64xf32, #tpu.memory_space<vmem>>, vector<256x64xf32>,
    %c0_i32_46 = arith.constant 0 : i32
    %58 = vector.broadcast %c0_i32_46 : i32 to vector<256x1xi32>
    %59 = arith.cmpi eq, %34, %58 : vector<256x1xi32>
    %c0_47 = arith.constant 0 : index
    %c2_48 = arith.constant 2 : index
    %c0_49 = arith.constant 0 : index
    %c0_50 = arith.constant 0 : index
    %60 = vector.load %arg6[%c0_47, %c2_48, %c0_49, %c0_50] : memref<3x3x3x64xf32, #tpu.memory_space<vmem>>, vector<1x1x3x64xf32>
    %61 = vector.shape_cast %60 : vector<1x1x3x64xf32> to vector<3x64xf32>
    %cst_51 = arith.constant dense<0.000000e+00> : vector<256x64xf32>
    %62 = tpu.matmul %1, %61, %cst_51 {dimension_numbers = #tpu.dot_dimension_numbers<[1], [0], [0], [1], [0, 0, 1, 1], [], []>} : vector<256x3xf32>, vector<3x64xf32>, vector<256x64xf32> -> vector<256x64xf32>
    %c1_52 = arith.constant 1 : index
    %c2_53 = arith.constant 2 : index
    %c0_54 = arith.constant 0 : index
    %c0_55 = arith.constant 0 : index
    %63 = vector.load %arg6[%c1_52, %c2_53, %c0_54, %c0_55] : memref<3x3x3x64xf32, #tpu.memory_space<vmem>>, vector<1x1x3x64xf32>
    %64 = vector.shape_cast %63 : vector<1x1x3x64xf32> to vector<3x64xf32>
    %cst_56 = arith.constant dense<0.000000e+00> : vector<256x64xf32>
    %65 = tpu.matmul %3, %64, %cst_56 {dimension_numbers = #tpu.dot_dimension_numbers<[1], [0], [0], [1], [0, 0, 1, 1], [], []>} : vector<256x3xf32>, vector<3x64xf32>, vector<256x64xf32> -> vector<256x64xf32>
    %66 = arith.addf %62, %65 : vector<256x64xf32>
    %c2_57 = arith.constant 2 : index
    %c2_58 = arith.constant 2 : index
    %c0_59 = arith.constant 0 : index
    %c0_60 = arith.constant 0 : index
    %67 = vector.load %arg6[%c2_57, %c2_58, %c0_59, %c0_60] : memref<3x3x3x64xf32, #tpu.memory_space<vmem>>, vector<1x1x3x64xf32>
    %68 = vector.shape_cast %67 : vector<1x1x3x64xf32> to vector<3x64xf32>
    %cst_61 = arith.constant dense<0.000000e+00> : vector<256x64xf32>
    %69 = tpu.matmul %5, %68, %cst_61 {dimension_numbers = #tpu.dot_dimension_numbers<[1], [0], [0], [1], [0, 0, 1, 1], [], []>} : vector<256x3xf32>, vector<3x64xf32>, vector<256x64xf32> -> vector<256x64xf32>
    %70 = arith.addf %66, %69 : vector<256x64xf32>
    %cst_62 = arith.constant 0.000000e+00 : f32
    %71 = vector.shape_cast %59 : vector<256x1xi1> to vector<256x1xi1>
    %72 = vector.broadcast %71 : vector<256x1xi1> to vector<256x64xi1>
    %73 = vector.broadcast %cst_62 : f32 to vector<256x64xf32>
    %74 = arith.select %72, %73, %70 : vector<256x64xi1>, vector<256x64xf32>
    %c0_63 = arith.constant 0 : index
    %c0_64 = arith.constant 0 : index
    %75 = vector.load %arg9[%c0_63, %c0_64] : memref<256x64xf32, #tpu.memory_space<vmem>>, vector<256x64xf32>
    %76 = vector.extract_strided_slice %74 {offsets = [1, 0], sizes = [255, 64], strides = [1, 1]} : vector<256x64xf32> to vector<255x64xf32>
    %77 = tpu.concatenate %76, %35 in 0 : vector<255x64xf32>, vector<1x64xf32> -> vector<256x64xf32>
    %78 = arith.addf %75, %77 : vector<256x64xf32>
    %c0_65 = arith.constant 0 : index
    %c0_66 = arith.constant 0 : index
    %79 = vector.load %arg9[%c0_65, %c0_66] : memref<256x64xf32, #tpu.memory_space<vmem>>, vector<256x64xf32>
    tpu.vector_store %arg9[%c0_65, %c0_66], %78 {strides = array<i32>} : memref<256x64xf32, #tpu.memory_space<vmem>>, vector<256x64xf32>,
    %c0_67 = arith.constant 0 : index
    %c0_68 = arith.constant 0 : index
    %80 = vector.load %arg9[%c0_67, %c0_68] : memref<256x64xf32, #tpu.memory_space<vmem>>, vector<256x64xf32>
    %c0_69 = arith.constant 0 : index
    %c0_70 = arith.constant 0 : index
    %81 = vector.load %arg7[%c0_69, %c0_70] : memref<1x64xf32, #tpu.memory_space<vmem>>, vector<1x64xf32>
    %82 = vector.broadcast %81 : vector<1x64xf32> to vector<256x64xf32>
    %83 = arith.addf %80, %82 : vector<256x64xf32>
    %cst_71 = arith.constant 0.000000e+00 : f32
    %84 = vector.broadcast %cst_71 : f32 to vector<256x64xf32>
    %85 = arith.maximumf %83, %84 : vector<256x64xf32>
    %c0_72 = arith.constant 0 : index
    %c0_73 = arith.constant 0 : index
    %c0_74 = arith.constant 0 : index
    %86 = vector.load %arg8[%c0_72, %c0_73, %c0_74] : memref<1x256x64xf32, #tpu.memory_space<vmem>>, vector<1x256x64xf32>
    %87 = vector.shape_cast %86 : vector<1x256x64xf32> to vector<256x64xf32>
    %88 = vector.shape_cast %85 : vector<256x64xf32> to vector<1x256x64xf32>
    tpu.vector_store %arg8[%c0_72, %c0_73, %c0_74], %88 {strides = array<i32>} : memref<1x256x64xf32, #tpu.memory_space<vmem>>, vector<1x256x64xf32>,
    return
  }
  func.func @transform_0(%arg0: i32, %arg1: i32, %arg2: i32) -> (i32, i32, i32) {
    %c0_i32 = arith.constant 0 : i32
    %c0_i32_0 = arith.constant 0 : i32
    return %arg0, %arg2, %c0_i32 : i32, i32, i32
  }
  func.func @transform_1(%arg0: i32, %arg1: i32, %arg2: i32) -> (i32, i32, i32) {
    %c0_i32 = arith.constant 0 : i32
    %c0_i32_0 = arith.constant 0 : i32
    return %arg0, %arg2, %c0_i32 : i32, i32, i32
  }
  func.func @transform_2(%arg0: i32, %arg1: i32, %arg2: i32) -> (i32, i32, i32) {
    %c0_i32 = arith.constant 0 : i32
    %c0_i32_0 = arith.constant 0 : i32
    return %arg0, %arg2, %c0_i32 : i32, i32, i32
  }
  func.func @transform_3(%arg0: i32, %arg1: i32, %arg2: i32) -> (i32, i32, i32, i32) {
    %c0_i32 = arith.constant 0 : i32
    %c0_i32_0 = arith.constant 0 : i32
    %c0_i32_1 = arith.constant 0 : i32
    %c0_i32_2 = arith.constant 0 : i32
    return %c0_i32, %c0_i32_0, %c0_i32_1, %arg1 : i32, i32, i32, i32
  }
  func.func @transform_4(%arg0: i32, %arg1: i32, %arg2: i32) -> (i32, i32) {
    %c0_i32 = arith.constant 0 : i32
    %c0_i32_0 = arith.constant 0 : i32
    return %c0_i32, %arg1 : i32, i32
  }
  func.func @transform_5(%arg0: i32, %arg1: i32, %arg2: i32) -> (i32, i32, i32) {
    %c0_i32 = arith.constant 0 : i32
    return %arg0, %arg2, %arg1 : i32, i32, i32
  }
}

</mosaic_0001>

<bundles_post_ra>
// kernel: tpu_custom_call.1
= control target key start
LH: loop header
LB: loop body
LE: loop exit
PB: predicated region body
PF: predicated region fallthrough
CT: control target
= control target key end

     0   :  { %s5541_s18 = smov 0   ;;  %s5543_s19 = smov 0   ;;  %s7464_s0 = inlined_call_operand.vmem [shape: f32[2,256,3], index: 0, kind: input, shape index: {}]   ;;  %s7465_s1 = inlined_call_operand.vmem [shape: f32[2,256,3], index: 1, kind: input, shape index: {}]   ;;  %s7466_s2 = inlined_call_operand.vmem [shape: f32[2,256,3], index: 2, kind: input, shape index: {}]   ;;  %s7467_s3 = inlined_call_operand.vmem [shape: f32[3,3,3,64], index: 3, kind: input, shape index: {}]   ;;  %s7468_s4 = inlined_call_operand.vmem [shape: f32[1,64], index: 4, kind: input, shape index: {}]   ;;  %s7469_s5 = inlined_call_operand.vmem [shape: f32[2,256,64], index: 5, kind: output, shape index: {}]  }
   0x1   :  { %s5545_s20 = smov 0  }
   0x2 LB: > { %s34_s21 = sadd.s32 1, %s5505_s19  ;;  %p4393_p0 = scmp.ge.s32.totalorder %s5509_s20, 1  ;;  %s5509_s20 = sphi %s5545_s20, %s15_s20   ;;  %s5505_s19 = sphi %s5543_s19, %s7800_s19   ;;  %s5501_s18 = sphi %s5541_s18, %s7799_s18  }
   0x3   : > { %p36_p1 = scmp.ge.s32.totalorder %s34_s21, 2  ;;  %p268_p2 = scmp.lt.s32.totalorder %s5509_s20, 3 }
   0x5   : > { %s7802_s21 = smov (%p36_p1, %s34_s21), 0  ;;  %p269_p3 = pnand %p4393_p0, %p268_p2 }
   0x7   : > { %272 = sbr.rel (%p269_p3) target bundleno = 524 (0x20c), region = 40 }
   0xc   : > { %v4403_v0 = vld [vmem:[%s7467_s3 + $0x10] sm:$0x7]  ;;  %vm579_vm0 = vcmask 1042432   ;;  %p333_p4 = scmp.lt.s32.totalorder %s5501_s18, 1  ;;  %v4402_v1 = vld [vmem:[%s7467_s3 + $0x4] sm:$0x7] }
   0xd   : > { %5461 = vmatprep.subr.msk.mxu1 %vm579_vm0, %v4403_v0  ;;  %5011 = vmatprep.subr.msk.mxu0 %vm579_vm0, %v4403_v0  ;;  %v4470_v2 = vld [vmem:[%s7467_s3 + $0x1c] sm:$0x7]  ;;  %vm482_vm1 = vcmask 23552   ;;  %v5611_v9 = vld [vmem:[%s7467_s3 + $0xc] sm:$0x7]  ;;  %vm1490_vm2 = vcmask 523264  }
   0xe   : > { %5462 = vmatpush3.msk.msra.mxu1 %vm579_vm0, %v4403_v0  ;;  %5012 = vmatpush3.msk.msra.mxu0 %vm579_vm0, %v4403_v0  ;;  %s7804_s18 = smov (!%p333_p4, %s5501_s18), 1  ;;  %v5616_v10 = vld [vmem:[%s7467_s3] sm:$0x7]  ;;  %v5799_v43 = vld [vmem:[%s7467_s3 + $0x18] sm:$0x7]  ;;  %vm2853_vm4 = vcmask 1040384  }
   0xf   : > { %5061 = vmatprep.subr.msk.mxu1 %vm579_vm0, %v4402_v1  ;;  %5111 = vmatprep.subr.msk.mxu0 %vm579_vm0, %v4470_v2  ;;  %s5574_s28 = sshll.u32 %s7804_s18, 8  ;;  %v5804_v44 = vld [vmem:[%s7467_s3 + $0x14] sm:$0x7] }
  0x10   : > { %s5580_s6 = scalar_lea.vmem %s7465_s1, %s5574_s28  ;;  %s5744_s13 = scalar_lea.vmem %s7464_s0, %s5574_s28 }
  0x11   : > { %v5583_v3 = vld [vmem:[%s5580_s6] sm:$0xff]  ;;  %v5589_v5 = vld [vmem:[%s5580_s6 + $0x8] sm:$0xff]  ;;  %v5599_v7 = vld [vmem:[%s5580_s6 + $0x10] sm:$0xff]  ;;  %s5750_s16 = scalar_lea.vmem %s7466_s2, %s5574_s28  ;;  %s7161_s8 = scalar_lea.vmem %s7469_s5, %s5574_s28 }
  0x12   : > { %v5586_v4 = vld [vmem:[%s5580_s6 + $0x80] sm:$0xff]  ;;  %5013 = vmatprep.mubr.msk.f32.mxu0 %vm482_vm1, %v5583_v3  ;;  %v5596_v6 = vld [vmem:[%s5580_s6 + $0x88] sm:$0xff]  ;;  %v5602_v8 = vld [vmem:[%s5580_s6 + $0x90] sm:$0xff] }
  0x13   : > { %5037 = vmatprep.mubr.msk.f32.mxu1 %vm482_vm1, %v5586_v4  ;;  %5014 = vmatmul.mubr.msk.f32.vlgmr.msra.gmra.mxu0 %vm482_vm1, %v5589_v5  ;;  %v5621_v11 = vld [vmem:[%s5580_s6 + $0x18] sm:$0xff]  ;;  %v5631_v13 = vld [vmem:[%s5580_s6 + $0x20] sm:$0xff]  ;;  %v5649_v15 = vld [vmem:[%s5580_s6 + $0x28] sm:$0xff] }
  0x14   : > { %5038 = vmatmul.mubr.msk.f32.vlgmr.msra.gmra.mxu1 %vm482_vm1, %v5596_v6  ;;  %5112 = vmatpush3.msk.msra.mxu0 %vm579_vm0, %v4470_v2  ;;  %v5624_v12 = vld [vmem:[%s5580_s6 + $0x98] sm:$0xff]  ;;  %v5634_v14 = vld [vmem:[%s5580_s6 + $0xa0] sm:$0xff]  ;;  %v5652_v16 = vld [vmem:[%s5580_s6 + $0xa8] sm:$0xff] }
  0x15   : > { %5062 = vmatpush3.msk.msra.mxu1 %vm579_vm0, %v4402_v1  ;;  %5016 = vmatprep.mubr.msk.f32.mxu0 %vm482_vm1, %v5599_v7  ;;  %v5655_v17 = vld [vmem:[%s5580_s6 + $0x30] sm:$0xff]  ;;  %v5669_v19 = vld [vmem:[%s5580_s6 + $0x38] sm:$0xff]  ;;  %v5675_v21 = vld [vmem:[%s5580_s6 + $0x40] sm:$0xff] }
  0x16   : > { %5040 = vmatprep.mubr.msk.f32.mxu1 %vm482_vm1, %v5602_v8  ;;  %5161 = vmatprep.subr.msk.mxu1 %vm579_vm0, %v5611_v9  ;;  %v5658_v18 = vld [vmem:[%s5580_s6 + $0xb0] sm:$0xff]  ;;  %v5672_v20 = vld [vmem:[%s5580_s6 + $0xb8] sm:$0xff]  ;;  %v5678_v22 = vld [vmem:[%s5580_s6 + $0xc0] sm:$0xff] }
  0x17   : > { %5211 = vmatprep.subr.msk.mxu0 %vm579_vm0, %v5616_v10  ;;  %5017 = vmatmul.mubr.msk.f32.gmra.mxu0 %vm482_vm1, %v5621_v11  ;;  %v5689_v23 = vld [vmem:[%s5580_s6 + $0x48] sm:$0xff]  ;;  %v5695_v25 = vld [vmem:[%s5580_s6 + $0x50] sm:$0xff]  ;;  %v5709_v27 = vld [vmem:[%s5580_s6 + $0x58] sm:$0xff] }
  0x18   : > { %5041 = vmatmul.mubr.msk.f32.gmra.mxu1 %vm482_vm1, %v5624_v12  ;;  %5019 = vmatprep.mubr.msk.f32.mxu0 %vm482_vm1, %v5631_v13  ;;  %v5692_v24 = vld [vmem:[%s5580_s6 + $0xc8] sm:$0xff]  ;;  %v5698_v26 = vld [vmem:[%s5580_s6 + $0xd0] sm:$0xff]  ;;  %v5712_v28 = vld [vmem:[%s5580_s6 + $0xd8] sm:$0xff] }
  0x19   : > { %5043 = vmatprep.mubr.msk.f32.mxu1 %vm482_vm1, %v5634_v14  ;;  %7556 = vst [vmem:[#allocation3_spill] sm:$0xff] %v5712_v28  ;;  %v5715_v29 = vld [vmem:[%s5580_s6 + $0x60] sm:$0xff]  ;;  %v5729_v31 = vld [vmem:[%s5580_s6 + $0x68] sm:$0xff]  ;;  %v5735_v33 = vld [vmem:[%s5580_s6 + $0x70] sm:$0xff] }
  0x1a   : > { %v5718_v30 = vld [vmem:[%s5580_s6 + $0xe0] sm:$0xff]  ;;  %v5732_v32 = vld [vmem:[%s5580_s6 + $0xe8] sm:$0xff]  ;;  %v5738_v34 = vld [vmem:[%s5580_s6 + $0xf0] sm:$0xff] }
  0x1b   : > { %5020 = vmatmul.mubr.msk.f32.gmra.mxu0 %vm482_vm1, %v5649_v15  ;;  %7557 = vst [vmem:[#allocation4_spill] sm:$0xff] %v5718_v30  ;;  %7558 = vst [vmem:[#allocation5_spill] sm:$0xff] %v5732_v32  ;;  %v5761_v35 = vld [vmem:[%s5580_s6 + $0x78] sm:$0xff]  ;;  %v5767_v37 = vld [vmem:[%s5744_s13] sm:$0xff] }
  0x1c   : > { %5044 = vmatmul.mubr.msk.f32.gmra.mxu1 %vm482_vm1, %v5652_v16  ;;  %5022 = vmatprep.mubr.msk.f32.mxu0 %vm482_vm1, %v5655_v17  ;;  %7559 = vst [vmem:[#allocation6_spill] sm:$0xff] %v5738_v34  ;;  %v5764_v36 = vld [vmem:[%s5580_s6 + $0xf8] sm:$0xff]  ;;  %v5770_v38 = vld [vmem:[%s5750_s16] sm:$0xff]  ;;  %v5781_v39 = vld [vmem:[%s5744_s13 + $0x8] sm:$0xff] }
  0x1d   : > { %5046 = vmatprep.mubr.msk.f32.mxu1 %vm482_vm1, %v5658_v18  ;;  %7560 = vst [vmem:[#allocation7_spill] sm:$0xff] %v5764_v36  ;;  %7561 = vst [vmem:[#allocation8_spill] sm:$0xff] %v5770_v38  ;;  %v5784_v40 = vld [vmem:[%s5750_s16 + $0x8] sm:$0xff]  ;;  %v5787_v41 = vld [vmem:[%s5744_s13 + $0x10] sm:$0xff] }
  0x1e   : > { %7562 = vst [vmem:[#allocation9_spill] sm:$0xff] %v5784_v40  ;;  %v5790_v42 = vld [vmem:[%s5750_s16 + $0x10] sm:$0xff]  ;;  %v5811_v45 = vld [vmem:[%s5744_s13 + $0x18] sm:$0xff]  ;;  %v5821_v47 = vld [vmem:[%s5744_s13 + $0x20] sm:$0xff] }
  0x1f   : > { %5023 = vmatmul.mubr.msk.f32.gmra.mxu0 %vm482_vm1, %v5669_v19  ;;  %7563 = vst [vmem:[#allocation10_spill] sm:$0xff] %v5790_v42  ;;  %v5814_v46 = vld [vmem:[%s5750_s16 + $0x18] sm:$0xff]  ;;  %v5824_v48 = vld [vmem:[%s5750_s16 + $0x20] sm:$0xff]  ;;  %v5839_v49 = vld [vmem:[%s5744_s13 + $0x28] sm:$0xff] }
  0x20   : > { %5047 = vmatmul.mubr.msk.f32.gmra.mxu1 %vm482_vm1, %v5672_v20  ;;  %5025 = vmatprep.mubr.msk.f32.mxu0 %vm482_vm1, %v5675_v21  ;;  %7564 = vst [vmem:[#allocation11_spill] sm:$0xff] %v5814_v46  ;;  %7565 = vst [vmem:[#allocation12_spill] sm:$0xff] %v5824_v48  ;;  %v5842_v50 = vld [vmem:[%s5750_s16 + $0x28] sm:$0xff]  ;;  %v5845_v51 = vld [vmem:[%s5744_s13 + $0x30] sm:$0xff] }
  0x21   : > { %5049 = vmatprep.mubr.msk.f32.mxu1 %vm482_vm1, %v5678_v22  ;;  %7566 = vst [vmem:[#allocation13_spill] sm:$0xff] %v5842_v50  ;;  %v5848_v52 = vld [vmem:[%s5750_s16 + $0x30] sm:$0xff]  ;;  %v5859_v53 = vld [vmem:[%s5744_s13 + $0x38] sm:$0xff]  ;;  %v5865_v55 = vld [vmem:[%s5744_s13 + $0x40] sm:$0xff] }
  0x22   : > { %7567 = vst [vmem:[#allocation14_spill] sm:$0xff] %v5848_v52  ;;  %v5862_v54 = vld [vmem:[%s5750_s16 + $0x38] sm:$0xff]  ;;  %v5868_v56 = vld [vmem:[%s5750_s16 + $0x40] sm:$0xff]  ;;  %v5879_v57 = vld [vmem:[%s5744_s13 + $0x48] sm:$0xff] }
  0x23   : > { %5026 = vmatmul.mubr.msk.f32.gmra.mxu0 %vm482_vm1, %v5689_v23  ;;  %7568 = vst [vmem:[#allocation15_spill] sm:$0xff] %v5862_v54  ;;  %7569 = vst [vmem:[#allocation16_spill] sm:$0xff] %v5868_v56  ;;  %v5882_v58 = vld [vmem:[%s5750_s16 + $0x48] sm:$0xff]  ;;  %v5885_v59 = vld [vmem:[%s5744_s13 + $0x50] sm:$0xff] }
  0x24   : > { %5050 = vmatmul.mubr.msk.f32.gmra.mxu1 %vm482_vm1, %v5692_v24  ;;  %5028 = vmatprep.mubr.msk.f32.mxu0 %vm482_vm1, %v5695_v25  ;;  %7570 = vst [vmem:[#allocation17_spill] sm:$0xff] %v5882_v58  ;;  %v5888_v60 = vld [vmem:[%s5750_s16 + $0x50] sm:$0xff]  ;;  %v5899_v61 = vld [vmem:[%s5744_s13 + $0x58] sm:$0xff]  ;;  %v5905_v63 = vld [vmem:[%s5744_s13 + $0x60] sm:$0xff] }
  0x25   : > { %5052 = vmatprep.mubr.msk.f32.mxu1 %vm482_vm1, %v5698_v26  ;;  %7571 = vst [vmem:[#allocation18_spill] sm:$0xff] %v5888_v60  ;;  %v5902_v62 = vld [vmem:[%s5750_s16 + $0x58] sm:$0xff]  ;;  %v5908_v0 = vld [vmem:[%s5750_s16 + $0x60] sm:$0xff]  ;;  %v5919_v1 = vld [vmem:[%s5744_s13 + $0x68] sm:$0xff] }
  0x26   : > { %7572 = vst [vmem:[#allocation19_spill] sm:$0xff] %v5902_v62  ;;  %7573 = vst [vmem:[#allocation20_spill] sm:$0xff] %v5908_v0  ;;  %v5922_v2 = vld [vmem:[%s5750_s16 + $0x68] sm:$0xff] }
  0x27   : > { %5029 = vmatmul.mubr.msk.f32.gmra.mxu0 %vm482_vm1, %v5709_v27  ;;  %7574 = vst [vmem:[#allocation21_spill] sm:$0xff] %v5922_v2 }
  0x28   : > { %5053 = vmatmul.mubr.msk.f32.gmra.mxu1 %vm482_vm1, %v5712_v28  ;;  %5031 = vmatprep.mubr.msk.f32.mxu0 %vm482_vm1, %v5715_v29  ;;  %v6088_v28 = vld [vmem:[%s5750_s16 + $0xf0] sm:$0xff] }
  0x29   : > { %5055 = vmatprep.mubr.msk.f32.mxu1 %vm482_vm1, %v5718_v30  ;;  %v6085_v30 = vld [vmem:[%s5744_s13 + $0xf0] sm:$0xff]  ;;  %7603 = vst [vmem:[#allocation50_spill] sm:$0xff] %v6088_v28 }
  0x2a   : > { %7602 = vst [vmem:[#allocation49_spill] sm:$0xff] %v6085_v30 }
  0x2b   : > { %5032 = vmatmul.mubr.msk.f32.gmra.mxu0 %vm482_vm1, %v5729_v31 }
  0x2c   : > { %5056 = vmatmul.mubr.msk.f32.gmra.mxu1 %vm482_vm1, %v5732_v32  ;;  %5034 = vmatprep.mubr.msk.f32.mxu0 %vm482_vm1, %v5735_v33  ;;  %v6068_v32 = vld [vmem:[%s5750_s16 + $0xe0] sm:$0xff] }
  0x2d   : > { %5058 = vmatprep.mubr.msk.f32.mxu1 %vm482_vm1, %v5738_v34  ;;  %v6065_v34 = vld [vmem:[%s5744_s13 + $0xe0] sm:$0xff]  ;;  %7599 = vst [vmem:[#allocation46_spill] sm:$0xff] %v6068_v32 }
  0x2e   : > { %7598 = vst [vmem:[#allocation45_spill] sm:$0xff] %v6065_v34 }
  0x2f   : > { %5035 = vmatmul.mubr.msk.f32.gmra.mxu0 %vm482_vm1, %v5761_v35 }
  0x30   : > { %5059 = vmatmul.mubr.msk.f32.gmra.mxu1 %vm482_vm1, %v5764_v36  ;;  %5113 = vmatprep.mubr.msk.f32.mxu0 %vm482_vm1, %v5770_v38  ;;  %v6045_v38 = vld [vmem:[%s5744_s13 + $0xd0] sm:$0xff] }
  0x31   : > { %5063 = vmatprep.mubr.msk.f32.mxu1 %vm482_vm1, %v5767_v37  ;;  %7594 = vst [vmem:[#allocation41_spill] sm:$0xff] %v6045_v38  ;;  %v6048_v36 = vld [vmem:[%s5750_s16 + $0xd0] sm:$0xff] }
  0x32   : > { %7595 = vst [vmem:[#allocation42_spill] sm:$0xff] %v6048_v36 }
  0x33   : > { %5114 = vmatmul.mubr.msk.f32.vlgmr.msra.gmra.mxu0 %vm482_vm1, %v5784_v40  ;;  %v6028_v40 = vld [vmem:[%s5750_s16 + $0xc0] sm:$0xff] }
  0x34   : > { %5064 = vmatmul.mubr.msk.f32.vlgmr.msra.gmra.mxu1 %vm482_vm1, %v5781_v39  ;;  %5212 = vmatpush3.msk.msra.mxu0 %vm579_vm0, %v5616_v10  ;;  %v5928_v10 = vld [vmem:[%s5750_s16 + $0x70] sm:$0xff]  ;;  %7591 = vst [vmem:[#allocation38_spill] sm:$0xff] %v6028_v40 }
  0x35   : > { %5162 = vmatpush3.msk.msra.mxu1 %vm579_vm0, %v5611_v9  ;;  %5066 = vmatprep.mubr.msk.f32.mxu1 %vm482_vm1, %v5787_v41  ;;  %v5925_v9 = vld [vmem:[%s5744_s13 + $0x70] sm:$0xff]  ;;  %7575 = vst [vmem:[#allocation22_spill] sm:$0xff] %v5928_v10 }
  0x36   : > { %5116 = vmatprep.mubr.msk.f32.mxu0 %vm482_vm1, %v5790_v42  ;;  %5261 = vmatprep.subr.msk.mxu1 %vm579_vm0, %v5799_v43  ;;  %v6025_v42 = vld [vmem:[%s5744_s13 + $0xc0] sm:$0xff] }
  0x37   : > { %5311 = vmatprep.subr.msk.mxu0 %vm579_vm0, %v5804_v44  ;;  %5117 = vmatmul.mubr.msk.f32.gmra.mxu0 %vm482_vm1, %v5814_v46  ;;  %v6008_v46 = vld [vmem:[%s5750_s16 + $0xb0] sm:$0xff]  ;;  %7590 = vst [vmem:[#allocation37_spill] sm:$0xff] %v6025_v42 }
  0x38   : > { %5067 = vmatmul.mubr.msk.f32.gmra.mxu1 %vm482_vm1, %v5811_v45  ;;  %5119 = vmatprep.mubr.msk.f32.mxu0 %vm482_vm1, %v5824_v48  ;;  %v6005_v48 = vld [vmem:[%s5744_s13 + $0xb0] sm:$0xff]  ;;  %7587 = vst [vmem:[#allocation34_spill] sm:$0xff] %v6008_v46 }
  0x39   : > { %5069 = vmatprep.mubr.msk.f32.mxu1 %vm482_vm1, %v5821_v47  ;;  %7586 = vst [vmem:[#allocation33_spill] sm:$0xff] %v6005_v48 }
  0x3b   : > { %5120 = vmatmul.mubr.msk.f32.gmra.mxu0 %vm482_vm1, %v5842_v50  ;;  %v5988_v50 = vld [vmem:[%s5750_s16 + $0xa0] sm:$0xff] }
  0x3c   : > { %5070 = vmatmul.mubr.msk.f32.gmra.mxu1 %vm482_vm1, %v5839_v49  ;;  %5122 = vmatprep.mubr.msk.f32.mxu0 %vm482_vm1, %v5848_v52  ;;  %v5985_v52 = vld [vmem:[%s5744_s13 + $0xa0] sm:$0xff]  ;;  %7583 = vst [vmem:[#allocation30_spill] sm:$0xff] %v5988_v50 }
  0x3d   : > { %5072 = vmatprep.mubr.msk.f32.mxu1 %vm482_vm1, %v5845_v51  ;;  %7582 = vst [vmem:[#allocation29_spill] sm:$0xff] %v5985_v52 }
  0x3f   : > { %5123 = vmatmul.mubr.msk.f32.gmra.mxu0 %vm482_vm1, %v5862_v54  ;;  %v5968_v54 = vld [vmem:[%s5750_s16 + $0x90] sm:$0xff] }
  0x40   : > { %5073 = vmatmul.mubr.msk.f32.gmra.mxu1 %vm482_vm1, %v5859_v53  ;;  %5125 = vmatprep.mubr.msk.f32.mxu0 %vm482_vm1, %v5868_v56  ;;  %v5965_v56 = vld [vmem:[%s5744_s13 + $0x90] sm:$0xff]  ;;  %7579 = vst [vmem:[#allocation26_spill] sm:$0xff] %v5968_v54 }
  0x41   : > { %5075 = vmatprep.mubr.msk.f32.mxu1 %vm482_vm1, %v5865_v55 }
  0x43   : > { %5126 = vmatmul.mubr.msk.f32.gmra.mxu0 %vm482_vm1, %v5882_v58  ;;  %v5948_v58 = vld [vmem:[%s5750_s16 + $0x80] sm:$0xff] }
  0x44   : > { %5076 = vmatmul.mubr.msk.f32.gmra.mxu1 %vm482_vm1, %v5879_v57  ;;  %5128 = vmatprep.mubr.msk.f32.mxu0 %vm482_vm1, %v5888_v60  ;;  %v5945_v60 = vld [vmem:[%s5744_s13 + $0x80] sm:$0xff]  ;;  %7577 = vst [vmem:[#allocation24_spill] sm:$0xff] %v5948_v58 }
  0x45   : > { %5078 = vmatprep.mubr.msk.f32.mxu1 %vm482_vm1, %v5885_v59 }
  0x47   : > { %5129 = vmatmul.mubr.msk.f32.gmra.mxu0 %vm482_vm1, %v5902_v62  ;;  %v5942_v62 = vld [vmem:[%s5750_s16 + $0x78] sm:$0xff] }
  0x48   : > { %5079 = vmatmul.mubr.msk.f32.gmra.mxu1 %vm482_vm1, %v5899_v61  ;;  %5131 = vmatprep.mubr.msk.f32.mxu0 %vm482_vm1, %v5908_v0  ;;  %v5939_v0 = vld [vmem:[%s5744_s13 + $0x78] sm:$0xff]  ;;  %7576 = vst [vmem:[#allocation23_spill] sm:$0xff] %v5942_v62 }
  0x49   : > { %5081 = vmatprep.mubr.msk.f32.mxu1 %vm482_vm1, %v5905_v63 }
  0x4b   : > { %5132 = vmatmul.mubr.msk.f32.gmra.mxu0 %vm482_vm1, %v5922_v2  ;;  %v5962_v2 = vld [vmem:[%s5750_s16 + $0x88] sm:$0xff] }
  0x4c   : > { %5082 = vmatmul.mubr.msk.f32.gmra.mxu1 %vm482_vm1, %v5919_v1  ;;  %5134 = vmatprep.mubr.msk.f32.mxu0 %vm482_vm1, %v5928_v10  ;;  %v5959_v10 = vld [vmem:[%s5744_s13 + $0x88] sm:$0xff]  ;;  %7578 = vst [vmem:[#allocation25_spill] sm:$0xff] %v5962_v2 }
  0x4d   : > { %5084 = vmatprep.mubr.msk.f32.mxu1 %vm482_vm1, %v5925_v9 }
  0x4f   : > { %5135 = vmatmul.mubr.msk.f32.gmra.mxu0 %vm482_vm1, %v5942_v62  ;;  %v5982_v62 = vld [vmem:[%s5750_s16 + $0x98] sm:$0xff] }
  0x50   : > { %5085 = vmatmul.mubr.msk.f32.gmra.mxu1 %vm482_vm1, %v5939_v0  ;;  %5137 = vmatprep.mubr.msk.f32.mxu0 %vm482_vm1, %v5948_v58  ;;  %v5979_v58 = vld [vmem:[%s5744_s13 + $0x98] sm:$0xff]  ;;  %7581 = vst [vmem:[#allocation28_spill] sm:$0xff] %v5982_v62 }
  0x51   : > { %5087 = vmatprep.mubr.msk.f32.mxu1 %vm482_vm1, %v5945_v60  ;;  %7580 = vst [vmem:[#allocation27_spill] sm:$0xff] %v5979_v58 }
  0x53   : > { %5138 = vmatmul.mubr.msk.f32.gmra.mxu0 %vm482_vm1, %v5962_v2  ;;  %v6002_v2 = vld [vmem:[%s5750_s16 + $0xa8] sm:$0xff] }
  0x54   : > { %5088 = vmatmul.mubr.msk.f32.gmra.mxu1 %vm482_vm1, %v5959_v10  ;;  %5140 = vmatprep.mubr.msk.f32.mxu0 %vm482_vm1, %v5968_v54  ;;  %v5999_v54 = vld [vmem:[%s5744_s13 + $0xa8] sm:$0xff]  ;;  %7585 = vst [vmem:[#allocation32_spill] sm:$0xff] %v6002_v2 }
  0x55   : > { %5090 = vmatprep.mubr.msk.f32.mxu1 %vm482_vm1, %v5965_v56  ;;  %7584 = vst [vmem:[#allocation31_spill] sm:$0xff] %v5999_v54 }
  0x57   : > { %5141 = vmatmul.mubr.msk.f32.gmra.mxu0 %vm482_vm1, %v5982_v62  ;;  %v6022_v62 = vld [vmem:[%s5750_s16 + $0xb8] sm:$0xff] }
  0x58   : > { %5091 = vmatmul.mubr.msk.f32.gmra.mxu1 %vm482_vm1, %v5979_v58  ;;  %5143 = vmatprep.mubr.msk.f32.mxu0 %vm482_vm1, %v5988_v50  ;;  %v6019_v50 = vld [vmem:[%s5744_s13 + $0xb8] sm:$0xff]  ;;  %7589 = vst [vmem:[#allocation36_spill] sm:$0xff] %v6022_v62 }
  0x59   : > { %5093 = vmatprep.mubr.msk.f32.mxu1 %vm482_vm1, %v5985_v52  ;;  %7588 = vst [vmem:[#allocation35_spill] sm:$0xff] %v6019_v50 }
  0x5b   : > { %5144 = vmatmul.mubr.msk.f32.gmra.mxu0 %vm482_vm1, %v6002_v2  ;;  %v6042_v2 = vld [vmem:[%s5750_s16 + $0xc8] sm:$0xff] }
  0x5c   : > { %5094 = vmatmul.mubr.msk.f32.gmra.mxu1 %vm482_vm1, %v5999_v54  ;;  %5146 = vmatprep.mubr.msk.f32.mxu0 %vm482_vm1, %v6008_v46  ;;  %v6039_v46 = vld [vmem:[%s5744_s13 + $0xc8] sm:$0xff]  ;;  %7593 = vst [vmem:[#allocation40_spill] sm:$0xff] %v6042_v2 }
  0x5d   : > { %5096 = vmatprep.mubr.msk.f32.mxu1 %vm482_vm1, %v6005_v48  ;;  %7592 = vst [vmem:[#allocation39_spill] sm:$0xff] %v6039_v46 }
  0x5f   : > { %5147 = vmatmul.mubr.msk.f32.gmra.mxu0 %vm482_vm1, %v6022_v62  ;;  %v6062_v62 = vld [vmem:[%s5750_s16 + $0xd8] sm:$0xff] }
  0x60   : > { %5097 = vmatmul.mubr.msk.f32.gmra.mxu1 %vm482_vm1, %v6019_v50  ;;  %5149 = vmatprep.mubr.msk.f32.mxu0 %vm482_vm1, %v6028_v40  ;;  %v6059_v40 = vld [vmem:[%s5744_s13 + $0xd8] sm:$0xff]  ;;  %7597 = vst [vmem:[#allocation44_spill] sm:$0xff] %v6062_v62 }
  0x61   : > { %5099 = vmatprep.mubr.msk.f32.mxu1 %vm482_vm1, %v6025_v42  ;;  %7596 = vst [vmem:[#allocation43_spill] sm:$0xff] %v6059_v40 }
  0x63   : > { %5150 = vmatmul.mubr.msk.f32.gmra.mxu0 %vm482_vm1, %v6042_v2  ;;  %v6082_v2 = vld [vmem:[%s5750_s16 + $0xe8] sm:$0xff] }
  0x64   : > { %5100 = vmatmul.mubr.msk.f32.gmra.mxu1 %vm482_vm1, %v6039_v46  ;;  %5152 = vmatprep.mubr.msk.f32.mxu0 %vm482_vm1, %v6048_v36  ;;  %v6079_v36 = vld [vmem:[%s5744_s13 + $0xe8] sm:$0xff]  ;;  %7601 = vst [vmem:[#allocation48_spill] sm:$0xff] %v6082_v2 }
  0x65   : > { %5102 = vmatprep.mubr.msk.f32.mxu1 %vm482_vm1, %v6045_v38  ;;  %7600 = vst [vmem:[#allocation47_spill] sm:$0xff] %v6079_v36 }
  0x67   : > { %5153 = vmatmul.mubr.msk.f32.gmra.mxu0 %vm482_vm1, %v6062_v62  ;;  %v6102_v62 = vld [vmem:[%s5750_s16 + $0xf8] sm:$0xff] }
  0x68   : > { %5103 = vmatmul.mubr.msk.f32.gmra.mxu1 %vm482_vm1, %v6059_v40  ;;  %5155 = vmatprep.mubr.msk.f32.mxu0 %vm482_vm1, %v6068_v32  ;;  %v6099_v32 = vld [vmem:[%s5744_s13 + $0xf8] sm:$0xff]  ;;  %7605 = vst [vmem:[#allocation52_spill] sm:$0xff] %v6102_v62 }
  0x69   : > { %5105 = vmatprep.mubr.msk.f32.mxu1 %vm482_vm1, %v6065_v34  ;;  %7604 = vst [vmem:[#allocation51_spill] sm:$0xff] %v6099_v32 }
  0x6b   : > { %5156 = vmatmul.mubr.msk.f32.gmra.mxu0 %vm482_vm1, %v6082_v2 }
  0x6c   : > { %5106 = vmatmul.mubr.msk.f32.gmra.mxu1 %vm482_vm1, %v6079_v36  ;;  %5158 = vmatprep.mubr.msk.f32.mxu0 %vm482_vm1, %v6088_v28  ;;  %v6119_v28 = vld [vmem:[%s7467_s3 + $0x8] sm:$0x7] }
  0x6d   : > { %5108 = vmatprep.mubr.msk.f32.mxu1 %vm482_vm1, %v6085_v30 }
  0x6f   : > { %5159 = vmatmul.mubr.msk.f32.gmra.mxu0 %vm482_vm1, %v6102_v62  ;;  %v6124_v62 = vld [vmem:[%s7467_s3 + $0x20] sm:$0x7] }
  0x70   : > { %5109 = vmatmul.mubr.msk.f32.gmra.mxu1 %vm482_vm1, %v6099_v32  ;;  %5213 = vmatprep.mubr.msk.f32.mxu0 %vm482_vm1, %v5767_v37 }
  0x71   : > { %5163 = vmatprep.mubr.msk.f32.mxu1 %vm482_vm1, %v5583_v3 }
  0x73   : > { %5214 = vmatmul.mubr.msk.f32.vlgmr.msra.gmra.mxu0 %vm482_vm1, %v5781_v39 }
  0x74   : > { %5164 = vmatmul.mubr.msk.f32.vlgmr.msra.gmra.mxu1 %vm482_vm1, %v5589_v5  ;;  %5312 = vmatpush3.msk.msra.mxu0 %vm579_vm0, %v5804_v44  ;;  %v7607_v44 = vld [vmem:[#allocation4_spill] sm:$0xff] }
  0x75   : > { %5262 = vmatpush3.msk.msra.mxu1 %vm579_vm0, %v5799_v43  ;;  %5166 = vmatprep.mubr.msk.f32.mxu1 %vm482_vm1, %v5599_v7  ;;  %v7606_v43 = vld [vmem:[#allocation3_spill] sm:$0xff] }
  0x76   : > { %5216 = vmatprep.mubr.msk.f32.mxu0 %vm482_vm1, %v5787_v41  ;;  %5361 = vmatprep.subr.msk.mxu1 %vm579_vm0, %v6119_v28 }
  0x77   : > { %5411 = vmatprep.subr.msk.mxu0 %vm579_vm0, %v6124_v62  ;;  %5217 = vmatmul.mubr.msk.f32.gmra.mxu0 %vm482_vm1, %v5811_v45 }
  0x78   : > { %5167 = vmatmul.mubr.msk.f32.gmra.mxu1 %vm482_vm1, %v5621_v11  ;;  %5219 = vmatprep.mubr.msk.f32.mxu0 %vm482_vm1, %v5821_v47 }
  0x79   : > { %5169 = vmatprep.mubr.msk.f32.mxu1 %vm482_vm1, %v5631_v13 }
  0x7b   : > { %5220 = vmatmul.mubr.msk.f32.gmra.mxu0 %vm482_vm1, %v5839_v49 }
  0x7c   : > { %5170 = vmatmul.mubr.msk.f32.gmra.mxu1 %vm482_vm1, %v5649_v15  ;;  %5222 = vmatprep.mubr.msk.f32.mxu0 %vm482_vm1, %v5845_v51 }
  0x7d   : > { %5172 = vmatprep.mubr.msk.f32.mxu1 %vm482_vm1, %v5655_v17 }
  0x7f   : > { %5223 = vmatmul.mubr.msk.f32.gmra.mxu0 %vm482_vm1, %v5859_v53 }
  0x80   : > { %5173 = vmatmul.mubr.msk.f32.gmra.mxu1 %vm482_vm1, %v5669_v19  ;;  %5225 = vmatprep.mubr.msk.f32.mxu0 %vm482_vm1, %v5865_v55 }
  0x81   : > { %5175 = vmatprep.mubr.msk.f32.mxu1 %vm482_vm1, %v5675_v21 }
  0x83   : > { %5226 = vmatmul.mubr.msk.f32.gmra.mxu0 %vm482_vm1, %v5879_v57 }
  0x84   : > { %5176 = vmatmul.mubr.msk.f32.gmra.mxu1 %vm482_vm1, %v5689_v23  ;;  %5228 = vmatprep.mubr.msk.f32.mxu0 %vm482_vm1, %v5885_v59 }
  0x85   : > { %5178 = vmatprep.mubr.msk.f32.mxu1 %vm482_vm1, %v5695_v25 }
  0x87   : > { %5229 = vmatmul.mubr.msk.f32.gmra.mxu0 %vm482_vm1, %v5899_v61 }
  0x88   : > { %5179 = vmatmul.mubr.msk.f32.gmra.mxu1 %vm482_vm1, %v5709_v27  ;;  %5231 = vmatprep.mubr.msk.f32.mxu0 %vm482_vm1, %v5905_v63 }
  0x89   : > { %5181 = vmatprep.mubr.msk.f32.mxu1 %vm482_vm1, %v5715_v29 }
  0x8b   : > { %5232 = vmatmul.mubr.msk.f32.gmra.mxu0 %vm482_vm1, %v5919_v1 }
  0x8c   : > { %5182 = vmatmul.mubr.msk.f32.gmra.mxu1 %vm482_vm1, %v5729_v31  ;;  %5234 = vmatprep.mubr.msk.f32.mxu0 %vm482_vm1, %v5925_v9 }
  0x8d   : > { %5184 = vmatprep.mubr.msk.f32.mxu1 %vm482_vm1, %v5735_v33 }
  0x8f   : > { %5235 = vmatmul.mubr.msk.f32.gmra.mxu0 %vm482_vm1, %v5939_v0 }
  0x90   : > { %5185 = vmatmul.mubr.msk.f32.gmra.mxu1 %vm482_vm1, %v5761_v35  ;;  %5237 = vmatprep.mubr.msk.f32.mxu0 %vm482_vm1, %v5945_v60 }
  0x91   : > { %5187 = vmatprep.mubr.msk.f32.mxu1 %vm482_vm1, %v5586_v4 }
  0x93   : > { %5238 = vmatmul.mubr.msk.f32.gmra.mxu0 %vm482_vm1, %v5959_v10 }
  0x94   : > { %5188 = vmatmul.mubr.msk.f32.gmra.mxu1 %vm482_vm1, %v5596_v6  ;;  %5240 = vmatprep.mubr.msk.f32.mxu0 %vm482_vm1, %v5965_v56 }
  0x95   : > { %5190 = vmatprep.mubr.msk.f32.mxu1 %vm482_vm1, %v5602_v8 }
  0x97   : > { %5241 = vmatmul.mubr.msk.f32.gmra.mxu0 %vm482_vm1, %v5979_v58 }
  0x98   : > { %5191 = vmatmul.mubr.msk.f32.gmra.mxu1 %vm482_vm1, %v5624_v12  ;;  %5243 = vmatprep.mubr.msk.f32.mxu0 %vm482_vm1, %v5985_v52 }
  0x99   : > { %5193 = vmatprep.mubr.msk.f32.mxu1 %vm482_vm1, %v5634_v14 }
  0x9b   : > { %5244 = vmatmul.mubr.msk.f32.gmra.mxu0 %vm482_vm1, %v5999_v54 }
  0x9c   : > { %5194 = vmatmul.mubr.msk.f32.gmra.mxu1 %vm482_vm1, %v5652_v16  ;;  %5246 = vmatprep.mubr.msk.f32.mxu0 %vm482_vm1, %v6005_v48  ;;  %v7631_v48 = vld [vmem:[#allocation28_spill] sm:$0xff] }
  0x9d   : > { %5196 = vmatprep.mubr.msk.f32.mxu1 %vm482_vm1, %v5658_v18 }
  0x9f   : > { %5247 = vmatmul.mubr.msk.f32.gmra.mxu0 %vm482_vm1, %v6019_v50 }
  0xa0   : > { %5197 = vmatmul.mubr.msk.f32.gmra.mxu1 %vm482_vm1, %v5672_v20  ;;  %5249 = vmatprep.mubr.msk.f32.mxu0 %vm482_vm1, %v6025_v42  ;;  %v7608_v42 = vld [vmem:[#allocation5_spill] sm:$0xff] }
  0xa1   : > { %5199 = vmatprep.mubr.msk.f32.mxu1 %vm482_vm1, %v5678_v22 }
  0xa3   : > { %5250 = vmatmul.mubr.msk.f32.gmra.mxu0 %vm482_vm1, %v6039_v46  ;;  %v7609_v46 = vld [vmem:[#allocation6_spill] sm:$0xff] }
  0xa4   : > { %5200 = vmatmul.mubr.msk.f32.gmra.mxu1 %vm482_vm1, %v5692_v24  ;;  %5252 = vmatprep.mubr.msk.f32.mxu0 %vm482_vm1, %v6045_v38  ;;  %v7610_v38 = vld [vmem:[#allocation7_spill] sm:$0xff] }
  0xa5   : > { %5202 = vmatprep.mubr.msk.f32.mxu1 %vm482_vm1, %v5698_v26 }
  0xa7   : > { %5253 = vmatmul.mubr.msk.f32.gmra.mxu0 %vm482_vm1, %v6059_v40  ;;  %v7611_v40 = vld [vmem:[#allocation8_spill] sm:$0xff] }
  0xa8   : > { %5203 = vmatmul.mubr.msk.f32.gmra.mxu1 %vm482_vm1, %v7606_v43  ;;  %5255 = vmatprep.mubr.msk.f32.mxu0 %vm482_vm1, %v6065_v34  ;;  %v7612_v34 = vld [vmem:[#allocation9_spill] sm:$0xff] }
  0xa9   : > { %5205 = vmatprep.mubr.msk.f32.mxu1 %vm482_vm1, %v7607_v44 }
  0xab   : > { %5256 = vmatmul.mubr.msk.f32.gmra.mxu0 %vm482_vm1, %v6079_v36 }
  0xac   : > { %5206 = vmatmul.mubr.msk.f32.gmra.mxu1 %vm482_vm1, %v7608_v42  ;;  %5258 = vmatprep.mubr.msk.f32.mxu0 %vm482_vm1, %v6085_v30  ;;  %v7613_v30 = vld [vmem:[#allocation10_spill] sm:$0xff] }
  0xad   : > { %5208 = vmatprep.mubr.msk.f32.mxu1 %vm482_vm1, %v7609_v46 }
  0xaf   : > { %5259 = vmatmul.mubr.msk.f32.gmra.mxu0 %vm482_vm1, %v6099_v32  ;;  %v7614_v32 = vld [vmem:[#allocation11_spill] sm:$0xff] }
  0xb0   : > { %5209 = vmatmul.mubr.msk.f32.gmra.mxu1 %vm482_vm1, %v7610_v38  ;;  %5313 = vmatprep.mubr.msk.f32.mxu0 %vm482_vm1, %v5583_v3  ;;  %v7615_v3 = vld [vmem:[#allocation12_spill] sm:$0xff] }
  0xb1   : > { %5263 = vmatprep.mubr.msk.f32.mxu1 %vm482_vm1, %v7611_v40 }
  0xb3   : > { %5314 = vmatmul.mubr.msk.f32.vlgmr.msra.gmra.mxu0 %vm482_vm1, %v5589_v5  ;;  %v7616_v5 = vld [vmem:[#allocation13_spill] sm:$0xff] }
  0xb4   : > { %5264 = vmatmul.mubr.msk.f32.vlgmr.msra.gmra.mxu1 %vm482_vm1, %v7612_v34  ;;  %5412 = vmatpush3.msk.msra.mxu0 %vm579_vm0, %v6124_v62  ;;  %v7628_v62 = vld [vmem:[#allocation25_spill] sm:$0xff] }
  0xb5   : > { %5362 = vmatpush3.msk.msra.mxu1 %vm579_vm0, %v6119_v28  ;;  %5266 = vmatprep.mubr.msk.f32.mxu1 %vm482_vm1, %v7613_v30  ;;  %v7617_v28 = vld [vmem:[#allocation14_spill] sm:$0xff] }
  0xb6   : > { %5316 = vmatprep.mubr.msk.f32.mxu0 %vm482_vm1, %v5599_v7  ;;  %v7618_v7 = vld [vmem:[#allocation15_spill] sm:$0xff] }
  0xb7   : > { %5317 = vmatmul.mubr.msk.f32.gmra.mxu0 %vm482_vm1, %v5621_v11  ;;  %v7619_v11 = vld [vmem:[#allocation16_spill] sm:$0xff] }
  0xb8   : > { %5267 = vmatmul.mubr.msk.f32.gmra.mxu1 %vm482_vm1, %v7614_v32  ;;  %5319 = vmatprep.mubr.msk.f32.mxu0 %vm482_vm1, %v5631_v13  ;;  %v7620_v13 = vld [vmem:[#allocation17_spill] sm:$0xff] }
  0xb9   : > { %5269 = vmatprep.mubr.msk.f32.mxu1 %vm482_vm1, %v7615_v3 }
  0xbb   : > { %5320 = vmatmul.mubr.msk.f32.gmra.mxu0 %vm482_vm1, %v5649_v15  ;;  %v7621_v15 = vld [vmem:[#allocation18_spill] sm:$0xff] }
  0xbc   : > { %5270 = vmatmul.mubr.msk.f32.gmra.mxu1 %vm482_vm1, %v7616_v5  ;;  %5322 = vmatprep.mubr.msk.f32.mxu0 %vm482_vm1, %v5655_v17  ;;  %v7622_v17 = vld [vmem:[#allocation19_spill] sm:$0xff] }
  0xbd   : > { %5272 = vmatprep.mubr.msk.f32.mxu1 %vm482_vm1, %v7617_v28 }
  0xbf   : > { %5323 = vmatmul.mubr.msk.f32.gmra.mxu0 %vm482_vm1, %v5669_v19  ;;  %v7623_v19 = vld [vmem:[#allocation20_spill] sm:$0xff] }
  0xc0   : > { %5273 = vmatmul.mubr.msk.f32.gmra.mxu1 %vm482_vm1, %v7618_v7  ;;  %5325 = vmatprep.mubr.msk.f32.mxu0 %vm482_vm1, %v5675_v21  ;;  %v7624_v21 = vld [vmem:[#allocation21_spill] sm:$0xff] }
  0xc1   : > { %5275 = vmatprep.mubr.msk.f32.mxu1 %vm482_vm1, %v7619_v11 }
  0xc3   : > { %5326 = vmatmul.mubr.msk.f32.gmra.mxu0 %vm482_vm1, %v5689_v23  ;;  %v7625_v23 = vld [vmem:[#allocation22_spill] sm:$0xff] }
  0xc4   : > { %5276 = vmatmul.mubr.msk.f32.gmra.mxu1 %vm482_vm1, %v7620_v13  ;;  %5328 = vmatprep.mubr.msk.f32.mxu0 %vm482_vm1, %v5695_v25  ;;  %v7626_v25 = vld [vmem:[#allocation23_spill] sm:$0xff] }
  0xc5   : > { %5278 = vmatprep.mubr.msk.f32.mxu1 %vm482_vm1, %v7621_v15 }
  0xc7   : > { %5329 = vmatmul.mubr.msk.f32.gmra.mxu0 %vm482_vm1, %v5709_v27  ;;  %v7627_v27 = vld [vmem:[#allocation24_spill] sm:$0xff] }
  0xc8   : > { %5279 = vmatmul.mubr.msk.f32.gmra.mxu1 %vm482_vm1, %v7622_v17  ;;  %5331 = vmatprep.mubr.msk.f32.mxu0 %vm482_vm1, %v5715_v29 }
  0xc9   : > { %5281 = vmatprep.mubr.msk.f32.mxu1 %vm482_vm1, %v7623_v19 }
  0xcb   : > { %5332 = vmatmul.mubr.msk.f32.gmra.mxu0 %vm482_vm1, %v5729_v31 }
  0xcc   : > { %5282 = vmatmul.mubr.msk.f32.gmra.mxu1 %vm482_vm1, %v7624_v21  ;;  %5334 = vmatprep.mubr.msk.f32.mxu0 %vm482_vm1, %v5735_v33  ;;  %v7629_v33 = vld [vmem:[#allocation26_spill] sm:$0xff] }
  0xcd   : > { %5284 = vmatprep.mubr.msk.f32.mxu1 %vm482_vm1, %v7625_v23 }
  0xcf   : > { %5335 = vmatmul.mubr.msk.f32.gmra.mxu0 %vm482_vm1, %v5761_v35 }
  0xd0   : > { %5285 = vmatmul.mubr.msk.f32.gmra.mxu1 %vm482_vm1, %v7626_v25  ;;  %5337 = vmatprep.mubr.msk.f32.mxu0 %vm482_vm1, %v5586_v4 }
  0xd1   : > { %5287 = vmatprep.mubr.msk.f32.mxu1 %vm482_vm1, %v7627_v27 }
  0xd3   : > { %v6326_v29 = vpop.f32.mrf.mxu0  ;;  %5338 = vmatmul.mubr.msk.f32.gmra.mxu0 %vm482_vm1, %v5596_v6  ;;  %v7632_v6 = vld [vmem:[#allocation30_spill] sm:$0xff] }
  0xd4   : > { %v6328_v31 = vpop.f32.mrf.mxu1  ;;  %5288 = vmatmul.mubr.msk.f32.gmra.mxu1 %vm482_vm1, %v7628_v62  ;;  %5340 = vmatprep.mubr.msk.f32.mxu0 %vm482_vm1, %v5602_v8 }
  0xd5   : > { %5290 = vmatprep.mubr.msk.f32.mxu1 %vm482_vm1, %v7629_v33  ;;  %v6338_v35 = vpop.f32.mrf.mxu0 }
  0xd6   : > { %v6340_v36 = vpop.f32.mrf.mxu1 }
  0xd7   : > { %v6342_v4 = vpop.f32.mrf.mxu0  ;;  %5341 = vmatmul.mubr.msk.f32.gmra.mxu0 %vm482_vm1, %v5624_v12  ;;  %v7636_v12 = vld [vmem:[#allocation34_spill] sm:$0xff] }
  0xd8   : > { %v6344_v50 = vpop.f32.mrf.mxu1  ;;  %5291 = vmatmul.mubr.msk.f32.gmra.mxu1 %vm482_vm1, %v7631_v48  ;;  %5343 = vmatprep.mubr.msk.f32.mxu0 %vm482_vm1, %v5634_v14 }
  0xd9   : > { %7630 = vst [vmem:[#allocation3_spill] sm:$0xff] %v6344_v50  ;;  %5293 = vmatprep.mubr.msk.f32.mxu1 %vm482_vm1, %v7632_v6  ;;  %v6354_v8 = vpop.f32.mrf.mxu0  ;;  %v7635_v50 = vld [vmem:[#allocation32_spill] sm:$0xff] }
  0xda   : > { %v6356_v54 = vpop.f32.mrf.mxu1 }
  0xdb   : > { %7633 = vst [vmem:[#allocation4_spill] sm:$0xff] %v6356_v54  ;;  %v6358_v52 = vpop.f32.mrf.mxu0  ;;  %5344 = vmatmul.mubr.msk.f32.gmra.mxu0 %vm482_vm1, %v5652_v16  ;;  %v7640_v16 = vld [vmem:[#allocation38_spill] sm:$0xff] }
  0xdc   : > { %v6360_v58 = vpop.f32.mrf.mxu1  ;;  %5294 = vmatmul.mubr.msk.f32.gmra.mxu1 %vm482_vm1, %v7635_v50  ;;  %5346 = vmatprep.mubr.msk.f32.mxu0 %vm482_vm1, %v5658_v18 }
  0xdd   : > { %7634 = vst [vmem:[#allocation5_spill] sm:$0xff] %v6360_v58  ;;  %5296 = vmatprep.mubr.msk.f32.mxu1 %vm482_vm1, %v7636_v12  ;;  %v6370_v14 = vpop.f32.mrf.mxu0  ;;  %v7639_v58 = vld [vmem:[#allocation36_spill] sm:$0xff] }
  0xde   : > { %v6372_v6 = vpop.f32.mrf.mxu1 }
  0xdf   : > { %7637 = vst [vmem:[#allocation6_spill] sm:$0xff] %v6372_v6  ;;  %v6374_v54 = vpop.f32.mrf.mxu0  ;;  %5347 = vmatmul.mubr.msk.f32.gmra.mxu0 %vm482_vm1, %v5672_v20  ;;  %v7644_v20 = vld [vmem:[#allocation42_spill] sm:$0xff] }
  0xe0   : > { %v6376_v48 = vpop.f32.mrf.mxu1  ;;  %5297 = vmatmul.mubr.msk.f32.gmra.mxu1 %vm482_vm1, %v7639_v58  ;;  %5349 = vmatprep.mubr.msk.f32.mxu0 %vm482_vm1, %v5678_v22 }
  0xe1   : > { %7638 = vst [vmem:[#allocation7_spill] sm:$0xff] %v6376_v48  ;;  %5299 = vmatprep.mubr.msk.f32.mxu1 %vm482_vm1, %v7640_v16  ;;  %v6386_v18 = vpop.f32.mrf.mxu0  ;;  %v7643_v48 = vld [vmem:[#allocation40_spill] sm:$0xff] }
  0xe2   : > { %v6388_v12 = vpop.f32.mrf.mxu1 }
  0xe3   : > { %7641 = vst [vmem:[#allocation8_spill] sm:$0xff] %v6388_v12  ;;  %v6390_v6 = vpop.f32.mrf.mxu0  ;;  %5350 = vmatmul.mubr.msk.f32.gmra.mxu0 %vm482_vm1, %v5692_v24  ;;  %v7648_v24 = vld [vmem:[#allocation46_spill] sm:$0xff] }
  0xe4   : > { %v6392_v50 = vpop.f32.mrf.mxu1  ;;  %5300 = vmatmul.mubr.msk.f32.gmra.mxu1 %vm482_vm1, %v7643_v48  ;;  %5352 = vmatprep.mubr.msk.f32.mxu0 %vm482_vm1, %v5698_v26 }
  0xe5   : > { %7642 = vst [vmem:[#allocation9_spill] sm:$0xff] %v6392_v50  ;;  %5302 = vmatprep.mubr.msk.f32.mxu1 %vm482_vm1, %v7644_v20  ;;  %v6402_v22 = vpop.f32.mrf.mxu0  ;;  %v7647_v50 = vld [vmem:[#allocation44_spill] sm:$0xff] }
  0xe6   : > { %v6404_v16 = vpop.f32.mrf.mxu1 }
  0xe7   : > { %7645 = vst [vmem:[#allocation10_spill] sm:$0xff] %v6404_v16  ;;  %v6406_v12 = vpop.f32.mrf.mxu0  ;;  %5353 = vmatmul.mubr.msk.f32.gmra.mxu0 %vm482_vm1, %v7606_v43  ;;  %v7651_v43 = vld [vmem:[#allocation50_spill] sm:$0xff] }
  0xe8   : > { %v6408_v58 = vpop.f32.mrf.mxu1  ;;  %5303 = vmatmul.mubr.msk.f32.gmra.mxu1 %vm482_vm1, %v7647_v50  ;;  %5355 = vmatprep.mubr.msk.f32.mxu0 %vm482_vm1, %v7607_v44 }
  0xe9   : > { %7646 = vst [vmem:[#allocation11_spill] sm:$0xff] %v6408_v58  ;;  %5305 = vmatprep.mubr.msk.f32.mxu1 %vm482_vm1, %v7648_v24  ;;  %v6418_v26 = vpop.f32.mrf.mxu0 }
  0xea   : > { %v6420_v20 = vpop.f32.mrf.mxu1 }
  0xeb   : > { %7649 = vst [vmem:[#allocation12_spill] sm:$0xff] %v6420_v20  ;;  %v6422_v16 = vpop.f32.mrf.mxu0  ;;  %5356 = vmatmul.mubr.msk.f32.gmra.mxu0 %vm482_vm1, %v7608_v42 }
  0xec   : > { %v6424_v48 = vpop.f32.mrf.mxu1  ;;  %5306 = vmatmul.mubr.msk.f32.gmra.mxu1 %vm482_vm1, %v6082_v2  ;;  %5358 = vmatprep.mubr.msk.f32.mxu0 %vm482_vm1, %v7609_v46 }
  0xed   : > { %7650 = vst [vmem:[#allocation13_spill] sm:$0xff] %v6424_v48  ;;  %5308 = vmatprep.mubr.msk.f32.mxu1 %vm482_vm1, %v7651_v43  ;;  %v6434_v44 = vpop.f32.mrf.mxu0  ;;  %v7654_v48 = vld [vmem:[#allocation52_spill] sm:$0xff] }
  0xee   : > { %v6436_v24 = vpop.f32.mrf.mxu1 }
  0xef   : > { %7652 = vst [vmem:[#allocation14_spill] sm:$0xff] %v6436_v24  ;;  %v6438_v20 = vpop.f32.mrf.mxu0  ;;  %5359 = vmatmul.mubr.msk.f32.gmra.mxu0 %vm482_vm1, %v7610_v38 }
  0xf0   : > { %v6440_v58 = vpop.f32.mrf.mxu1  ;;  %5309 = vmatmul.mubr.msk.f32.gmra.mxu1 %vm482_vm1, %v7654_v48  ;;  %5413 = vmatprep.mubr.msk.f32.mxu0 %vm482_vm1, %v7611_v40 }
  0xf1   : > { %7653 = vst [vmem:[#allocation15_spill] sm:$0xff] %v6440_v58  ;;  %5363 = vmatprep.mubr.msk.f32.mxu1 %vm482_vm1, %v5767_v37  ;;  %v6450_v42 = vpop.f32.mrf.mxu0 }
  0xf2   : > { %v6452_v46 = vpop.f32.mrf.mxu1 }
  0xf3   : > { %7655 = vst [vmem:[#allocation16_spill] sm:$0xff] %v6452_v46  ;;  %v5115_v43 = vpop.f32.mrf.mxu0  ;;  %5414 = vmatmul.mubr.msk.f32.vlgmr.msra.gmra.mxu0 %vm482_vm1, %v7612_v34 }
  0xf4   : > { %v5065_v24 = vpop.f32.mrf.mxu1  ;;  %5364 = vmatmul.mubr.msk.f32.vlgmr.msra.gmra.mxu1 %vm482_vm1, %v5781_v39  ;;  %5416 = vmatprep.mubr.msk.f32.mxu0 %vm482_vm1, %v7613_v30 }
  0xf5   : > { %v979_v38 = vadd.f32 %v5065_v24, %v6326_v29  ;;  %5366 = vmatprep.mubr.msk.f32.mxu1 %vm482_vm1, %v5787_v41  ;;  %v1299_v40 = vpop.f32.mrf.mxu0 }
  0xf6   : > { %v973_v37 = vpop.f32.mrf.mxu1 }
  0xf7   : > { %v1459_v46 = vadd.f32 %v5115_v43, %v979_v38  ;;  %v974_v58 = vadd.f32 %v973_v37, %v6338_v35  ;;  %v5118_v2 = vpop.f32.mrf.mxu0  ;;  %5417 = vmatmul.mubr.msk.f32.gmra.mxu0 %vm482_vm1, %v7614_v32 }
  0xf8   : > { %v5068_v48 = vpop.f32.mrf.mxu1  ;;  %5367 = vmatmul.mubr.msk.f32.gmra.mxu1 %vm482_vm1, %v5811_v45  ;;  %5419 = vmatprep.mubr.msk.f32.mxu0 %vm482_vm1, %v7615_v3 }
  0xf9   : > { %1492 = vst.msk [vmem:[#allocation2 + $0x8] sm:$0xff] %vm1490_vm2, %v1459_v46  ;;  %v1458_v34 = vadd.f32 %v1299_v40, %v974_v58  ;;  %v989_v39 = vadd.f32 %v5068_v48, %v6342_v4  ;;  %5369 = vmatprep.mubr.msk.f32.mxu1 %vm482_vm1, %v5821_v47  ;;  %v1309_v41 = vpop.f32.mrf.mxu0 }
  0xfa   : > { %v983_v30 = vpop.f32.mrf.mxu1 }
  0xfb   : > { %1491 = vst.msk [vmem:[#allocation2] sm:$0xff] %vm1490_vm2, %v1458_v34  ;;  %v1461_v29 = vadd.f32 %v5118_v2, %v989_v39  ;;  %v984_v45 = vadd.f32 %v983_v30, %v6354_v8  ;;  %v5121_v32 = vpop.f32.mrf.mxu0  ;;  %5420 = vmatmul.mubr.msk.f32.gmra.mxu0 %vm482_vm1, %v7616_v5 }
  0xfc   : > { %v5071_v35 = vpop.f32.mrf.mxu1  ;;  %5370 = vmatmul.mubr.msk.f32.gmra.mxu1 %vm482_vm1, %v5839_v49  ;;  %5422 = vmatprep.mubr.msk.f32.mxu0 %vm482_vm1, %v7617_v28 }
  0xfd   : > { %1494 = vst.msk [vmem:[#allocation2 + $0x18] sm:$0xff] %vm1490_vm2, %v1461_v29  ;;  %v1460_v47 = vadd.f32 %v1309_v41, %v984_v45  ;;  %v999_v48 = vadd.f32 %v5071_v35, %v6358_v52  ;;  %5372 = vmatprep.mubr.msk.f32.mxu1 %vm482_vm1, %v5845_v51  ;;  %v1319_v2 = vpop.f32.mrf.mxu0  ;;  %v7656_v45 = vld [vmem:[#allocation27_spill] sm:$0xff]  ;;  %v7657_v35 = vld [vmem:[#allocation28_spill] sm:$0xff] }
  0xfe   : > { %v993_v58 = vpop.f32.mrf.mxu1 }
  0xff   : > { %1493 = vst.msk [vmem:[#allocation2 + $0x10] sm:$0xff] %vm1490_vm2, %v1460_v47  ;;  %v1463_v3 = vadd.f32 %v5121_v32, %v999_v48  ;;  %v994_v49 = vadd.f32 %v993_v58, %v6370_v14  ;;  %v5124_v5 = vpop.f32.mrf.mxu0  ;;  %5423 = vmatmul.mubr.msk.f32.gmra.mxu0 %vm482_vm1, %v7618_v7  ;;  %v7659_v32 = vld [vmem:[#allocation29_spill] sm:$0xff]  ;;  %v7660_v47 = vld [vmem:[#allocation30_spill] sm:$0xff] }
 0x100   : > { %v5074_v4 = vpop.f32.mrf.mxu1  ;;  %5373 = vmatmul.mubr.msk.f32.gmra.mxu1 %vm482_vm1, %v5859_v53  ;;  %5425 = vmatprep.mubr.msk.f32.mxu0 %vm482_vm1, %v7619_v11 }
 0x101   : > { %1496 = vst.msk [vmem:[#allocation2 + $0x28] sm:$0xff] %vm1490_vm2, %v1463_v3  ;;  %v1462_v51 = vadd.f32 %v1319_v2, %v994_v49  ;;  %v1009_v52 = vadd.f32 %v5074_v4, %v6374_v54  ;;  %5375 = vmatprep.mubr.msk.f32.mxu1 %vm482_vm1, %v5865_v55  ;;  %v1329_v8 = vpop.f32.mrf.mxu0  ;;  %v7661_v2 = vld [vmem:[#allocation4_spill] sm:$0xff] }
 0x102   : > { %v1003_v28 = vpop.f32.mrf.mxu1 }
 0x103   : > { %1495 = vst.msk [vmem:[#allocation2 + $0x20] sm:$0xff] %vm1490_vm2, %v1462_v51  ;;  %v1465_v14 = vadd.f32 %v5124_v5, %v1009_v52  ;;  %v1004_v53 = vadd.f32 %v1003_v28, %v6386_v18  ;;  %v5127_v7 = vpop.f32.mrf.mxu0  ;;  %5426 = vmatmul.mubr.msk.f32.gmra.mxu0 %vm482_vm1, %v7620_v13  ;;  %v7662_v5 = vld [vmem:[#allocation31_spill] sm:$0xff]  ;;  %v7663_v51 = vld [vmem:[#allocation32_spill] sm:$0xff]  ;;  %v7664_v28 = vld [vmem:[#allocation5_spill] sm:$0xff] }
 0x104   : > { %v5077_v24 = vpop.f32.mrf.mxu1  ;;  %5376 = vmatmul.mubr.msk.f32.gmra.mxu1 %vm482_vm1, %v5879_v57  ;;  %5428 = vmatprep.mubr.msk.f32.mxu0 %vm482_vm1, %v7621_v15 }
 0x105   : > { %1498 = vst.msk [vmem:[#allocation2 + $0x38] sm:$0xff] %vm1490_vm2, %v1465_v14  ;;  %v1464_v54 = vadd.f32 %v1329_v8, %v1004_v53  ;;  %v1019_v55 = vadd.f32 %v5077_v24, %v6390_v6  ;;  %5378 = vmatprep.mubr.msk.f32.mxu1 %vm482_vm1, %v5885_v59  ;;  %v1339_v18 = vpop.f32.mrf.mxu0  ;;  %v7665_v14 = vld [vmem:[#allocation33_spill] sm:$0xff]  ;;  %v7666_v53 = vld [vmem:[#allocation34_spill] sm:$0xff] }
 0x106   : > { %v1013_v11 = vpop.f32.mrf.mxu1 }
 0x107   : > { %1497 = vst.msk [vmem:[#allocation2 + $0x30] sm:$0xff] %vm1490_vm2, %v1464_v54  ;;  %v1467_v43 = vadd.f32 %v5127_v7, %v1019_v55  ;;  %v1014_v57 = vadd.f32 %v1013_v11, %v6402_v22  ;;  %v5130_v13 = vpop.f32.mrf.mxu0  ;;  %5429 = vmatmul.mubr.msk.f32.gmra.mxu0 %vm482_vm1, %v7622_v17  ;;  %v7667_v55 = vld [vmem:[#allocation6_spill] sm:$0xff] }
 0x108   : > { %v5080_v46 = vpop.f32.mrf.mxu1  ;;  %5379 = vmatmul.mubr.msk.f32.gmra.mxu1 %vm482_vm1, %v5899_v61  ;;  %5431 = vmatprep.mubr.msk.f32.mxu0 %vm482_vm1, %v7623_v19 }
 0x109   : > { %1500 = vst.msk [vmem:[#allocation2 + $0x48] sm:$0xff] %vm1490_vm2, %v1467_v43  ;;  %v1466_v59 = vadd.f32 %v1339_v18, %v1014_v57  ;;  %v1029_v15 = vadd.f32 %v5080_v46, %v6406_v12  ;;  %5381 = vmatprep.mubr.msk.f32.mxu1 %vm482_vm1, %v5905_v63  ;;  %v1349_v22 = vpop.f32.mrf.mxu0  ;;  %v7668_v57 = vld [vmem:[#allocation35_spill] sm:$0xff]  ;;  %v7669_v46 = vld [vmem:[#allocation36_spill] sm:$0xff] }
 0x10a   : > { %v1023_v6 = vpop.f32.mrf.mxu1 }
 0x10b   : > { %1499 = vst.msk [vmem:[#allocation2 + $0x40] sm:$0xff] %vm1490_vm2, %v1466_v59  ;;  %v1469_v38 = vadd.f32 %v5130_v13, %v1029_v15  ;;  %v1024_v61 = vadd.f32 %v1023_v6, %v6418_v26  ;;  %v5133_v17 = vpop.f32.mrf.mxu0  ;;  %5432 = vmatmul.mubr.msk.f32.gmra.mxu0 %vm482_vm1, %v7624_v21  ;;  %v7670_v59 = vld [vmem:[#allocation7_spill] sm:$0xff]  ;;  %v7671_v6 = vld [vmem:[#allocation37_spill] sm:$0xff] }
 0x10c   : > { %v5083_v37 = vpop.f32.mrf.mxu1  ;;  %5382 = vmatmul.mubr.msk.f32.gmra.mxu1 %vm482_vm1, %v5919_v1  ;;  %5434 = vmatprep.mubr.msk.f32.mxu0 %vm482_vm1, %v7625_v23 }
 0x10d   : > { %1502 = vst.msk [vmem:[#allocation2 + $0x58] sm:$0xff] %vm1490_vm2, %v1469_v38  ;;  %v1468_v63 = vadd.f32 %v1349_v22, %v1024_v61  ;;  %v1039_v19 = vadd.f32 %v5083_v37, %v6422_v16  ;;  %5384 = vmatprep.mubr.msk.f32.mxu1 %vm482_vm1, %v5925_v9  ;;  %v1359_v26 = vpop.f32.mrf.mxu0  ;;  %v7672_v22 = vld [vmem:[#allocation38_spill] sm:$0xff] }
 0x10e   : > { %v1033_v12 = vpop.f32.mrf.mxu1 }
 0x10f   : > { %1501 = vst.msk [vmem:[#allocation2 + $0x50] sm:$0xff] %vm1490_vm2, %v1468_v63  ;;  %v1471_v40 = vadd.f32 %v5133_v17, %v1039_v19  ;;  %v1034_v1 = vadd.f32 %v1033_v12, %v6434_v44  ;;  %v5136_v21 = vpop.f32.mrf.mxu0  ;;  %5435 = vmatmul.mubr.msk.f32.gmra.mxu0 %vm482_vm1, %v7626_v25  ;;  %v7673_v17 = vld [vmem:[#allocation8_spill] sm:$0xff] }
 0x110   : > { %v5086_v34 = vpop.f32.mrf.mxu1  ;;  %5385 = vmatmul.mubr.msk.f32.gmra.mxu1 %vm482_vm1, %v5939_v0  ;;  %5437 = vmatprep.mubr.msk.f32.mxu0 %vm482_vm1, %v7627_v27 }
 0x111   : > { %1504 = vst.msk [vmem:[#allocation2 + $0x68] sm:$0xff] %vm1490_vm2, %v1471_v40  ;;  %v1470_v9 = vadd.f32 %v1359_v26, %v1034_v1  ;;  %v1049_v23 = vadd.f32 %v5086_v34, %v6438_v20  ;;  %5387 = vmatprep.mubr.msk.f32.mxu1 %vm482_vm1, %v5945_v60  ;;  %v1369_v44 = vpop.f32.mrf.mxu0  ;;  %v7674_v26 = vld [vmem:[#allocation39_spill] sm:$0xff]  ;;  %v7675_v40 = vld [vmem:[#allocation40_spill] sm:$0xff]  ;;  %v7676_v34 = vld [vmem:[#allocation9_spill] sm:$0xff] }
 0x112   : > { %v1043_v16 = vpop.f32.mrf.mxu1 }
 0x113   : > { %1503 = vst.msk [vmem:[#allocation2 + $0x60] sm:$0xff] %vm1490_vm2, %v1470_v9  ;;  %v1473_v39 = vadd.f32 %v5136_v21, %v1049_v23  ;;  %v1044_v0 = vadd.f32 %v1043_v16, %v6450_v42  ;;  %v5139_v25 = vpop.f32.mrf.mxu0  ;;  %5438 = vmatmul.mubr.msk.f32.gmra.mxu0 %vm482_vm1, %v7628_v62  ;;  %v7677_v9 = vld [vmem:[#allocation41_spill] sm:$0xff]  ;;  %v7678_v23 = vld [vmem:[#allocation42_spill] sm:$0xff] }
 0x114   : > { %v5089_v30 = vpop.f32.mrf.mxu1  ;;  %5388 = vmatmul.mubr.msk.f32.gmra.mxu1 %vm482_vm1, %v5959_v10  ;;  %5440 = vmatprep.mubr.msk.f32.mxu0 %vm482_vm1, %v7629_v33 }
 0x115   : > { %1506 = vst.msk [vmem:[#allocation2 + $0x78] sm:$0xff] %vm1490_vm2, %v1473_v39  ;;  %v1472_v60 = vadd.f32 %v1369_v44, %v1044_v0  ;;  %v1059_v27 = vadd.f32 %v5089_v30, %v6328_v31  ;;  %5390 = vmatprep.mubr.msk.f32.mxu1 %vm482_vm1, %v5965_v56  ;;  %v1379_v42 = vpop.f32.mrf.mxu0  ;;  %v7658_v31 = vld [vmem:[#allocation3_spill] sm:$0xff]  ;;  %v7679_v0 = vld [vmem:[#allocation10_spill] sm:$0xff] }
 0x116   : > { %v1053_v20 = vpop.f32.mrf.mxu1 }
 0x117   : > { %1505 = vst.msk [vmem:[#allocation2 + $0x70] sm:$0xff] %vm1490_vm2, %v1472_v60  ;;  %v1475_v41 = vadd.f32 %v5139_v25, %v1059_v27  ;;  %v1054_v10 = vadd.f32 %v1053_v20, %v6340_v36  ;;  %v5142_v62 = vpop.f32.mrf.mxu0  ;;  %5441 = vmatmul.mubr.msk.f32.gmra.mxu0 %vm482_vm1, %v7657_v35  ;;  %v7680_v27 = vld [vmem:[#allocation43_spill] sm:$0xff] }
 0x118   : > { %v5092_v29 = vpop.f32.mrf.mxu1  ;;  %5391 = vmatmul.mubr.msk.f32.gmra.mxu1 %vm482_vm1, %v7656_v45  ;;  %5443 = vmatprep.mubr.msk.f32.mxu0 %vm482_vm1, %v7660_v47  ;;  %v7686_v47 = vld [vmem:[#allocation48_spill] sm:$0xff] }
 0x119   : > { %1508 = vst.msk [vmem:[#allocation2 + $0x88] sm:$0xff] %vm1490_vm2, %v1475_v41  ;;  %v1474_v56 = vadd.f32 %v1379_v42, %v1054_v10  ;;  %v1069_v33 = vadd.f32 %v5092_v29, %v7658_v31  ;;  %5393 = vmatprep.mubr.msk.f32.mxu1 %vm482_vm1, %v7659_v32  ;;  %v1389_v48 = vpop.f32.mrf.mxu0  ;;  %v7681_v42 = vld [vmem:[#allocation11_spill] sm:$0xff]  ;;  %v7682_v10 = vld [vmem:[#allocation45_spill] sm:$0xff]  ;;  %v7683_v29 = vld [vmem:[#allocation46_spill] sm:$0xff] }
 0x11a   : > { %v1063_v36 = vpop.f32.mrf.mxu1  ;;  %v7685_v32 = vld [vmem:[#allocation47_spill] sm:$0xff] }
 0x11b   : > { %1507 = vst.msk [vmem:[#allocation2 + $0x80] sm:$0xff] %vm1490_vm2, %v1474_v56  ;;  %v1477_v58 = vadd.f32 %v5142_v62, %v1069_v33  ;;  %v1064_v3 = vadd.f32 %v1063_v36, %v7661_v2  ;;  %v5145_v4 = vpop.f32.mrf.mxu0  ;;  %5444 = vmatmul.mubr.msk.f32.gmra.mxu0 %vm482_vm1, %v7663_v51  ;;  %v7684_v56 = vld [vmem:[#allocation12_spill] sm:$0xff]  ;;  %v7688_v2 = vld [vmem:[#allocation49_spill] sm:$0xff]  ;;  %v7690_v51 = vld [vmem:[#allocation14_spill] sm:$0xff] }
 0x11c   : > { %v5095_v49 = vpop.f32.mrf.mxu1  ;;  %5394 = vmatmul.mubr.msk.f32.gmra.mxu1 %vm482_vm1, %v7662_v5  ;;  %5446 = vmatprep.mubr.msk.f32.mxu0 %vm482_vm1, %v7666_v53  ;;  %v7692_v53 = vld [vmem:[#allocation52_spill] sm:$0xff] }
 0x11d   : > { %1510 = vst.msk [vmem:[#allocation2 + $0x98] sm:$0xff] %vm1490_vm2, %v1477_v58  ;;  %v1476_v52 = vadd.f32 %v1389_v48, %v1064_v3  ;;  %v1079_v8 = vadd.f32 %v5095_v49, %v7664_v28  ;;  %5396 = vmatprep.mubr.msk.f32.mxu1 %vm482_vm1, %v7665_v14  ;;  %v1399_v7 = vpop.f32.mrf.mxu0  ;;  %v7687_v48 = vld [vmem:[#allocation13_spill] sm:$0xff]  ;;  %v7689_v3 = vld [vmem:[#allocation50_spill] sm:$0xff]  ;;  %v7691_v14 = vld [vmem:[#allocation51_spill] sm:$0xff] }
 0x11e   : > { %v1073_v24 = vpop.f32.mrf.mxu1 }
 0x11f   : > { %1509 = vst.msk [vmem:[#allocation2 + $0x90] sm:$0xff] %vm1490_vm2, %v1476_v52  ;;  %v1479_v54 = vadd.f32 %v5145_v4, %v1079_v8  ;;  %v1074_v11 = vadd.f32 %v1073_v24, %v7667_v55  ;;  %v5148_v43 = vpop.f32.mrf.mxu0  ;;  %5447 = vmatmul.mubr.msk.f32.gmra.mxu0 %vm482_vm1, %v7669_v46 }
 0x120   : > { %v5098_v18 = vpop.f32.mrf.mxu1  ;;  %5397 = vmatmul.mubr.msk.f32.gmra.mxu1 %vm482_vm1, %v7668_v57  ;;  %5449 = vmatprep.mubr.msk.f32.mxu0 %vm482_vm1, %v7672_v22 }
 0x121   : > { %1512 = vst.msk [vmem:[#allocation2 + $0xa8] sm:$0xff] %vm1490_vm2, %v1479_v54  ;;  %v1478_v13 = vadd.f32 %v1399_v7, %v1074_v11  ;;  %v1089_v15 = vadd.f32 %v5098_v18, %v7670_v59  ;;  %5399 = vmatprep.mubr.msk.f32.mxu1 %vm482_vm1, %v7671_v6  ;;  %v1409_v61 = vpop.f32.mrf.mxu0  ;;  %v7693_v7 = vld [vmem:[#allocation15_spill] sm:$0xff] }
 0x122   : > { %v1083_v38 = vpop.f32.mrf.mxu1 }
 0x123   : > { %1511 = vst.msk [vmem:[#allocation2 + $0xa0] sm:$0xff] %vm1490_vm2, %v1478_v13  ;;  %v1481_v37 = vadd.f32 %v5148_v43, %v1089_v15  ;;  %v1084_v63 = vadd.f32 %v1083_v38, %v7673_v17  ;;  %v5151_v12 = vpop.f32.mrf.mxu0  ;;  %5450 = vmatmul.mubr.msk.f32.gmra.mxu0 %vm482_vm1, %v7675_v40  ;;  %v7694_v43 = vld [vmem:[#allocation16_spill] sm:$0xff] }
 0x124   : > { %v5101_v19 = vpop.f32.mrf.mxu1  ;;  %5400 = vmatmul.mubr.msk.f32.gmra.mxu1 %vm482_vm1, %v7674_v26  ;;  %5452 = vmatprep.mubr.msk.f32.mxu0 %vm482_vm1, %v7678_v23 }
 0x125   : > { %1514 = vst.msk [vmem:[#allocation2 + $0xb8] sm:$0xff] %vm1490_vm2, %v1481_v37  ;;  %v1480_v1 = vadd.f32 %v1409_v61, %v1084_v63  ;;  %v1099_v21 = vadd.f32 %v5101_v19, %v7676_v34  ;;  %5402 = vmatprep.mubr.msk.f32.mxu1 %vm482_vm1, %v7677_v9  ;;  %v1419_v44 = vpop.f32.mrf.mxu0 }
 0x126   : > { %v1093_v16 = vpop.f32.mrf.mxu1 }
 0x127   : > { %1513 = vst.msk [vmem:[#allocation2 + $0xb0] sm:$0xff] %vm1490_vm2, %v1480_v1  ;;  %v1483_v39 = vadd.f32 %v5151_v12, %v1099_v21  ;;  %v1094_v30 = vadd.f32 %v1093_v16, %v7679_v0  ;;  %v5154_v60 = vpop.f32.mrf.mxu0  ;;  %5453 = vmatmul.mubr.msk.f32.gmra.mxu0 %vm482_vm1, %v7647_v50 }
 0x128   : > { %v5104_v25 = vpop.f32.mrf.mxu1  ;;  %5403 = vmatmul.mubr.msk.f32.gmra.mxu1 %vm482_vm1, %v7680_v27  ;;  %5455 = vmatprep.mubr.msk.f32.mxu0 %vm482_vm1, %v7683_v29 }
 0x129   : > { %1516 = vst.msk [vmem:[#allocation2 + $0xc8] sm:$0xff] %vm1490_vm2, %v1483_v39  ;;  %v1482_v20 = vadd.f32 %v1419_v44, %v1094_v30  ;;  %v1109_v41 = vadd.f32 %v5104_v25, %v7681_v42  ;;  %5405 = vmatprep.mubr.msk.f32.mxu1 %vm482_vm1, %v7682_v10  ;;  %v1429_v45 = vpop.f32.mrf.mxu0 }
 0x12a   : > { %v1103_v62 = vpop.f32.mrf.mxu1 }
 0x12b   : > { %1515 = vst.msk [vmem:[#allocation2 + $0xc0] sm:$0xff] %vm1490_vm2, %v1482_v20  ;;  %v1485_v35 = vadd.f32 %v5154_v60, %v1109_v41  ;;  %v1104_v31 = vadd.f32 %v1103_v62, %v7684_v56  ;;  %v5157_v50 = vpop.f32.mrf.mxu0  ;;  %5456 = vmatmul.mubr.msk.f32.gmra.mxu0 %vm482_vm1, %v7686_v47 }
 0x12c   : > { %v5107_v33 = vpop.f32.mrf.mxu1  ;;  %5406 = vmatmul.mubr.msk.f32.gmra.mxu1 %vm482_vm1, %v7685_v32  ;;  %5458 = vmatprep.mubr.msk.f32.mxu0 %vm482_vm1, %v7689_v3 }
 0x12d   : > { %1518 = vst.msk [vmem:[#allocation2 + $0xd8] sm:$0xff] %vm1490_vm2, %v1485_v35  ;;  %v1484_v36 = vadd.f32 %v1429_v45, %v1104_v31  ;;  %v1119_v58 = vadd.f32 %v5107_v33, %v7687_v48  ;;  %5408 = vmatprep.mubr.msk.f32.mxu1 %vm482_vm1, %v7688_v2  ;;  %v1439_v4 = vpop.f32.mrf.mxu0 }
 0x12e   : > { %v1113_v49 = vpop.f32.mrf.mxu1 }
 0x12f   : > { %1517 = vst.msk [vmem:[#allocation2 + $0xd0] sm:$0xff] %vm1490_vm2, %v1484_v36  ;;  %v1487_v5 = vadd.f32 %v5157_v50, %v1119_v58  ;;  %v1114_v52 = vadd.f32 %v1113_v49, %v7690_v51  ;;  %v5160_v8 = vpop.f32.mrf.mxu0  ;;  %5459 = vmatmul.mubr.msk.f32.gmra.mxu0 %vm482_vm1, %v7692_v53 }
 0x130   : > { %v5110_v28 = vpop.f32.mrf.mxu1  ;;  %5409 = vmatmul.mubr.msk.f32.gmra.mxu1 %vm482_vm1, %v7691_v14 }
 0x131   : > { %1520 = vst.msk [vmem:[#allocation2 + $0xe8] sm:$0xff] %vm1490_vm2, %v1487_v5  ;;  %v1486_v24 = vadd.f32 %v1439_v4, %v1114_v52  ;;  %v1129_v54 = vadd.f32 %v5110_v28, %v7693_v7  ;;  %v1449_v11 = vpop.f32.mrf.mxu0  ;;  %v1523_v52 = vlaneseq }
 0x132   : > { %v1123_v55 = vpop.f32.mrf.mxu1 }
 0x133   : > { %1519 = vst.msk [vmem:[#allocation2 + $0xe0] sm:$0xff] %vm1490_vm2, %v1486_v24  ;;  %v1489_v18 = vadd.f32 %v5160_v8, %v1129_v54  ;;  %v1124_v57 = vadd.f32 %v1123_v55, %v7694_v43  ;;  %v6642_v13 = vpop.f32.mrf.mxu0  ;;  %v6750_v24 = vshrl.u32 %v1523_v52, 7 }
 0x134   : > { %v6640_v46 = vpop.f32.mrf.mxu1 }
 0x135   : > { %1522 = vst.msk [vmem:[#allocation2 + $0xf8] sm:$0xff] %vm1490_vm2, %v1489_v18  ;;  %v1488_v59 = vadd.f32 %v1449_v11, %v1124_v57  ;;  %v6647_v6 = vpop.f32.mrf.mxu0  ;;  %v1525_v18 = vadd.s32 8, %v6750_v24 }
 0x136   : > { %v6645_v15 = vpop.f32.mrf.mxu1 }
 0x137   : > { %1521 = vst.msk [vmem:[#allocation2 + $0xf0] sm:$0xff] %vm1490_vm2, %v1488_v59  ;;  %v6652_v38 = vpop.f32.mrf.mxu0  ;;  %v1567_v52 = vand.u32 15, %v1525_v18 }
 0x138   : > { %v6650_v22 = vpop.f32.mrf.mxu1 }
 0x139   : > { %v6656_v37 = vpop.f32.mrf.mxu0  ;;  %vm1941_vm3 = vcmp.eq.s32.totalorder %v1567_v52, 15 }
 0x13a   : > { %v6654_v61 = vpop.f32.mrf.mxu1 }
 0x13b   : > { %v6660_v63 = vpop.f32.mrf.mxu0 }
 0x13c   : > { %v6658_v17 = vpop.f32.mrf.mxu1 }
 0x13d   : > { %v6664_v12 = vpop.f32.mrf.mxu0 }
 0x13e   : > { %v6662_v19 = vpop.f32.mrf.mxu1 }
 0x13f   : > { %v6668_v40 = vpop.f32.mrf.mxu0 }
 0x140   : > { %v6666_v26 = vpop.f32.mrf.mxu1 }
 0x141   : > { %v6672_v34 = vpop.f32.mrf.mxu0 }
 0x142   : > { %v6670_v1 = vpop.f32.mrf.mxu1 }
 0x143   : > { %v6676_v9 = vpop.f32.mrf.mxu0 }
 0x144   : > { %v6674_v21 = vpop.f32.mrf.mxu1 }
 0x145   : > { %v6680_v16 = vpop.f32.mrf.mxu0 }
 0x146   : > { %v6678_v23 = vpop.f32.mrf.mxu1 }
 0x147   : > { %v6684_v39 = vpop.f32.mrf.mxu0 }
 0x148   : > { %v6682_v44 = vpop.f32.mrf.mxu1 }
 0x149   : > { %v6688_v30 = vpop.f32.mrf.mxu0 }
 0x14a   : > { %v6686_v0 = vpop.f32.mrf.mxu1 }
 0x14b   : > { %v6692_v60 = vpop.f32.mrf.mxu0 }
 0x14c   : > { %v6690_v25 = vpop.f32.mrf.mxu1 }
 0x14d   : > { %v6696_v20 = vpop.f32.mrf.mxu0 }
 0x14e   : > { %v6694_v27 = vpop.f32.mrf.mxu1 }
 0x14f   : > { %v6700_v41 = vpop.f32.mrf.mxu0 }
 0x150   : > { %v6698_v42 = vpop.f32.mrf.mxu1 }
 0x151   : > { %v6704_v29 = vpop.f32.mrf.mxu0 }
 0x152   : > { %v6702_v10 = vpop.f32.mrf.mxu1 }
 0x153   : > { %v6708_v45 = vpop.f32.mrf.mxu0 }
 0x154   : > { %v6706_v62 = vpop.f32.mrf.mxu1 }
 0x155   : > { %v6712_v56 = vpop.f32.mrf.mxu0 }
 0x156   : > { %v6710_v35 = vpop.f32.mrf.mxu1 }
 0x157   : > { %v6716_v33 = vpop.f32.mrf.mxu0 }
 0x158   : > { %v6714_v31 = vpop.f32.mrf.mxu1 }
 0x159   : > { %v6720_v32 = vpop.f32.mrf.mxu0 }
 0x15a   : > { %v6718_v50 = vpop.f32.mrf.mxu1 }
 0x15b   : > { %v6724_v36 = vpop.f32.mrf.mxu0 }
 0x15c   : > { %v6722_v47 = vpop.f32.mrf.mxu1 }
 0x15d   : > { %v6728_v58 = vpop.f32.mrf.mxu0 }
 0x15e   : > { %v6726_v48 = vpop.f32.mrf.mxu1 }
 0x15f   : > { %v6732_v3 = vpop.f32.mrf.mxu0 }
 0x160   : > { %v6730_v2 = vpop.f32.mrf.mxu1 }
 0x161   : > { %v6736_v4 = vpop.f32.mrf.mxu0 }
 0x162   : > { %v6734_v49 = vpop.f32.mrf.mxu1  ;;  %7695 = vst [vmem:[#allocation17_spill] sm:$0xff] %v6736_v4 }
 0x163   : > { %v6740_v51 = vpop.f32.mrf.mxu0 }
 0x164   : > { %v6738_v5 = vpop.f32.mrf.mxu1  ;;  %7697 = vst [vmem:[#allocation19_spill] sm:$0xff] %v6740_v51 }
 0x165   : > { %7696 = vst [vmem:[#allocation18_spill] sm:$0xff] %v6738_v5  ;;  %v6744_v8 = vpop.f32.mrf.mxu0 }
 0x166   : > { %v6742_v28 = vpop.f32.mrf.mxu1  ;;  %7699 = vst [vmem:[#allocation21_spill] sm:$0xff] %v6744_v8 }
 0x167   : > { %7698 = vst [vmem:[#allocation20_spill] sm:$0xff] %v6742_v28  ;;  %v6748_v53 = vpop.f32.mrf.mxu0 }
 0x168   : > { %v6746_v14 = vpop.f32.mrf.mxu1  ;;  %7701 = vst [vmem:[#allocation23_spill] sm:$0xff] %v6748_v53  ;;  %v1527_v53 = vadd.s32 24, %v6750_v24 }
 0x169   : > { %7700 = vst [vmem:[#allocation22_spill] sm:$0xff] %v6746_v14  ;;  %v6754_v54 = vpop.f32.mrf.mxu0 }
 0x16a   : > { %v6752_v7 = vpop.f32.mrf.mxu1  ;;  %7703 = vst [vmem:[#allocation25_spill] sm:$0xff] %v6754_v54 }
 0x16b   : > { %7702 = vst [vmem:[#allocation24_spill] sm:$0xff] %v6752_v7  ;;  %v6758_v11 = vpop.f32.mrf.mxu0 }
 0x16c   : > { %v6756_v55 = vpop.f32.mrf.mxu1  ;;  %7705 = vst [vmem:[#allocation44_spill] sm:$0xff] %v6758_v11  ;;  %v2278_v11 = vadd.f32 %v6642_v13, %v6640_v46 }
 0x16d   : > { %7704 = vst [vmem:[#allocation26_spill] sm:$0xff] %v6756_v55  ;;  %v6763_v57 = vpop.f32.mrf.mxu0  ;;  %v1529_v55 = vadd.s32 40, %v6750_v24 }
 0x16e   : > { %v6761_v43 = vpop.f32.mrf.mxu1  ;;  %7707 = vst [vmem:[#allocation28_spill] sm:$0xff] %v6763_v57  ;;  %v1581_v57 = vand.u32 15, %v1527_v53 }
 0x16f   : > { %7706 = vst [vmem:[#allocation27_spill] sm:$0xff] %v6761_v43  ;;  %v6767_v14 = vpop.f32.mrf.mxu0 }
 0x170   : > { %v6765_v59 = vpop.f32.mrf.mxu1  ;;  %7709 = vst [vmem:[#allocation29_spill] sm:$0xff] %v6767_v14  ;;  %v2273_v14 = vadd.f32 %v6647_v6, %v6645_v15  ;;  %vm6785_vm5 = vcmp.eq.s32.totalorder %v1581_v57, 15  ;;  %v1531_v15 = vadd.s32 56, %v6750_v24  ;;  %v2283_v6 = vadd.f32 %v6656_v37, %v6654_v61  ;;  %v2789_v57 = vld [vmem:[#allocation2] sm:$0xff] }
 0x171   : > { %7708 = vst [vmem:[#allocation3_spill] sm:$0xff] %v6765_v59  ;;  %v6772_v54 = vpop.f32.mrf.mxu0 }
 0x172   : > { %v6770_v7 = vpop.f32.mrf.mxu1  ;;  %7711 = vst [vmem:[#allocation4_spill] sm:$0xff] %v6772_v54  ;;  %v2288_v54 = vadd.f32 %v6652_v38, %v6650_v22  ;;  %v2298_v22 = vadd.f32 %v6660_v63, %v6658_v17 }
 0x173   : > { %7710 = vst [vmem:[#allocation30_spill] sm:$0xff] %v6770_v7  ;;  %v6777_v8 = vpop.f32.mrf.mxu0  ;;  %v1595_v7 = vand.u32 15, %v1529_v55 }
 0x174   : > { %v5265_v43 = vpop.f32.mrf.mxu1  ;;  %7712 = vst [vmem:[#allocation31_spill] sm:$0xff] %v6777_v8  ;;  %v2308_v8 = vadd.f32 %v6668_v40, %v6666_v26 }
 0x175   : > { %v2662_v18 = vadd.f32 %v5265_v43, %v2278_v11  ;;  %v6781_v28 = vpop.f32.mrf.mxu0  ;;  %vm6798_vm6 = vcmp.eq.s32.totalorder %v1595_v7, 15  ;;  %v1533_v43 = vadd.s32 72, %v6750_v24 }
 0x176   : > { %v2502_v59 = vpop.f32.mrf.mxu1  ;;  %7713 = vst [vmem:[#allocation32_spill] sm:$0xff] %v6781_v28 }
 0x177   : > { %v2758_v51 = vsel %vm1941_vm3, 0.0, %v2662_v18  ;;  %v2661_v5 = vadd.f32 %v2502_v59, %v2273_v14  ;;  %v6789_v53 = vpop.f32.mrf.mxu0  ;;  %v2790_v59 = vld [vmem:[#allocation2 + $0x8] sm:$0xff] }
 0x178   : > { %v2855_v4 = vrot.slane %v2758_v51, 7  ;;  %v5268_v13 = vpop.f32.mrf.mxu1  ;;  %7716 = vst [vmem:[#allocation5_spill] sm:$0xff] %v6789_v53 }
 0x179   : > { %v2854_v55 = vrot.slane %v2661_v5, 7  ;;  %v2664_v11 = vadd.f32 %v5268_v13, %v2288_v54  ;;  %v6796_v51 = vpop.f32.mrf.mxu0  ;;  %v1609_v13 = vand.u32 15, %v1531_v15  ;;  %v2792_v15 = vld [vmem:[#allocation2 + $0x18] sm:$0xff] }
 0x17a   : > { %v2512_v38 = vpop.f32.mrf.mxu1  ;;  %7717 = vst [vmem:[#allocation33_spill] sm:$0xff] %v6796_v51  ;;  %v2293_v51 = vadd.f32 %v6664_v12, %v6662_v19 }
 0x17b   : > { %v2856_v52 = vsel %vm2853_vm4, %v2854_v55, %v2855_v4  ;;  %v2949_v61 = vsel %vm2853_vm4, 0.0, %v2854_v55  ;;  %v2760_v37 = vsel %vm6785_vm5, 0.0, %v2664_v11  ;;  %v2663_v5 = vadd.f32 %v2512_v38, %v2283_v6  ;;  %v6807_v7 = vpop.f32.mrf.mxu0  ;;  %v2791_v38 = vld [vmem:[#allocation2 + $0x10] sm:$0xff] }
 0x17c   : > { %v2950_v17 = vadd.f32 %v2949_v61, %v2789_v57  ;;  %v2951_v63 = vadd.f32 %v2856_v52, %v2790_v59  ;;  %v2859_v54 = vrot.slane %v2760_v37, 7  ;;  %v5271_v18 = vpop.f32.mrf.mxu1  ;;  %v1623_v55 = vand.u32 15, %v1533_v43  ;;  %v2795_v52 = vld [vmem:[#allocation2 + $0x30] sm:$0xff] }
 0x17d   : > { %v2857_v53 = vrot.slane %v2663_v5, 7  ;;  %v2666_v28 = vadd.f32 %v5271_v18, %v2298_v22  ;;  %v6815_v6 = vpop.f32.mrf.mxu0  ;;  %v1535_v11 = vadd.s32 88, %v6750_v24  ;;  %vm6822_vm7 = vcmp.eq.s32.totalorder %v1609_v13, 15  ;;  %v2794_v18 = vld [vmem:[#allocation2 + $0x28] sm:$0xff] }
 0x17e   : > { %2982 = vst.msk [vmem:[#allocation2] sm:$0xff] %vm1490_vm2, %v2950_v17  ;;  %2983 = vst.msk [vmem:[#allocation2 + $0x8] sm:$0xff] %vm1490_vm2, %v2951_v63  ;;  %v2522_v46 = vpop.f32.mrf.mxu1  ;;  %v2303_v37 = vadd.f32 %v6672_v34, %v6670_v1  ;;  %vm6836_vm8 = vcmp.eq.s32.totalorder %v1623_v55, 15  ;;  %v2793_v63 = vld [vmem:[#allocation2 + $0x20] sm:$0xff]  ;;  %v1537_v55 = vadd.s32 104, %v6750_v24 }
 0x17f   : > { %v2858_v57 = vsel %vm2853_vm4, %v2855_v4, %v2857_v53  ;;  %v2860_v19 = vsel %vm2853_vm4, %v2857_v53, %v2859_v54  ;;  %v2762_v12 = vsel %vm6798_vm6, 0.0, %v2666_v28  ;;  %v2665_v26 = vadd.f32 %v2522_v46, %v2293_v51  ;;  %v6826_v61 = vpop.f32.mrf.mxu0 }
 0x180   : > { %v2952_v40 = vadd.f32 %v2858_v57, %v2791_v38  ;;  %v2953_v22 = vadd.f32 %v2860_v19, %v2792_v15  ;;  %v2863_v59 = vrot.slane %v2762_v12, 7  ;;  %v5274_v43 = vpop.f32.mrf.mxu1  ;;  %v2318_v53 = vadd.f32 %v6676_v9, %v6674_v21 }
 0x181   : > { %v2861_v4 = vrot.slane %v2665_v26, 7  ;;  %v2668_v5 = vadd.f32 %v5274_v43, %v2308_v8  ;;  %v6834_v51 = vpop.f32.mrf.mxu0  ;;  %v1637_v17 = vand.u32 15, %v1535_v11  ;;  %v2313_v11 = vadd.f32 %v6680_v16, %v6678_v23  ;;  %v2796_v23 = vld [vmem:[#allocation2 + $0x38] sm:$0xff] }
 0x182   : > { %2984 = vst.msk [vmem:[#allocation2 + $0x10] sm:$0xff] %vm1490_vm2, %v2952_v40  ;;  %2985 = vst.msk [vmem:[#allocation2 + $0x18] sm:$0xff] %vm1490_vm2, %v2953_v22  ;;  %v2532_v28 = vpop.f32.mrf.mxu1  ;;  %v1539_v22 = vadd.s32 120, %v6750_v24  ;;  %v2348_v40 = vadd.f32 %v6700_v41, %v6698_v42 }
 0x183   : > { %v2862_v1 = vsel %vm2853_vm4, %v2859_v54, %v2861_v4  ;;  %v2864_v34 = vsel %vm2853_vm4, %v2861_v4, %v2863_v59  ;;  %v2764_v21 = vsel %vm6822_vm7, 0.0, %v2668_v5  ;;  %v2667_v9 = vadd.f32 %v2532_v28, %v2303_v37  ;;  %v6844_v15 = vpop.f32.mrf.mxu0 }
 0x184   : > { %v2954_v8 = vadd.f32 %v2862_v1, %v2793_v63  ;;  %v2955_v13 = vadd.f32 %v2864_v34, %v2794_v18  ;;  %v2867_v46 = vrot.slane %v2764_v21, 7  ;;  %v5277_v38 = vpop.f32.mrf.mxu1  ;;  %v2328_v54 = vadd.f32 %v6684_v39, %v6682_v44 }
 0x185   : > { %v2865_v57 = vrot.slane %v2667_v9, 7  ;;  %v2670_v19 = vadd.f32 %v5277_v38, %v2318_v53  ;;  %v6853_v26 = vpop.f32.mrf.mxu0  ;;  %vm6855_vm9 = vcmp.eq.s32.totalorder %v1637_v17, 15  ;;  %v1651_v17 = vand.u32 15, %v1537_v55 }
 0x186   : > { %2986 = vst.msk [vmem:[#allocation2 + $0x20] sm:$0xff] %vm1490_vm2, %v2954_v8  ;;  %2987 = vst.msk [vmem:[#allocation2 + $0x28] sm:$0xff] %vm1490_vm2, %v2955_v13  ;;  %v2542_v12 = vpop.f32.mrf.mxu1  ;;  %v2323_v63 = vadd.f32 %v6688_v30, %v6686_v0  ;;  %v1665_v21 = vand.u32 15, %v1539_v22  ;;  %v1541_v9 = vadd.s32 136, %v6750_v24  ;;  %v2797_v8 = vld [vmem:[#allocation2 + $0x40] sm:$0xff]  ;;  %v2798_v13 = vld [vmem:[#allocation2 + $0x48] sm:$0xff] }
 0x187   : > { %v2866_v16 = vsel %vm2853_vm4, %v2863_v59, %v2865_v57  ;;  %v2868_v43 = vsel %vm2853_vm4, %v2865_v57, %v2867_v46  ;;  %v2766_v44 = vsel %vm6836_vm8, 0.0, %v2670_v19  ;;  %v2669_v39 = vadd.f32 %v2542_v12, %v2313_v11  ;;  %v6864_v28 = vpop.f32.mrf.mxu0 }
 0x188   : > { %v2956_v37 = vadd.f32 %v2866_v16, %v2795_v52  ;;  %v2957_v4 = vadd.f32 %v2868_v43, %v2796_v23  ;;  %v2871_v5 = vrot.slane %v2766_v44, 7  ;;  %v5280_v53 = vpop.f32.mrf.mxu1  ;;  %v2338_v59 = vadd.f32 %v6692_v60, %v6690_v25  ;;  %v2799_v44 = vld [vmem:[#allocation2 + $0x50] sm:$0xff] }
 0x189   : > { %v2869_v18 = vrot.slane %v2669_v39, 7  ;;  %v2672_v1 = vadd.f32 %v5280_v53, %v2328_v54  ;;  %v6872_v34 = vpop.f32.mrf.mxu0  ;;  %vm6879_vm10 = vcmp.eq.s32.totalorder %v1651_v17, 15  ;;  %v2333_v12 = vadd.f32 %v6696_v20, %v6694_v27  ;;  %v2800_v39 = vld [vmem:[#allocation2 + $0x58] sm:$0xff] }
 0x18a   : > { %2988 = vst.msk [vmem:[#allocation2 + $0x30] sm:$0xff] %vm1490_vm2, %v2956_v37  ;;  %2989 = vst.msk [vmem:[#allocation2 + $0x38] sm:$0xff] %vm1490_vm2, %v2957_v4  ;;  %v2552_v14 = vpop.f32.mrf.mxu1  ;;  %vm6893_vm11 = vcmp.eq.s32.totalorder %v1665_v21, 15  ;;  %v1679_v43 = vand.u32 15, %v1541_v9 }
 0x18b   : > { %v2870_v38 = vsel %vm2853_vm4, %v2867_v46, %v2869_v18  ;;  %v2872_v0 = vsel %vm2853_vm4, %v2869_v18, %v2871_v5  ;;  %v2768_v30 = vsel %vm6855_vm9, 0.0, %v2672_v1  ;;  %v2671_v25 = vadd.f32 %v2552_v14, %v2323_v63  ;;  %v6883_v54 = vpop.f32.mrf.mxu0 }
 0x18c   : > { %v2958_v60 = vadd.f32 %v2870_v38, %v2797_v8  ;;  %v2959_v55 = vadd.f32 %v2872_v0, %v2798_v13  ;;  %v2875_v11 = vrot.slane %v2768_v30, 7  ;;  %v5283_v19 = vpop.f32.mrf.mxu1  ;;  %v1543_v18 = vadd.s32 152, %v6750_v24  ;;  %v2801_v38 = vld [vmem:[#allocation2 + $0x60] sm:$0xff] }
 0x18d   : > { %v2873_v46 = vrot.slane %v2671_v25, 7  ;;  %v2674_v22 = vadd.f32 %v5283_v19, %v2338_v59  ;;  %v6891_v23 = vpop.f32.mrf.mxu0  ;;  %v2343_v1 = vadd.f32 %v6704_v29, %v6702_v10  ;;  %vm6912_vm12 = vcmp.eq.s32.totalorder %v1679_v43, 15  ;;  %v2802_v10 = vld [vmem:[#allocation2 + $0x68] sm:$0xff]  ;;  %v2805_v8 = vld [vmem:[#allocation2 + $0x80] sm:$0xff] }
 0x18e   : > { %2990 = vst.msk [vmem:[#allocation2 + $0x40] sm:$0xff] %vm1490_vm2, %v2958_v60  ;;  %2991 = vst.msk [vmem:[#allocation2 + $0x48] sm:$0xff] %vm1490_vm2, %v2959_v55  ;;  %v2562_v52 = vpop.f32.mrf.mxu1  ;;  %v1545_v13 = vadd.s32 168, %v6750_v24  ;;  %v1693_v19 = vand.u32 15, %v1543_v18  ;;  %v1547_v43 = vadd.s32 184, %v6750_v24 }
 0x18f   : > { %v2874_v27 = vsel %vm2853_vm4, %v2871_v5, %v2873_v46  ;;  %v2876_v20 = vsel %vm2853_vm4, %v2873_v46, %v2875_v11  ;;  %v2770_v42 = vsel %vm6879_vm10, 0.0, %v2674_v22  ;;  %v2673_v41 = vadd.f32 %v2562_v52, %v2333_v12  ;;  %v6901_v63 = vpop.f32.mrf.mxu0 }
 0x190   : > { %v2960_v37 = vadd.f32 %v2874_v27, %v2799_v44  ;;  %v2961_v4 = vadd.f32 %v2876_v20, %v2800_v39  ;;  %v2879_v53 = vrot.slane %v2770_v42, 7  ;;  %v5286_v17 = vpop.f32.mrf.mxu1  ;;  %v2358_v5 = vadd.f32 %v6708_v45, %v6706_v62  ;;  %v2803_v44 = vld [vmem:[#allocation2 + $0x70] sm:$0xff]  ;;  %v2804_v39 = vld [vmem:[#allocation2 + $0x78] sm:$0xff] }
 0x191   : > { %v2877_v59 = vrot.slane %v2673_v41, 7  ;;  %v2676_v14 = vadd.f32 %v5286_v17, %v2348_v40  ;;  %v6910_v9 = vpop.f32.mrf.mxu0  ;;  %v2353_v12 = vadd.f32 %v6712_v56, %v6710_v35  ;;  %v1707_v16 = vand.u32 15, %v1545_v13  ;;  %v2806_v13 = vld [vmem:[#allocation2 + $0x88] sm:$0xff]  ;;  %v7739_v41 = vld [vmem:[#allocation18_spill] sm:$0xff] }
 0x192   : > { %2992 = vst.msk [vmem:[#allocation2 + $0x50] sm:$0xff] %vm1490_vm2, %v2960_v37  ;;  %2993 = vst.msk [vmem:[#allocation2 + $0x58] sm:$0xff] %vm1490_vm2, %v2961_v4  ;;  %v2572_v21 = vpop.f32.mrf.mxu1  ;;  %vm6936_vm13 = vcmp.eq.s32.totalorder %v1693_v19, 15  ;;  %v2363_v17 = vadd.f32 %v6720_v32, %v6718_v50 }
 0x193   : > { %v2878_v29 = vsel %vm2853_vm4, %v2875_v11, %v2877_v59  ;;  %v2880_v0 = vsel %vm2853_vm4, %v2877_v59, %v2879_v53  ;;  %v2772_v62 = vsel %vm6893_vm11, 0.0, %v2676_v14  ;;  %v2675_v45 = vadd.f32 %v2572_v21, %v2343_v1  ;;  %v6921_v57 = vpop.f32.mrf.mxu0 }
 0x194   : > { %v2962_v30 = vadd.f32 %v2878_v29, %v2801_v38  ;;  %v2963_v25 = vadd.f32 %v2880_v0, %v2802_v10  ;;  %v2883_v60 = vrot.slane %v2772_v62, 7  ;;  %v5289_v55 = vpop.f32.mrf.mxu1  ;;  %v2368_v11 = vadd.f32 %v6716_v33, %v6714_v31 }
 0x195   : > { %v2881_v46 = vrot.slane %v2675_v45, 7  ;;  %v2678_v22 = vadd.f32 %v5289_v55, %v2358_v5  ;;  %v6929_v52 = vpop.f32.mrf.mxu0  ;;  %v2378_v1 = vadd.f32 %v6724_v36, %v6722_v47  ;;  %vm6950_vm14 = vcmp.eq.s32.totalorder %v1707_v16, 15  ;;  %v2810_v5 = vld [vmem:[#allocation2 + $0xa8] sm:$0xff] }
 0x196   : > { %2994 = vst.msk [vmem:[#allocation2 + $0x60] sm:$0xff] %vm1490_vm2, %v2962_v30  ;;  %2995 = vst.msk [vmem:[#allocation2 + $0x68] sm:$0xff] %vm1490_vm2, %v2963_v25  ;;  %v2582_v40 = vpop.f32.mrf.mxu1  ;;  %v1721_v21 = vand.u32 15, %v1547_v43  ;;  %v1549_v45 = vadd.s32 200, %v6750_v24  ;;  %v2373_v30 = vadd.f32 %v6728_v58, %v6726_v48  ;;  %v2808_v48 = vld [vmem:[#allocation2 + $0x98] sm:$0xff] }
 0x197   : > { %v2882_v27 = vsel %vm2853_vm4, %v2879_v53, %v2881_v46  ;;  %v2884_v35 = vsel %vm2853_vm4, %v2881_v46, %v2883_v60  ;;  %v2774_v56 = vsel %vm6912_vm12, 0.0, %v2678_v22  ;;  %v2677_v31 = vadd.f32 %v2582_v40, %v2353_v12  ;;  %v6940_v4 = vpop.f32.mrf.mxu0 }
 0x198   : > { %v2964_v33 = vadd.f32 %v2882_v27, %v2803_v44  ;;  %v2965_v20 = vadd.f32 %v2884_v35, %v2804_v39  ;;  %v2887_v42 = vrot.slane %v2774_v56, 7  ;;  %v5292_v37 = vpop.f32.mrf.mxu1  ;;  %vm6969_vm15 = vcmp.eq.s32.totalorder %v1721_v21, 15  ;;  %v7738_v56 = vld [vmem:[#allocation17_spill] sm:$0xff] }
 0x199   : > { %v2885_v53 = vrot.slane %v2677_v31, 7  ;;  %v2680_v18 = vadd.f32 %v5292_v37, %v2368_v11  ;;  %v6948_v14 = vpop.f32.mrf.mxu0  ;;  %v1551_v22 = vadd.s32 216, %v6750_v24  ;;  %v2807_v11 = vld [vmem:[#allocation2 + $0x90] sm:$0xff]  ;;  %v1735_v35 = vand.u32 15, %v1549_v45 }
 0x19a   : > { %2996 = vst.msk [vmem:[#allocation2 + $0x70] sm:$0xff] %vm1490_vm2, %v2964_v33  ;;  %2997 = vst.msk [vmem:[#allocation2 + $0x78] sm:$0xff] %vm1490_vm2, %v2965_v20  ;;  %v2592_v59 = vpop.f32.mrf.mxu1  ;;  %v2383_v31 = vadd.f32 %v7738_v56, %v6734_v49  ;;  %v7744_v45 = vld [vmem:[#allocation21_spill] sm:$0xff] }
 0x19b   : > { %v2886_v50 = vsel %vm2853_vm4, %v2883_v60, %v2885_v53  ;;  %v2888_v32 = vsel %vm2853_vm4, %v2885_v53, %v2887_v42  ;;  %v2776_v47 = vsel %vm6936_vm13, 0.0, %v2680_v18  ;;  %v2679_v36 = vadd.f32 %v2592_v59, %v2363_v17  ;;  %v6958_v62 = vpop.f32.mrf.mxu0  ;;  %v2809_v59 = vld [vmem:[#allocation2 + $0xa0] sm:$0xff] }
 0x19c   : > { %v2966_v38 = vadd.f32 %v2886_v50, %v2805_v8  ;;  %v2967_v10 = vadd.f32 %v2888_v32, %v2806_v13  ;;  %v2891_v29 = vrot.slane %v2776_v47, 7  ;;  %v5295_v0 = vpop.f32.mrf.mxu1  ;;  %v2388_v60 = vadd.f32 %v6732_v3, %v6730_v2 }
 0x19d   : > { %v2889_v25 = vrot.slane %v2679_v36, 7  ;;  %v2682_v55 = vadd.f32 %v5295_v0, %v2378_v1  ;;  %v6967_v12 = vpop.f32.mrf.mxu0  ;;  %v1749_v18 = vand.u32 15, %v1551_v22  ;;  %v1553_v1 = vadd.s32 232, %v6750_v24  ;;  %v7743_v0 = vld [vmem:[#allocation20_spill] sm:$0xff] }
 0x19e   : > { %2998 = vst.msk [vmem:[#allocation2 + $0x80] sm:$0xff] %vm1490_vm2, %v2966_v38  ;;  %2999 = vst.msk [vmem:[#allocation2 + $0x88] sm:$0xff] %vm1490_vm2, %v2967_v10  ;;  %v2602_v19 = vpop.f32.mrf.mxu1  ;;  %vm6993_vm0 = vcmp.eq.s32.totalorder %v1735_v35, 15 }
 0x19f   : > { %v2890_v58 = vsel %vm2853_vm4, %v2887_v42, %v2889_v25  ;;  %v2892_v40 = vsel %vm2853_vm4, %v2889_v25, %v2891_v29  ;;  %v2778_v2 = vsel %vm6950_vm14, 0.0, %v2682_v55  ;;  %v2681_v3 = vadd.f32 %v2602_v19, %v2373_v30  ;;  %v6978_v27 = vpop.f32.mrf.mxu0  ;;  %v7740_v42 = vld [vmem:[#allocation19_spill] sm:$0xff]  ;;  %v7745_v55 = vld [vmem:[#allocation22_spill] sm:$0xff] }
 0x1a0   : > { %v2968_v16 = vadd.f32 %v2890_v58, %v2807_v11  ;;  %v2969_v43 = vadd.f32 %v2892_v40, %v2808_v48  ;;  %v2895_v44 = vrot.slane %v2778_v2, 7  ;;  %v5298_v39 = vpop.f32.mrf.mxu1  ;;  %v2398_v37 = vadd.f32 %v7740_v42, %v7739_v41  ;;  %v2811_v58 = vld [vmem:[#allocation2 + $0xb0] sm:$0xff]  ;;  %v2812_v40 = vld [vmem:[#allocation2 + $0xb8] sm:$0xff]  ;;  %v7749_v41 = vld [vmem:[#allocation24_spill] sm:$0xff] }
 0x1a1   : > { %v2893_v33 = vrot.slane %v2681_v3, 7  ;;  %v2684_v20 = vadd.f32 %v5298_v39, %v2388_v60  ;;  %v6986_v53 = vpop.f32.mrf.mxu0  ;;  %v2393_v30 = vadd.f32 %v7744_v45, %v7743_v0  ;;  %v7746_v60 = vld [vmem:[#allocation23_spill] sm:$0xff]  ;;  %vm7007_vm1 = vcmp.eq.s32.totalorder %v1749_v18, 15  ;;  %v7750_v42 = vld [vmem:[#allocation25_spill] sm:$0xff] }
 0x1a2   : > { %3000 = vst.msk [vmem:[#allocation2 + $0x90] sm:$0xff] %vm1490_vm2, %v2968_v16  ;;  %3001 = vst.msk [vmem:[#allocation2 + $0x98] sm:$0xff] %vm1490_vm2, %v2969_v43  ;;  %v2612_v17 = vpop.f32.mrf.mxu1  ;;  %v2408_v19 = vadd.f32 %v7746_v60, %v7745_v55  ;;  %v1763_v48 = vand.u32 15, %v1553_v1  ;;  %v7752_v1 = vld [vmem:[#allocation44_spill] sm:$0xff]  ;;  %v7755_v60 = vld [vmem:[#allocation27_spill] sm:$0xff] }
 0x1a3   : > { %v2894_v21 = vsel %vm2853_vm4, %v2891_v29, %v2893_v33  ;;  %v2896_v49 = vsel %vm2853_vm4, %v2893_v33, %v2895_v44  ;;  %v2780_v8 = vsel %vm6969_vm15, 0.0, %v2684_v20  ;;  %v2683_v13 = vadd.f32 %v2612_v17, %v2383_v31  ;;  %v6997_v10 = vpop.f32.mrf.mxu0 }
 0x1a4   : > { %v2970_v50 = vadd.f32 %v2894_v21, %v2809_v59  ;;  %v2971_v32 = vadd.f32 %v2896_v49, %v2810_v5  ;;  %v2899_v47 = vrot.slane %v2780_v8, 7  ;;  %v5301_v38 = vpop.f32.mrf.mxu1  ;;  %v1555_v20 = vadd.s32 248, %v6750_v24  ;;  %v2813_v8 = vld [vmem:[#allocation2 + $0xc0] sm:$0xff] }
 0x1a5   : > { %v2897_v29 = vrot.slane %v2683_v13, 7  ;;  %v2686_v25 = vadd.f32 %v5301_v38, %v2398_v37  ;;  %v7005_v22 = vpop.f32.mrf.mxu0  ;;  %v2403_v37 = vadd.f32 %v7750_v42, %v7749_v41  ;;  %vm7026_vm3 = vcmp.eq.s32.totalorder %v1763_v48, 15  ;;  %v2814_v13 = vld [vmem:[#allocation2 + $0xc8] sm:$0xff] }
 0x1a6   : > { %3002 = vst.msk [vmem:[#allocation2 + $0xa0] sm:$0xff] %vm1490_vm2, %v2970_v50  ;;  %3003 = vst.msk [vmem:[#allocation2 + $0xa8] sm:$0xff] %vm1490_vm2, %v2971_v32  ;;  %v2622_v46 = vpop.f32.mrf.mxu1  ;;  %v1777_v55 = vand.u32 15, %v1555_v20 }
 0x1a7   : > { %v2898_v2 = vsel %vm2853_vm4, %v2895_v44, %v2897_v29  ;;  %v2900_v3 = vsel %vm2853_vm4, %v2897_v29, %v2899_v47  ;;  %v2782_v16 = vsel %vm6993_vm0, 0.0, %v2686_v25  ;;  %v2685_v43 = vadd.f32 %v2622_v46, %v2393_v30  ;;  %v7015_v33 = vpop.f32.mrf.mxu0  ;;  %v7751_v44 = vld [vmem:[#allocation26_spill] sm:$0xff] }
 0x1a8   : > { %v2972_v39 = vadd.f32 %v2898_v2, %v2811_v58  ;;  %v2973_v35 = vadd.f32 %v2900_v3, %v2812_v40  ;;  %v2903_v56 = vrot.slane %v2782_v16, 7  ;;  %v5304_v31 = vpop.f32.mrf.mxu1  ;;  %v2418_v59 = vadd.f32 %v7752_v1, %v7751_v44  ;;  %v7757_v40 = vld [vmem:[#allocation3_spill] sm:$0xff]  ;;  %v2815_v16 = vld [vmem:[#allocation2 + $0xd0] sm:$0xff]  ;;  %v7761_v1 = vld [vmem:[#allocation30_spill] sm:$0xff] }
 0x1a9   : > { %v2901_v17 = vrot.slane %v2685_v43, 7  ;;  %v2688_v18 = vadd.f32 %v5304_v31, %v2408_v19  ;;  %v7024_v21 = vpop.f32.mrf.mxu0  ;;  %v7756_v19 = vld [vmem:[#allocation28_spill] sm:$0xff]  ;;  %v2816_v43 = vld [vmem:[#allocation2 + $0xd8] sm:$0xff]  ;;  %vm7048_vm5 = vcmp.eq.s32.totalorder %v1777_v55, 15 }
 0x1aa   : > { %3004 = vst.msk [vmem:[#allocation2 + $0xb0] sm:$0xff] %vm1490_vm2, %v2972_v39  ;;  %3005 = vst.msk [vmem:[#allocation2 + $0xb8] sm:$0xff] %vm1490_vm2, %v2973_v35  ;;  %v2632_v5 = vpop.f32.mrf.mxu1  ;;  %v2413_v46 = vadd.f32 %v7756_v19, %v7755_v60 }
 0x1ab   : > { %v2902_v50 = vsel %vm2853_vm4, %v2899_v47, %v2901_v17  ;;  %v2904_v32 = vsel %vm2853_vm4, %v2901_v17, %v2903_v56  ;;  %v2784_v36 = vsel %vm7007_vm1, 0.0, %v2688_v18  ;;  %v2687_v38 = vadd.f32 %v2632_v5, %v2403_v37  ;;  %v7034_v25 = vpop.f32.mrf.mxu0  ;;  %v7758_v47 = vld [vmem:[#allocation29_spill] sm:$0xff] }
 0x1ac   : > { %v2974_v0 = vadd.f32 %v2902_v50, %v2813_v8  ;;  %v2975_v45 = vadd.f32 %v2904_v32, %v2814_v13  ;;  %v2907_v30 = vrot.slane %v2784_v36, 7  ;;  %v5307_v29 = vpop.f32.mrf.mxu1  ;;  %v2428_v2 = vadd.f32 %v7758_v47, %v7757_v40  ;;  %v2817_v36 = vld [vmem:[#allocation2 + $0xe0] sm:$0xff] }
 0x1ad   : > { %v2905_v48 = vrot.slane %v2687_v38, 7  ;;  %v2690_v58 = vadd.f32 %v5307_v29, %v2418_v59  ;;  %v7042_v3 = vpop.f32.mrf.mxu0  ;;  %v7762_v59 = vld [vmem:[#allocation4_spill] sm:$0xff]  ;;  %v1560_v50 = vand.u32 15, %v6750_v24  ;;  %v1526_v32 = vadd.s32 16, %v6750_v24  ;;  %v7763_v47 = vld [vmem:[#allocation31_spill] sm:$0xff] }
 0x1ae   : > { %3006 = vst.msk [vmem:[#allocation2 + $0xc0] sm:$0xff] %vm1490_vm2, %v2974_v0  ;;  %3007 = vst.msk [vmem:[#allocation2 + $0xc8] sm:$0xff] %vm1490_vm2, %v2975_v45  ;;  %v2642_v11 = vpop.f32.mrf.mxu1  ;;  %v2423_v5 = vadd.f32 %v7762_v59, %v7761_v1  ;;  %v2818_v38 = vld [vmem:[#allocation2 + $0xe8] sm:$0xff] }
 0x1af   : > { %v2906_v39 = vsel %vm2853_vm4, %v2903_v56, %v2905_v48  ;;  %v2908_v35 = vsel %vm2853_vm4, %v2905_v48, %v2907_v30  ;;  %v2786_v31 = vsel %vm7026_vm3, 0.0, %v2690_v58  ;;  %v2689_v20 = vadd.f32 %v2642_v11, %v2413_v46  ;;  %v7052_v44 = vpop.f32.mrf.mxu0 }
 0x1b0   : > { %v2976_v41 = vadd.f32 %v2906_v39, %v2815_v16  ;;  %v2977_v42 = vadd.f32 %v2908_v35, %v2816_v43  ;;  %v2911_v37 = vrot.slane %v2786_v31, 7  ;;  %v5310_v18 = vpop.f32.mrf.mxu1  ;;  %vm7069_vm6 = vcmp.eq.s32.totalorder %v1560_v50, 0  ;;  %v2819_v43 = vld [vmem:[#allocation2 + $0xf0] sm:$0xff]  ;;  %v2820_v39 = vld [vmem:[#allocation2 + $0xf8] sm:$0xff] }
 0x1b1   : > { %v2909_v56 = vrot.slane %v2689_v20, 7  ;;  %v2692_v8 = vadd.f32 %v5310_v18, %v2428_v2  ;;  %v7058_v13 = vpop.f32.mrf.mxu0  ;;  %v7766_v20 = vld [vmem:[#allocation32_spill] sm:$0xff] }
 0x1b2   : > { %3008 = vst.msk [vmem:[#allocation2 + $0xd0] sm:$0xff] %vm1490_vm2, %v2976_v41  ;;  %3009 = vst.msk [vmem:[#allocation2 + $0xd8] sm:$0xff] %vm1490_vm2, %v2977_v42  ;;  %v2652_v49 = vpop.f32.mrf.mxu1  ;;  %v1574_v42 = vand.u32 15, %v1526_v32 }
 0x1b3   : > { %v2910_v0 = vsel %vm2853_vm4, %v2907_v30, %v2909_v56  ;;  %v2912_v45 = vsel %vm2853_vm4, %v2909_v56, %v2911_v37  ;;  %v2788_v29 = vsel %vm7048_vm5, 0.0, %v2692_v8  ;;  %v2691_v55 = vadd.f32 %v2652_v49, %v2423_v5  ;;  %v5415_v58 = vpop.f32.mrf.mxu0  ;;  %v7767_v49 = vld [vmem:[#allocation5_spill] sm:$0xff] }
 0x1b4   : > { %v2978_v60 = vadd.f32 %v2910_v0, %v2817_v36  ;;  %v2979_v19 = vadd.f32 %v2912_v45, %v2818_v38  ;;  %v2915_v46 = vrot.slane %v2788_v29, 7  ;;  %v5365_v48 = vpop.f32.mrf.mxu1  ;;  %v1528_v56 = vadd.s32 32, %v6750_v24  ;;  %v7768_v0 = vld [vmem:[#allocation33_spill] sm:$0xff] }
 0x1b5   : > { %v2913_v40 = vrot.slane %v2691_v55, 7  ;;  %v3353_v2 = vadd.f32 %v5365_v48, %v7763_v47  ;;  %v3577_v16 = vpop.f32.mrf.mxu0  ;;  %v1530_v38 = vadd.s32 48, %v6750_v24  ;;  %vm7084_vm7 = vcmp.eq.s32.totalorder %v1574_v42, 0 }
 0x1b6   : > { %3010 = vst.msk [vmem:[#allocation2 + $0xe0] sm:$0xff] %vm1490_vm2, %v2978_v60  ;;  %3011 = vst.msk [vmem:[#allocation2 + $0xe8] sm:$0xff] %vm1490_vm2, %v2979_v19  ;;  %v3347_v11 = vpop.f32.mrf.mxu1 }
 0x1b7   : > { %v2914_v35 = vsel %vm2853_vm4, %v2911_v37, %v2913_v40  ;;  %v2916_v31 = vsel %vm2853_vm4, %v2913_v40, %v2915_v46  ;;  %v3348_v41 = vadd.f32 %v3347_v11, %v7766_v20  ;;  %v3737_v1 = vadd.f32 %v5415_v58, %v3353_v2  ;;  %v5418_v5 = vpop.f32.mrf.mxu0  ;;  %v3864_v2 = vld [vmem:[#allocation2] sm:$0xff] }
 0x1b8   : > { %v2980_v17 = vadd.f32 %v2914_v35, %v2819_v43  ;;  %v2981_v18 = vadd.f32 %v2916_v31, %v2820_v39  ;;  %v5368_v59 = vpop.f32.mrf.mxu1  ;;  %vm3928_vm4 = vcmask 1046528   ;;  %v1588_v58 = vand.u32 15, %v1528_v56 }
 0x1b9   : > { %v3736_v8 = vadd.f32 %v3577_v16, %v3348_v41  ;;  %v3363_v50 = vadd.f32 %v5368_v59, %v7767_v49  ;;  %v3587_v36 = vpop.f32.mrf.mxu0  ;;  %v3930_v55 = vrot.slane %v3737_v1, 1  ;;  %v1602_v43 = vand.u32 15, %v1530_v38  ;;  %v3866_v49 = vld [vmem:[#allocation2 + $0x10] sm:$0xff] }
 0x1ba   : > { %3012 = vst.msk [vmem:[#allocation2 + $0xf0] sm:$0xff] %vm1490_vm2, %v2980_v17  ;;  %3013 = vst.msk [vmem:[#allocation2 + $0xf8] sm:$0xff] %vm1490_vm2, %v2981_v18  ;;  %v3357_v37 = vpop.f32.mrf.mxu1  ;;  %v1532_v39 = vadd.s32 64, %v6750_v24  ;;  %v1534_v41 = vadd.s32 80, %v6750_v24  ;;  %vm7097_vm8 = vcmp.eq.s32.totalorder %v1588_v58, 0  ;;  %v3874_v38 = vld [vmem:[#allocation2 + $0x50] sm:$0xff] }
 0x1bb   : > { %v3832_v32 = vsel %vm7069_vm6, 0.0, %v3736_v8  ;;  %v3358_v45 = vadd.f32 %v3357_v37, %v7768_v0  ;;  %v3739_v19 = vadd.f32 %v5418_v5, %v3363_v50  ;;  %v5421_v48 = vpop.f32.mrf.mxu0  ;;  %v1536_v8 = vadd.s32 96, %v6750_v24 }
 0x1bc   : > { %v3929_v60 = vrot.slane %v3832_v32, 1  ;;  %v5371_v46 = vpop.f32.mrf.mxu1  ;;  %vm7106_vm9 = vcmp.eq.s32.totalorder %v1602_v43, 0  ;;  %v1616_v0 = vand.u32 15, %v1532_v39  ;;  %v3868_v43 = vld [vmem:[#allocation2 + $0x20] sm:$0xff] }
 0x1bd   : > { %v3738_v40 = vadd.f32 %v3587_v36, %v3358_v45  ;;  %v3373_v47 = vadd.f32 %v5371_v46, %v6807_v7  ;;  %v3597_v16 = vpop.f32.mrf.mxu0  ;;  %v3934_v42 = vrot.slane %v3739_v19, 1 }
 0x1be   : > { %v3931_v11 = vsel %vm3928_vm4, %v3929_v60, %v3930_v55  ;;  %v3367_v30 = vpop.f32.mrf.mxu1  ;;  %v1630_v60 = vand.u32 15, %v1534_v41  ;;  %vm7136_vm10 = vcmp.eq.s32.totalorder %v1616_v0, 0 }
 0x1bf   : > { %v4025_v35 = vadd.f32 %v3931_v11, %v3864_v2  ;;  %v3834_v31 = vsel %vm7084_vm7, 0.0, %v3738_v40  ;;  %v3368_v20 = vadd.f32 %v3367_v30, %v6815_v6  ;;  %v7095_v18 = vadd.f32 %v5421_v48, %v3373_v47  ;;  %v5424_v59 = vpop.f32.mrf.mxu0  ;;  %v3865_v6 = vld [vmem:[#allocation2 + $0x8] sm:$0xff] }
 0x1c0   : > { %v3932_v17 = vrot.slane %v3834_v31, 1  ;;  %v5374_v1 = vpop.f32.mrf.mxu1  ;;  %v7115_v40 = vadd.s32 112, %v6750_v24  ;;  %v1644_v11 = vand.u32 15, %v1536_v8  ;;  %v7123_v30 = vadd.s32 128, %v6750_v24 }
 0x1c1   : > { %4057 = vst.msk [vmem:[#allocation2] sm:$0xff] %vm1490_vm2, %v4025_v35  ;;  %v3740_v5 = vadd.f32 %v3597_v16, %v3368_v20  ;;  %v3383_v56 = vadd.f32 %v5374_v1, %v6826_v61  ;;  %v3607_v32 = vpop.f32.mrf.mxu0  ;;  %v3938_v19 = vrot.slane %v7095_v18, 1  ;;  %v3867_v16 = vld [vmem:[#allocation2 + $0x18] sm:$0xff]  ;;  %vm7144_vm11 = vcmp.eq.s32.totalorder %v1630_v60, 0 }
 0x1c2   : > { %v3933_v50 = vsel %vm3928_vm4, %v3930_v55, %v3932_v17  ;;  %v3935_v37 = vsel %vm3928_vm4, %v3932_v17, %v3934_v42  ;;  %v3377_v36 = vpop.f32.mrf.mxu1  ;;  %vm7153_vm12 = vcmp.eq.s32.totalorder %v1644_v11, 0  ;;  %v7167_v60 = vadd.s32 160, %v6750_v24 }
 0x1c3   : > { %v4026_v45 = vadd.f32 %v3933_v50, %v3865_v6  ;;  %v4027_v29 = vadd.f32 %v3935_v37, %v3866_v49  ;;  %v3836_v61 = vsel %vm7097_vm8, 0.0, %v3740_v5  ;;  %v3378_v55 = vadd.f32 %v3377_v36, %v6834_v51  ;;  %v5427_v58 = vpop.f32.mrf.mxu0  ;;  %v7128_v51 = vld [vmem:[%s7468_s4] ss:$0 sm:$0xff] }
 0x1c4   : > { %v3936_v46 = vrot.slane %v3836_v61, 1  ;;  %v5377_v48 = vpop.f32.mrf.mxu1  ;;  %v7119_v47 = vadd.f32 %v5424_v59, %v3383_v56  ;;  %v1658_v49 = vand.u32 15, %v7115_v40 }
 0x1c5   : > { %4058 = vst.msk [vmem:[#allocation2 + $0x8] sm:$0xff] %vm1490_vm2, %v4026_v45  ;;  %4059 = vst.msk [vmem:[#allocation2 + $0x10] sm:$0xff] %vm1490_vm2, %v4027_v29  ;;  %v3393_v2 = vadd.f32 %v5377_v48, %v6844_v15  ;;  %v3742_v31 = vadd.f32 %v3607_v32, %v3378_v55  ;;  %v3617_v41 = vpop.f32.mrf.mxu0  ;;  %v7133_v15 = vadd.s32 144, %v6750_v24  ;;  %v1672_v29 = vand.u32 15, %v7123_v30  ;;  %v3869_v55 = vld [vmem:[#allocation2 + $0x28] sm:$0xff]  ;;  %v3870_v48 = vld [vmem:[#allocation2 + $0x30] sm:$0xff] }
 0x1c6   : > { %v3937_v39 = vsel %vm3928_vm4, %v3934_v42, %v3936_v46  ;;  %v3939_v35 = vsel %vm3928_vm4, %v3936_v46, %v3938_v19  ;;  %v3387_v20 = vpop.f32.mrf.mxu1  ;;  %v3942_v50 = vrot.slane %v7119_v47, 1  ;;  %vm7206_vm13 = vcmp.eq.s32.totalorder %v1658_v49, 0 }
 0x1c7   : > { %v4028_v17 = vadd.f32 %v3937_v39, %v3867_v16  ;;  %v4029_v18 = vadd.f32 %v3939_v35, %v3868_v43  ;;  %v3388_v7 = vadd.f32 %v3387_v20, %v6853_v26  ;;  %v3838_v42 = vsel %vm7106_vm9, 0.0, %v3742_v31  ;;  %v5430_v8 = vpop.f32.mrf.mxu0 }
 0x1c8   : > { %v4089_v59 = vld [vmem:[#allocation2] sm:$0xff]  ;;  %v7142_v5 = vadd.f32 %v5427_v58, %v3393_v2  ;;  %v5380_v56 = vpop.f32.mrf.mxu1  ;;  %v3940_v37 = vrot.slane %v3838_v42, 1  ;;  %v1686_v61 = vand.u32 15, %v7133_v15  ;;  %vm7214_vm14 = vcmp.eq.s32.totalorder %v1672_v29, 0 }
 0x1c9   : > { %v4128_v26 = vadd.f32 %v7128_v51, %v4089_v59  ;;  %4060 = vst.msk [vmem:[#allocation2 + $0x18] sm:$0xff] %vm1490_vm2, %v4028_v17  ;;  %4061 = vst.msk [vmem:[#allocation2 + $0x20] sm:$0xff] %vm1490_vm2, %v4029_v18  ;;  %v3744_v36 = vadd.f32 %v3617_v41, %v3388_v7  ;;  %v3403_v32 = vadd.f32 %v5380_v56, %v6864_v28  ;;  %v3627_v45 = vpop.f32.mrf.mxu0  ;;  %v3871_v18 = vld [vmem:[#allocation2 + $0x38] sm:$0xff]  ;;  %v3872_v7 = vld [vmem:[#allocation2 + $0x40] sm:$0xff] }
 0x1ca   : > { %v3397_v0 = vpop.f32.mrf.mxu1  ;;  %v3941_v58 = vsel %vm3928_vm4, %v3938_v19, %v3940_v37  ;;  %v3943_v47 = vsel %vm3928_vm4, %v3940_v37, %v3942_v50  ;;  %v3946_v43 = vrot.slane %v7142_v5, 1  ;;  %vm7224_vm15 = vcmp.eq.s32.totalorder %v1686_v61, 0 }
 0x1cb   : > { %v4160_v46 = vmax.f32 %v4128_v26, 0.0  ;;  %v3840_v28 = vsel %vm7136_vm10, 0.0, %v3744_v36  ;;  %v4030_v16 = vadd.f32 %v3941_v58, %v3869_v55  ;;  %v4031_v30 = vadd.f32 %v3943_v47, %v3870_v48  ;;  %v5433_v31 = vpop.f32.mrf.mxu0 }
 0x1cc   : > { %v4090_v2 = vld [vmem:[#allocation2 + $0x8] sm:$0xff]  ;;  %v4091_v11 = vld [vmem:[#allocation2 + $0x10] sm:$0xff]  ;;  %v3944_v39 = vrot.slane %v3840_v28, 1  ;;  %v5383_v35 = vpop.f32.mrf.mxu1  ;;  %v3398_v41 = vadd.f32 %v3397_v0, %v6872_v34  ;;  %v3747_v42 = vadd.f32 %v5430_v8, %v3403_v32  ;;  %v7187_v34 = vadd.s32 176, %v6750_v24 }
 0x1cd   : > { %4192 = vst.msk [vmem:[%s7161_s8] sm:$0xff] %vm1490_vm2, %v4160_v46  ;;  %v4129_v20 = vadd.f32 %v7128_v51, %v4090_v2  ;;  %v4130_v19 = vadd.f32 %v7128_v51, %v4091_v11  ;;  %v3413_v17 = vadd.f32 %v5383_v35, %v6883_v54  ;;  %4062 = vst.msk [vmem:[#allocation2 + $0x28] sm:$0xff] %vm1490_vm2, %v4030_v16  ;;  %v3637_v26 = vpop.f32.mrf.mxu0  ;;  %v7193_v32 = vadd.s32 192, %v6750_v24 }
 0x1ce   : > { %4063 = vst.msk [vmem:[#allocation2 + $0x30] sm:$0xff] %vm1490_vm2, %v4031_v30  ;;  %v3945_v1 = vsel %vm3928_vm4, %v3942_v50, %v3944_v39  ;;  %v3947_v59 = vsel %vm3928_vm4, %v3944_v39, %v3946_v43  ;;  %v3407_v56 = vpop.f32.mrf.mxu1  ;;  %v3746_v48 = vadd.f32 %v3627_v45, %v3398_v41  ;;  %v1700_v35 = vand.u32 15, %v7167_v60  ;;  %v3873_v41 = vld [vmem:[#allocation2 + $0x48] sm:$0xff] }
 0x1cf   : > { %v4161_v54 = vmax.f32 %v4129_v20, 0.0  ;;  %v4162_v37 = vmax.f32 %v4130_v19, 0.0  ;;  %v4032_v36 = vadd.f32 %v3945_v1, %v3871_v18  ;;  %v4033_v0 = vadd.f32 %v3947_v59, %v3872_v7  ;;  %v5436_v8 = vpop.f32.mrf.mxu0 }
 0x1d0   : > { %v4092_v46 = vld [vmem:[#allocation2 + $0x18] sm:$0xff]  ;;  %v4093_v55 = vld [vmem:[#allocation2 + $0x20] sm:$0xff]  ;;  %v7189_v50 = vadd.f32 %v5433_v31, %v3413_v17  ;;  %v3408_v58 = vadd.f32 %v3407_v56, %v6891_v23  ;;  %v5386_v47 = vpop.f32.mrf.mxu1  ;;  %v3842_v11 = vsel %vm7144_vm11, 0.0, %v3746_v48  ;;  %v1714_v31 = vand.u32 15, %v7187_v34 }
 0x1d1   : > { %4193 = vst.msk [vmem:[%s7161_s8 + $0x8] sm:$0xff] %vm1490_vm2, %v4161_v54  ;;  %4194 = vst.msk [vmem:[%s7161_s8 + $0x10] sm:$0xff] %vm1490_vm2, %v4162_v37  ;;  %v4131_v28 = vadd.f32 %v7128_v51, %v4092_v46  ;;  %v4132_v2 = vadd.f32 %v7128_v51, %v4093_v55  ;;  %v3423_v45 = vadd.f32 %v5386_v47, %v6901_v63  ;;  %v3647_v39 = vpop.f32.mrf.mxu0  ;;  %v3950_v19 = vrot.slane %v3747_v42, 1  ;;  %v3875_v48 = vld [vmem:[#allocation2 + $0x58] sm:$0xff] }
 0x1d2   : > { %4064 = vst.msk [vmem:[#allocation2 + $0x38] sm:$0xff] %vm1490_vm2, %v4032_v36  ;;  %4065 = vst.msk [vmem:[#allocation2 + $0x40] sm:$0xff] %vm1490_vm2, %v4033_v0  ;;  %v3748_v16 = vadd.f32 %v3637_v26, %v3408_v58  ;;  %v3417_v30 = vpop.f32.mrf.mxu1  ;;  %v3948_v40 = vrot.slane %v3842_v11, 1  ;;  %v3954_v6 = vrot.slane %v7189_v50, 1  ;;  %v1728_v29 = vand.u32 15, %v7193_v32  ;;  %v3876_v50 = vld [vmem:[#allocation2 + $0x60] sm:$0xff] }
 0x1d3   : > { %v4163_v20 = vmax.f32 %v4131_v28, 0.0  ;;  %v4164_v63 = vmax.f32 %v4132_v2, 0.0  ;;  %v3418_v18 = vadd.f32 %v3417_v30, %v6910_v9  ;;  %v5439_v1 = vpop.f32.mrf.mxu0  ;;  %v7237_v61 = vadd.f32 %v5436_v8, %v3423_v45  ;;  %v3882_v32 = vld [vmem:[#allocation2 + $0x90] sm:$0xff] }
 0x1d4   : > { %v3844_v17 = vsel %vm7153_vm12, 0.0, %v3748_v16  ;;  %v5389_v7 = vpop.f32.mrf.mxu1  ;;  %v4094_v42 = vld [vmem:[#allocation2 + $0x28] sm:$0xff]  ;;  %v3949_v9 = vsel %vm3928_vm4, %v3946_v43, %v3948_v40  ;;  %v3951_v26 = vsel %vm3928_vm4, %v3948_v40, %v3950_v19  ;;  %vm7276_vm0 = vcmp.eq.s32.totalorder %v1700_v35, 0 }
 0x1d5   : > { %4195 = vst.msk [vmem:[%s7161_s8 + $0x18] sm:$0xff] %vm1490_vm2, %v4163_v20  ;;  %4196 = vst.msk [vmem:[%s7161_s8 + $0x20] sm:$0xff] %vm1490_vm2, %v4164_v63  ;;  %v4095_v56 = vld [vmem:[#allocation2 + $0x30] sm:$0xff]  ;;  %v3952_v15 = vrot.slane %v3844_v17, 1  ;;  %v4133_v54 = vadd.f32 %v7128_v51, %v4094_v42  ;;  %v4034_v36 = vadd.f32 %v3949_v9, %v3873_v41  ;;  %v4035_v0 = vadd.f32 %v3951_v26, %v3874_v38  ;;  %v3657_v55 = vpop.f32.mrf.mxu0  ;;  %v3877_v26 = vld [vmem:[#allocation2 + $0x68] sm:$0xff] }
 0x1d6   : > { %v4134_v37 = vadd.f32 %v7128_v51, %v4095_v56  ;;  %v3427_v46 = vpop.f32.mrf.mxu1  ;;  %v3750_v43 = vadd.f32 %v3647_v39, %v3418_v18  ;;  %v3433_v47 = vadd.f32 %v5389_v7, %v6921_v57  ;;  %v3958_v40 = vrot.slane %v7237_v61, 1 }
 0x1d7   : > { %v3953_v58 = vsel %vm3928_vm4, %v3950_v19, %v3952_v15  ;;  %v3955_v5 = vsel %vm3928_vm4, %v3952_v15, %v3954_v6  ;;  %v4165_v8 = vmax.f32 %v4133_v54, 0.0  ;;  %4066 = vst.msk [vmem:[#allocation2 + $0x48] sm:$0xff] %vm1490_vm2, %v4034_v36  ;;  %4067 = vst.msk [vmem:[#allocation2 + $0x50] sm:$0xff] %vm1490_vm2, %v4035_v0  ;;  %v5442_v20 = vpop.f32.mrf.mxu0  ;;  %v7251_v19 = vadd.s32 208, %v6750_v24  ;;  %v3878_v15 = vld [vmem:[#allocation2 + $0x70] sm:$0xff] }
 0x1d8   : > { %v4166_v28 = vmax.f32 %v4134_v37, 0.0  ;;  %v4036_v11 = vadd.f32 %v3953_v58, %v3875_v48  ;;  %v4037_v16 = vadd.f32 %v3955_v5, %v3876_v50  ;;  %v5392_v30 = vpop.f32.mrf.mxu1  ;;  %v3846_v57 = vsel %vm7206_vm13, 0.0, %v3750_v43 }
 0x1d9   : > { %v4096_v2 = vld [vmem:[#allocation2 + $0x38] sm:$0xff]  ;;  %v4097_v45 = vld [vmem:[#allocation2 + $0x40] sm:$0xff]  ;;  %4197 = vst.msk [vmem:[%s7161_s8 + $0x28] sm:$0xff] %vm1490_vm2, %v4165_v8  ;;  %v3956_v41 = vrot.slane %v3846_v57, 1  ;;  %v3428_v17 = vadd.f32 %v3427_v46, %v6929_v52  ;;  %v3443_v23 = vadd.f32 %v5392_v30, %v6940_v4  ;;  %v3667_v7 = vpop.f32.mrf.mxu0  ;;  %v3753_v38 = vadd.f32 %v5439_v1, %v3433_v47 }
 0x1da   : > { %v4135_v63 = vadd.f32 %v7128_v51, %v4096_v2  ;;  %v4136_v39 = vadd.f32 %v7128_v51, %v4097_v45  ;;  %4198 = vst.msk [vmem:[%s7161_s8 + $0x30] sm:$0xff] %vm1490_vm2, %v4166_v28  ;;  %4068 = vst.msk [vmem:[#allocation2 + $0x58] sm:$0xff] %vm1490_vm2, %v4036_v11  ;;  %v3437_v18 = vpop.f32.mrf.mxu1  ;;  %v1742_v58 = vand.u32 15, %v7251_v19  ;;  %v7282_v5 = vadd.s32 224, %v6750_v24 }
 0x1db   : > { %4069 = vst.msk [vmem:[#allocation2 + $0x60] sm:$0xff] %vm1490_vm2, %v4037_v16  ;;  %v3438_v9 = vadd.f32 %v3437_v18, %v6948_v14  ;;  %v3957_v54 = vsel %vm3928_vm4, %v3954_v6, %v3956_v41  ;;  %v3959_v61 = vsel %vm3928_vm4, %v3956_v41, %v3958_v40  ;;  %v3752_v37 = vadd.f32 %v3657_v55, %v3428_v17  ;;  %v5445_v0 = vpop.f32.mrf.mxu0  ;;  %v3880_v18 = vld [vmem:[#allocation2 + $0x80] sm:$0xff] }
 0x1dc   : > { %v4167_v42 = vmax.f32 %v4135_v63, 0.0  ;;  %v4168_v56 = vmax.f32 %v4136_v39, 0.0  ;;  %v7265_v36 = vadd.f32 %v5442_v20, %v3443_v23  ;;  %v5395_v52 = vpop.f32.mrf.mxu1  ;;  %v4038_v4 = vadd.f32 %v3957_v54, %v3877_v26 }
 0x1dd   : > { %v4039_v46 = vadd.f32 %v3959_v61, %v3878_v15  ;;  %v3754_v1 = vadd.f32 %v3667_v7, %v3438_v9  ;;  %v3453_v14 = vadd.f32 %v5395_v52, %v6958_v62  ;;  %v3848_v48 = vsel %vm7214_vm14, 0.0, %v3752_v37  ;;  %v3677_v50 = vpop.f32.mrf.mxu0  ;;  %v3881_v9 = vld [vmem:[#allocation2 + $0x88] sm:$0xff] }
 0x1de   : > { %4199 = vst.msk [vmem:[%s7161_s8 + $0x38] sm:$0xff] %vm1490_vm2, %v4167_v42  ;;  %4200 = vst.msk [vmem:[%s7161_s8 + $0x40] sm:$0xff] %vm1490_vm2, %v4168_v56  ;;  %v3447_v6 = vpop.f32.mrf.mxu1  ;;  %v4098_v43 = vld [vmem:[#allocation2 + $0x48] sm:$0xff]  ;;  %v4099_v47 = vld [vmem:[#allocation2 + $0x50] sm:$0xff]  ;;  %v3962_v62 = vrot.slane %v3753_v38, 1  ;;  %v3960_v49 = vrot.slane %v3848_v48, 1 }
 0x1df   : > { %4070 = vst.msk [vmem:[#allocation2 + $0x68] sm:$0xff] %vm1490_vm2, %v4038_v4  ;;  %4071 = vst.msk [vmem:[#allocation2 + $0x70] sm:$0xff] %vm1490_vm2, %v4039_v46  ;;  %v3850_v60 = vsel %vm7224_vm15, 0.0, %v3754_v1  ;;  %v3448_v35 = vadd.f32 %v3447_v6, %v6967_v12  ;;  %vm7291_vm1 = vcmp.eq.s32.totalorder %v1714_v31, 0  ;;  %v4137_v28 = vadd.f32 %v7128_v51, %v4098_v43  ;;  %v5448_v30 = vpop.f32.mrf.mxu0 }
 0x1e0   : > { %v4138_v2 = vadd.f32 %v7128_v51, %v4099_v47  ;;  %v3966_v45 = vrot.slane %v7265_v36, 1  ;;  %v3964_v11 = vrot.slane %v3850_v60, 1  ;;  %v5398_v16 = vpop.f32.mrf.mxu1  ;;  %v3961_v63 = vsel %vm3928_vm4, %v3958_v40, %v3960_v49  ;;  %v3879_v40 = vld [vmem:[#allocation2 + $0x78] sm:$0xff] }
 0x1e1   : > { %v4100_v20 = vld [vmem:[#allocation2 + $0x58] sm:$0xff]  ;;  %v3963_v12 = vsel %vm3928_vm4, %v3960_v49, %v3962_v62  ;;  %v7300_v34 = vadd.f32 %v5445_v0, %v3453_v14  ;;  %v3756_v31 = vadd.f32 %v3677_v50, %v3448_v35  ;;  %vm7304_vm3 = vcmp.eq.s32.totalorder %v1728_v29, 0  ;;  %v3687_v42 = vpop.f32.mrf.mxu0  ;;  %v3884_v35 = vld [vmem:[#allocation2 + $0xa0] sm:$0xff] }
 0x1e2   : > { %v4101_v59 = vld [vmem:[#allocation2 + $0x60] sm:$0xff]  ;;  %v4169_v57 = vmax.f32 %v4137_v28, 0.0  ;;  %v4170_v41 = vmax.f32 %v4138_v2, 0.0  ;;  %v4139_v17 = vadd.f32 %v7128_v51, %v4100_v20  ;;  %v3457_v7 = vpop.f32.mrf.mxu1  ;;  %v4040_v56 = vadd.f32 %v3961_v63, %v3879_v40  ;;  %v3883_v60 = vld [vmem:[#allocation2 + $0x98] sm:$0xff] }
 0x1e3   : > { %v4140_v23 = vadd.f32 %v7128_v51, %v4101_v59  ;;  %v4041_v38 = vadd.f32 %v3963_v12, %v3880_v18  ;;  %v3965_v29 = vsel %vm3928_vm4, %v3962_v62, %v3964_v11  ;;  %v3967_v26 = vsel %vm3928_vm4, %v3964_v11, %v3966_v45  ;;  %v5451_v52 = vpop.f32.mrf.mxu0 }
 0x1e4   : > { %4201 = vst.msk [vmem:[%s7161_s8 + $0x48] sm:$0xff] %vm1490_vm2, %v4169_v57  ;;  %4202 = vst.msk [vmem:[%s7161_s8 + $0x50] sm:$0xff] %vm1490_vm2, %v4170_v41  ;;  %v4171_v15 = vmax.f32 %v4139_v17, 0.0  ;;  %v4042_v61 = vadd.f32 %v3965_v29, %v3881_v9  ;;  %v4043_v37 = vadd.f32 %v3967_v26, %v3882_v32  ;;  %v5401_v36 = vpop.f32.mrf.mxu1  ;;  %v3852_v0 = vsel %vm7276_vm0, 0.0, %v3756_v31  ;;  %v3886_v26 = vld [vmem:[#allocation2 + $0xb0] sm:$0xff] }
 0x1e5   : > { %v4172_v54 = vmax.f32 %v4140_v23, 0.0  ;;  %4072 = vst.msk [vmem:[#allocation2 + $0x78] sm:$0xff] %vm1490_vm2, %v4040_v56  ;;  %4073 = vst.msk [vmem:[#allocation2 + $0x80] sm:$0xff] %vm1490_vm2, %v4041_v38  ;;  %v3463_v4 = vadd.f32 %v5398_v16, %v6978_v27  ;;  %v3458_v46 = vadd.f32 %v3457_v7, %v6986_v53  ;;  %v3473_v1 = vadd.f32 %v5401_v36, %v6997_v10  ;;  %v3697_v43 = vpop.f32.mrf.mxu0  ;;  %v3885_v23 = vld [vmem:[#allocation2 + $0xa8] sm:$0xff] }
 0x1e6   : > { %4203 = vst.msk [vmem:[%s7161_s8 + $0x58] sm:$0xff] %vm1490_vm2, %v4171_v15  ;;  %v4102_v14 = vld [vmem:[#allocation2 + $0x68] sm:$0xff]  ;;  %v4103_v48 = vld [vmem:[#allocation2 + $0x70] sm:$0xff]  ;;  %4074 = vst.msk [vmem:[#allocation2 + $0x88] sm:$0xff] %vm1490_vm2, %v4042_v61  ;;  %v3970_v6 = vrot.slane %v7300_v34, 1  ;;  %v3968_v55 = vrot.slane %v3852_v0, 1  ;;  %v3467_v50 = vpop.f32.mrf.mxu1 }
 0x1e7   : > { %4204 = vst.msk [vmem:[%s7161_s8 + $0x60] sm:$0xff] %vm1490_vm2, %v4172_v54  ;;  %4075 = vst.msk [vmem:[#allocation2 + $0x90] sm:$0xff] %vm1490_vm2, %v4043_v37  ;;  %v1756_v27 = vand.u32 15, %v7282_v5  ;;  %v7332_v53 = vadd.s32 240, %v6750_v24  ;;  %v4141_v10 = vadd.f32 %v7128_v51, %v4102_v14  ;;  %v4142_v47 = vadd.f32 %v7128_v51, %v4103_v48  ;;  %v5454_v16 = vpop.f32.mrf.mxu0 }
 0x1e8   : > { %v7336_v62 = vadd.f32 %v5448_v30, %v3463_v4  ;;  %v3758_v49 = vadd.f32 %v3687_v42, %v3458_v46  ;;  %v3969_v28 = vsel %vm3928_vm4, %v3966_v45, %v3968_v55  ;;  %v3971_v2 = vsel %vm3928_vm4, %v3968_v55, %v3970_v6  ;;  %v5404_v5 = vpop.f32.mrf.mxu1  ;;  %v3890_v45 = vld [vmem:[#allocation2 + $0xd0] sm:$0xff] }
 0x1e9   : > { %v7340_v11 = vadd.f32 %v5451_v52, %v3473_v1  ;;  %v3468_v24 = vadd.f32 %v3467_v50, %v7005_v22  ;;  %v4173_v20 = vmax.f32 %v4141_v10, 0.0  ;;  %v4174_v59 = vmax.f32 %v4142_v47, 0.0  ;;  %v3707_v57 = vpop.f32.mrf.mxu0 }
 0x1ea   : > { %v4044_v63 = vadd.f32 %v3969_v28, %v3883_v60  ;;  %v4045_v30 = vadd.f32 %v3971_v2, %v3884_v35  ;;  %v3854_v12 = vsel %vm7291_vm1, 0.0, %v3758_v49  ;;  %v3477_v31 = vpop.f32.mrf.mxu1  ;;  %vm7347_vm5 = vcmp.eq.s32.totalorder %v1742_v58, 0 }
 0x1eb   : > { %v3760_v34 = vadd.f32 %v3697_v43, %v3468_v24  ;;  %4205 = vst.msk [vmem:[%s7161_s8 + $0x68] sm:$0xff] %vm1490_vm2, %v4173_v20  ;;  %4206 = vst.msk [vmem:[%s7161_s8 + $0x70] sm:$0xff] %vm1490_vm2, %v4174_v59  ;;  %v3974_v22 = vrot.slane %v7336_v62, 1  ;;  %v3972_v8 = vrot.slane %v3854_v12, 1  ;;  %v3483_v41 = vadd.f32 %v5404_v5, %v7015_v33  ;;  %v5457_v56 = vpop.f32.mrf.mxu0  ;;  %v3887_v43 = vld [vmem:[#allocation2 + $0xb8] sm:$0xff] }
 0x1ec   : > { %4076 = vst.msk [vmem:[#allocation2 + $0x98] sm:$0xff] %vm1490_vm2, %v4044_v63  ;;  %4077 = vst.msk [vmem:[#allocation2 + $0xa0] sm:$0xff] %vm1490_vm2, %v4045_v30  ;;  %vm7359_vm6 = vcmp.eq.s32.totalorder %v1756_v27, 0  ;;  %v4104_v58 = vld [vmem:[#allocation2 + $0x78] sm:$0xff]  ;;  %v4105_v17 = vld [vmem:[#allocation2 + $0x80] sm:$0xff]  ;;  %v3978_v40 = vrot.slane %v7340_v11, 1  ;;  %v3478_v7 = vadd.f32 %v3477_v31, %v7024_v21  ;;  %v5407_v42 = vpop.f32.mrf.mxu1 }
 0x1ed   : > { %v3856_v18 = vsel %vm7304_vm3, 0.0, %v3760_v34  ;;  %v1770_v38 = vand.u32 15, %v7332_v53  ;;  %v4143_v33 = vadd.f32 %v7128_v51, %v4104_v58  ;;  %v4144_v9 = vadd.f32 %v7128_v51, %v4105_v17  ;;  %v4106_v32 = vld [vmem:[#allocation2 + $0x88] sm:$0xff]  ;;  %v3717_v52 = vpop.f32.mrf.mxu0  ;;  %v3888_v27 = vld [vmem:[#allocation2 + $0xc0] sm:$0xff] }
 0x1ee   : > { %v4107_v29 = vld [vmem:[#allocation2 + $0x90] sm:$0xff]  ;;  %v3973_v15 = vsel %vm3928_vm4, %v3970_v6, %v3972_v8  ;;  %v3975_v54 = vsel %vm3928_vm4, %v3972_v8, %v3974_v22  ;;  %v4145_v39 = vadd.f32 %v7128_v51, %v4106_v32  ;;  %v3487_v36 = vpop.f32.mrf.mxu1  ;;  %v3976_v46 = vrot.slane %v3856_v18, 1  ;;  %v3889_v31 = vld [vmem:[#allocation2 + $0xc8] sm:$0xff] }
 0x1ef   : > { %v4146_v61 = vadd.f32 %v7128_v51, %v4107_v29  ;;  %v4046_v21 = vadd.f32 %v3973_v15, %v3885_v23  ;;  %v4047_v37 = vadd.f32 %v3975_v54, %v3886_v26  ;;  %v4175_v0 = vmax.f32 %v4143_v33, 0.0  ;;  %v5460_v11 = vpop.f32.mrf.mxu0  ;;  %v3892_v33 = vld [vmem:[#allocation2 + $0xe0] sm:$0xff] }
 0x1f0   : > { %v4176_v4 = vmax.f32 %v4144_v9, 0.0  ;;  %v3763_v1 = vadd.f32 %v5454_v16, %v3483_v41  ;;  %v4177_v14 = vmax.f32 %v4145_v39, 0.0  ;;  %v3762_v6 = vadd.f32 %v3707_v57, %v3478_v7  ;;  %v5410_v50 = vpop.f32.mrf.mxu1 }
 0x1f1   : > { %v4178_v48 = vmax.f32 %v4146_v61, 0.0  ;;  %4078 = vst.msk [vmem:[#allocation2 + $0xa8] sm:$0xff] %vm1490_vm2, %v4046_v21  ;;  %4079 = vst.msk [vmem:[#allocation2 + $0xb0] sm:$0xff] %vm1490_vm2, %v4047_v37  ;;  %v3493_v55 = vadd.f32 %v5407_v42, %v7034_v25  ;;  %v3977_v53 = vsel %vm3928_vm4, %v3974_v22, %v3976_v46  ;;  %v3979_v10 = vsel %vm3928_vm4, %v3976_v46, %v3978_v40  ;;  %v3727_v17 = vpop.f32.mrf.mxu0  ;;  %v3895_v37 = vld [vmem:[#allocation2 + $0xf8] sm:$0xff] }
 0x1f2   : > { %4207 = vst.msk [vmem:[%s7161_s8 + $0x78] sm:$0xff] %vm1490_vm2, %v4175_v0  ;;  %4208 = vst.msk [vmem:[%s7161_s8 + $0x80] sm:$0xff] %vm1490_vm2, %v4176_v4  ;;  %v3982_v47 = vrot.slane %v3763_v1, 1  ;;  %v3488_v62 = vadd.f32 %v3487_v36, %v7042_v3  ;;  %v4048_v60 = vadd.f32 %v3977_v53, %v3887_v43  ;;  %v4049_v35 = vadd.f32 %v3979_v10, %v3888_v27  ;;  %v3497_v24 = vpop.f32.mrf.mxu1  ;;  %v3893_v1 = vld [vmem:[#allocation2 + $0xe8] sm:$0xff] }
 0x1f3   : > { %4209 = vst.msk [vmem:[%s7161_s8 + $0x88] sm:$0xff] %vm1490_vm2, %v4177_v14  ;;  %4210 = vst.msk [vmem:[%s7161_s8 + $0x90] sm:$0xff] %vm1490_vm2, %v4178_v48  ;;  %v4108_v49 = vld [vmem:[#allocation2 + $0x98] sm:$0xff]  ;;  %v4109_v25 = vld [vmem:[#allocation2 + $0xa0] sm:$0xff]  ;;  %v3858_v28 = vsel %vm7347_vm5, 0.0, %v3762_v6  ;;  %v3765_v2 = vadd.f32 %v5457_v56, %v3493_v55  ;;  %v3503_v59 = vadd.f32 %v5410_v50, %v7052_v44  ;;  %v3498_v63 = vadd.f32 %v3497_v24, %v7058_v13 }
 0x1f4   : > { %v4147_v5 = vadd.f32 %v7128_v51, %v4108_v49  ;;  %v4148_v16 = vadd.f32 %v7128_v51, %v4109_v25  ;;  %v3980_v20 = vrot.slane %v3858_v28, 1  ;;  %v3764_v3 = vadd.f32 %v3717_v52, %v3488_v62  ;;  %4080 = vst.msk [vmem:[#allocation2 + $0xb8] sm:$0xff] %vm1490_vm2, %v4048_v60  ;;  %4081 = vst.msk [vmem:[#allocation2 + $0xc0] sm:$0xff] %vm1490_vm2, %v4049_v35  ;;  %v3894_v14 = vld [vmem:[#allocation2 + $0xf0] sm:$0xff] }
 0x1f5   : > { %vm7396_vm7 = vcmp.eq.s32.totalorder %v1770_v38, 0  ;;  %v3767_v44 = vadd.f32 %v5460_v11, %v3503_v59  ;;  %v3986_v18 = vrot.slane %v3765_v2, 1  ;;  %v3766_v42 = vadd.f32 %v3727_v17, %v3498_v63  ;;  %v3891_v38 = vld [vmem:[#allocation2 + $0xd8] sm:$0xff] }
 0x1f6   : > { %v4179_v12 = vmax.f32 %v4147_v5, 0.0  ;;  %v4180_v34 = vmax.f32 %v4148_v16, 0.0  ;;  %v3981_v57 = vsel %vm3928_vm4, %v3978_v40, %v3980_v20  ;;  %v3983_v22 = vsel %vm3928_vm4, %v3980_v20, %v3982_v47 }
 0x1f7   : > { %v4050_v8 = vadd.f32 %v3981_v57, %v3889_v31  ;;  %v4051_v41 = vadd.f32 %v3983_v22, %v3890_v45  ;;  %v3860_v58 = vsel %vm7359_vm6, 0.0, %v3764_v3  ;;  %v3990_v19 = vrot.slane %v3767_v44, 1 }
 0x1f8   : > { %4211 = vst.msk [vmem:[%s7161_s8 + $0x98] sm:$0xff] %vm1490_vm2, %v4179_v12  ;;  %4212 = vst.msk [vmem:[%s7161_s8 + $0xa0] sm:$0xff] %vm1490_vm2, %v4180_v34  ;;  %v4110_v13 = vld [vmem:[#allocation2 + $0xa8] sm:$0xff]  ;;  %v4111_v23 = vld [vmem:[#allocation2 + $0xb0] sm:$0xff]  ;;  %v3984_v7 = vrot.slane %v3860_v58, 1  ;;  %v3862_v29 = vsel %vm7396_vm7, 0.0, %v3766_v42 }
 0x1f9   : > { %v4149_v40 = vadd.f32 %v7128_v51, %v4110_v13  ;;  %v4150_v56 = vadd.f32 %v7128_v51, %v4111_v23  ;;  %4082 = vst.msk [vmem:[#allocation2 + $0xc8] sm:$0xff] %vm1490_vm2, %v4050_v8  ;;  %4083 = vst.msk [vmem:[#allocation2 + $0xd0] sm:$0xff] %vm1490_vm2, %v4051_v41  ;;  %v4024_v36 = vsel %vm3928_vm4, %v3990_v19, 0.0  ;;  %v3988_v52 = vrot.slane %v3862_v29, 1 }
 0x1fa   : > { %v3985_v9 = vsel %vm3928_vm4, %v3982_v47, %v3984_v7  ;;  %v3987_v32 = vsel %vm3928_vm4, %v3984_v7, %v3986_v18  ;;  %v4056_v46 = vadd.f32 %v4024_v36, %v3895_v37 }
 0x1fb   : > { %v4181_v26 = vmax.f32 %v4149_v40, 0.0  ;;  %v4182_v15 = vmax.f32 %v4150_v56, 0.0  ;;  %v4052_v54 = vadd.f32 %v3985_v9, %v3891_v38  ;;  %v4053_v39 = vadd.f32 %v3987_v32, %v3892_v33  ;;  %v4112_v61 = vld [vmem:[#allocation2 + $0xb8] sm:$0xff]  ;;  %v4113_v21 = vld [vmem:[#allocation2 + $0xc0] sm:$0xff] }
 0x1fc   : > { %v4151_v0 = vadd.f32 %v7128_v51, %v4112_v61  ;;  %v4152_v4 = vadd.f32 %v7128_v51, %v4113_v21  ;;  %v3989_v48 = vsel %vm3928_vm4, %v3986_v18, %v3988_v52  ;;  %v3991_v6 = vsel %vm3928_vm4, %v3988_v52, %v3990_v19  ;;  %4088 = vst.msk [vmem:[#allocation2 + $0xf8] sm:$0xff] %vm1490_vm2, %v4056_v46 }
 0x1fd   : > { %4213 = vst.msk [vmem:[%s7161_s8 + $0xa8] sm:$0xff] %vm1490_vm2, %v4181_v26  ;;  %4214 = vst.msk [vmem:[%s7161_s8 + $0xb0] sm:$0xff] %vm1490_vm2, %v4182_v15  ;;  %v4054_v43 = vadd.f32 %v3989_v48, %v3893_v1  ;;  %v4055_v27 = vadd.f32 %v3991_v6, %v3894_v14 }
 0x1fe   : > { %4084 = vst.msk [vmem:[#allocation2 + $0xd8] sm:$0xff] %vm1490_vm2, %v4052_v54  ;;  %4085 = vst.msk [vmem:[#allocation2 + $0xe0] sm:$0xff] %vm1490_vm2, %v4053_v39  ;;  %v4183_v55 = vmax.f32 %v4151_v0, 0.0  ;;  %v4184_v50 = vmax.f32 %v4152_v4, 0.0 }
 0x1ff   : > { %4086 = vst.msk [vmem:[#allocation2 + $0xe8] sm:$0xff] %vm1490_vm2, %v4054_v43  ;;  %4087 = vst.msk [vmem:[#allocation2 + $0xf0] sm:$0xff] %vm1490_vm2, %v4055_v27 }
 0x200   : > { %v4114_v53 = vld [vmem:[#allocation2 + $0xc8] sm:$0xff]  ;;  %v4115_v10 = vld [vmem:[#allocation2 + $0xd0] sm:$0xff]  ;;  %4215 = vst.msk [vmem:[%s7161_s8 + $0xb8] sm:$0xff] %vm1490_vm2, %v4183_v55  ;;  %4216 = vst.msk [vmem:[%s7161_s8 + $0xc0] sm:$0xff] %vm1490_vm2, %v4184_v50 }
 0x201   : > { %v4153_v47 = vadd.f32 %v7128_v51, %v4114_v53  ;;  %v4154_v62 = vadd.f32 %v7128_v51, %v4115_v10 }
 0x203   : > { %v4185_v49 = vmax.f32 %v4153_v47, 0.0  ;;  %v4186_v25 = vmax.f32 %v4154_v62, 0.0  ;;  %v4120_v11 = vld [vmem:[#allocation2 + $0xf8] sm:$0xff] }
 0x204   : > { %v4159_v16 = vadd.f32 %v7128_v51, %v4120_v11 }
 0x205   : > { %v4116_v60 = vld [vmem:[#allocation2 + $0xd8] sm:$0xff]  ;;  %v4117_v35 = vld [vmem:[#allocation2 + $0xe0] sm:$0xff]  ;;  %4217 = vst.msk [vmem:[%s7161_s8 + $0xc8] sm:$0xff] %vm1490_vm2, %v4185_v49  ;;  %4218 = vst.msk [vmem:[%s7161_s8 + $0xd0] sm:$0xff] %vm1490_vm2, %v4186_v25 }
 0x206   : > { %v4155_v28 = vadd.f32 %v7128_v51, %v4116_v60  ;;  %v4156_v2 = vadd.f32 %v7128_v51, %v4117_v35  ;;  %v4118_v20 = vld [vmem:[#allocation2 + $0xe8] sm:$0xff]  ;;  %v4119_v3 = vld [vmem:[#allocation2 + $0xf0] sm:$0xff]  ;;  %v4191_v59 = vmax.f32 %v4159_v16, 0.0 }
 0x207   : > { %v4157_v63 = vadd.f32 %v7128_v51, %v4118_v20  ;;  %v4158_v30 = vadd.f32 %v7128_v51, %v4119_v3 }
 0x208   : > { %v4187_v24 = vmax.f32 %v4155_v28, 0.0  ;;  %v4188_v5 = vmax.f32 %v4156_v2, 0.0  ;;  %4223 = vst.msk [vmem:[%s7161_s8 + $0xf8] sm:$0xff] %vm1490_vm2, %v4191_v59 }
 0x209   : > { %v4189_v12 = vmax.f32 %v4157_v63, 0.0  ;;  %v4190_v34 = vmax.f32 %v4158_v30, 0.0 }
 0x20a   : > { %4219 = vst.msk [vmem:[%s7161_s8 + $0xd8] sm:$0xff] %vm1490_vm2, %v4187_v24  ;;  %4220 = vst.msk [vmem:[%s7161_s8 + $0xe0] sm:$0xff] %vm1490_vm2, %v4188_v5 }
 0x20b   : > { %4221 = vst.msk [vmem:[%s7161_s8 + $0xe8] sm:$0xff] %vm1490_vm2, %v4189_v12  ;;  %4222 = vst.msk [vmem:[%s7161_s8 + $0xf0] sm:$0xff] %vm1490_vm2, %v4190_v34 }
 0x20c PF: > { %s15_s20 = sadd.s32 1, %s5509_s20   ;;  %s7799_s18 = smov %s5505_s19 }
 0x20d   : > { %p12_p5 = scmp.ge.s32.totalorder %s15_s20, 4   ;;  %s7800_s19 = smov %s7802_s21 }
 0x20f   :  { %14 = sbr.rel (!%p12_p5) target bundleno = 2 (0x2), region = 90 }

</bundles_post_ra>
